<compile_context>
chip_gen: v7x
topology: tpu7x:2x2x1
jax: 0.10.0
libtpu: 0.0.40
codegen_flags: <defaults>
</compile_context>

<pallas_src>
import functools

import jax
import jax.numpy as jnp
from jax import lax
from jax.experimental import pallas as pl
from jax.experimental.pallas import tpu as pltpu

HID = 16      # hidden width of the filter MLP
LANES = 128   # TPU lane count
SUB = 8       # sublanes per f32 vreg

# Packed-parameter layout inside the SMEM vector.
_W1_OFF = 0
_B1_OFF = HID
_W2_OFF = 2 * HID
_B2_OFF = 2 * HID + HID * HID
_W3_OFF = 3 * HID + HID * HID
_B3_OFF = 4 * HID + HID * HID
_N_PARAMS = _B3_OFF + 1  # 321


# ----------------------------------------------------------------------------
# Parameter init (mirrors NeuralSpectralFilter.__init__):
# generic init for the first two Linear layers, and for the last Linear:
# weight ~ N(0, 0.1), bias = -1.0 (the module's explicit init).
# ----------------------------------------------------------------------------
def init_params(key):
    k1, k2, k3, k4, k5 = jax.random.split(key, 5)
    w1 = jax.random.uniform(k1, (HID, 1), jnp.float32, -1.0, 1.0)
    b1 = jax.random.uniform(k2, (HID,), jnp.float32, -1.0, 1.0)
    w2 = jax.random.uniform(k3, (HID, HID), jnp.float32, -0.25, 0.25)
    b2 = jax.random.uniform(k4, (HID,), jnp.float32, -0.25, 0.25)
    w3 = 0.1 * jax.random.normal(k5, (1, HID), jnp.float32)
    b3 = jnp.full((1,), -1.0, jnp.float32)
    return dict(w1=w1, b1=b1, w2=w2, b2=b2, w3=w3, b3=b3)


# ----------------------------------------------------------------------------
# Pallas kernel
# ----------------------------------------------------------------------------
def _filter_kernel(p_ref, x_ref, o_ref):
    # p_ref: SMEM f32[321]   (1/max already folded into the w1 slots)
    # x_ref / o_ref: VMEM f32[tile_r, 128]
    # Load all scalar weights once (loop-invariant; scalar path).
    w1 = [p_ref[_W1_OFF + j] for j in range(HID)]
    b1 = [p_ref[_B1_OFF + j] for j in range(HID)]
    w2 = [[p_ref[_W2_OFF + k * HID + j] for j in range(HID)] for k in range(HID)]
    b2 = [p_ref[_B2_OFF + k] for k in range(HID)]
    w3 = [p_ref[_W3_OFF + k] for k in range(HID)]
    b3 = p_ref[_B3_OFF]

    n_sub = x_ref.shape[0] // SUB  # number of (8,128) vregs in this tile

    def body(r, carry):
        r0 = pl.multiple_of(r * SUB, SUB)
        x = x_ref[pl.ds(r0, SUB), :]  # one (8,128) vreg of eigenvalues

        # Layer 1: relu(x * (w1/max) + b1)  -> 16 vregs
        h1 = [jnp.maximum(x * w1[j] + b1[j], 0.0) for j in range(HID)]

        # Layers 2 + 3 fused: stream each hidden unit of layer 2 and fold it
        # straight into the scalar output accumulator (keeps live vregs ~19).
        z = jnp.zeros_like(x)
        for k in range(HID):
            s = h1[0] * w2[k][0]
            for j in range(1, HID):
                s = s + h1[j] * w2[k][j]
            h2k = jnp.maximum(s + b2[k], 0.0)
            z = z + h2k * w3[k]
        z = z + b3

        # sigmoid(z) via a single EUP tanh, plus the module's +1e-6.
        y = 0.5 * (jnp.tanh(0.5 * z) + 1.0) + 1e-6
        o_ref[pl.ds(r0, SUB), :] = y
        return carry

    lax.fori_loop(0, n_sub, body, 0, unroll=False)


# ----------------------------------------------------------------------------
# Wrapper
# ----------------------------------------------------------------------------
@functools.partial(jax.jit, static_argnames=("max_tile_rows",))
def neural_spectral_filter(eigenvalues, params, *, max_tile_rows=512):
    """eigenvalues: f32[N] (1-D). Returns f32[N]."""
    x = eigenvalues.astype(jnp.float32)
    n = x.shape[0]

    # Hoist the global max out of the kernel and fold 1/(max+1e-8) into the
    # first-layer weights -> kernel is purely elementwise / tileable.
    inv_max = 1.0 / (jnp.max(x) + 1e-8)

    # Single-concatenate packing of all scalars (no chained .at[].set dispatches).
    packed = jnp.concatenate([
        params["w1"].reshape(-1) * inv_max,   # 16
        params["b1"].reshape(-1),             # 16
        params["w2"].reshape(-1),             # 256 (row-major: W2[k, j])
        params["b2"].reshape(-1),             # 16
        params["w3"].reshape(-1),             # 16
        params["b3"].reshape(-1),             # 1
    ]).astype(jnp.float32)                    # total 321 -> SMEM

    # Lane-dense layout: (rows, 128); rows padded to a multiple of the tile height.
    rows_needed = pl.cdiv(n, LANES)
    tile_r = min(max_tile_rows, ((rows_needed + SUB - 1) // SUB) * SUB)
    rows = ((rows_needed + tile_r - 1) // tile_r) * tile_r
    x2d = jnp.pad(x, (0, rows * LANES - n)).reshape(rows, LANES)

    grid = (rows // tile_r,)
    out2d = pl.pallas_call(
        _filter_kernel,
        out_shape=jax.ShapeDtypeStruct((rows, LANES), jnp.float32),
        grid=grid,
        in_specs=[
            pl.BlockSpec(memory_space=pltpu.MemorySpace.SMEM),       # packed params
            pl.BlockSpec((tile_r, LANES), lambda i: (i, 0)),         # eigenvalue tile
        ],
        out_specs=pl.BlockSpec((tile_r, LANES), lambda i: (i, 0)),
        compiler_params=pltpu.CompilerParams(
            dimension_semantics=("parallel",)),
    )(packed, x2d)

    return out2d.reshape(-1)[:n]


# ----------------------------------------------------------------------------
# Pure-JAX reference (mirrors the PyTorch forward) for validation
# ----------------------------------------------------------------------------
def reference_forward(eigenvalues, params):
    x = eigenvalues.astype(jnp.float32)
    max_e = jnp.max(x) + 1e-8
    h = (x / max_e)[:, None]                                        # (N, 1)
    h = jnp.maximum(h @ params["w1"].T + params["b1"], 0.0)         # (N, 16)
    h = jnp.maximum(h @ params["w2"].T + params["b2"], 0.0)         # (N, 16)
    h = jax.nn.sigmoid(h @ params["w3"].T + params["b3"])           # (N, 1)
    return h[:, 0] + 1e-6


if __name__ == "__main__":
    key = jax.random.PRNGKey(0)
    pkey, xkey, ykey = jax.random.split(key, 3)
    params = init_params(pkey)

    # Small eigen-spectrum (not a multiple of 128 -> exercises padding / tail slice).
    n = 200
    eigenvalues = jax.random.uniform(xkey, (n,), jnp.float32, 0.0, 2.0)

    out = jax.block_until_ready(neural_spectral_filter(eigenvalues, params))
    ref = reference_forward(eigenvalues, params)
    assert out.shape == (n,)
    assert jnp.allclose(out, ref, atol=1e-5, rtol=1e-5), (
        f"max abs err = {float(jnp.max(jnp.abs(out - ref)))}"
    )

    # Second case with a tiny tile cap to exercise a multi-step parallel grid.
    n2 = 3000
    eig2 = jax.random.uniform(ykey, (n2,), jnp.float32, 0.0, 5.0)
    out2 = jax.block_until_ready(
        neural_spectral_filter(eig2, params, max_tile_rows=8))
    ref2 = reference_forward(eig2, params)
    assert jnp.allclose(out2, ref2, atol=1e-5, rtol=1e-5), (
        f"max abs err = {float(jnp.max(jnp.abs(out2 - ref2)))}"
    )

    print("KERNEL_OK")
</pallas_src>

<mosaic_0001>
module attributes {stable_mosaic.version = 11 : i64} {
  func.func @_filter_kernel(%arg0: i32, %arg1: memref<321xf32, #tpu.memory_space<smem>>, %arg2: memref<8x128xf32, #tpu.memory_space<vmem>>, %arg3: memref<8x128xf32, #tpu.memory_space<vmem>>) attributes {dimension_semantics = [#tpu.dimension_semantics<parallel>], iteration_bounds = array<i64: 1>, scalar_prefetch = 0 : i64, scratch_operands = 0 : i64, tpu.core_type = #tpu.core_type<tc>, window_params = [{transform_indices = @transform_0, window_bounds = array<i64: 321>}, {transform_indices = @transform_1, window_bounds = array<i64: 8, 128>}, {transform_indices = @transform_2, window_bounds = array<i64: 8, 128>}]} {
    %c0 = arith.constant 0 : index
    %0 = memref.load %arg1[%c0] : memref<321xf32, #tpu.memory_space<smem>>
    %c1 = arith.constant 1 : index
    %1 = memref.load %arg1[%c1] : memref<321xf32, #tpu.memory_space<smem>>
    %c2 = arith.constant 2 : index
    %2 = memref.load %arg1[%c2] : memref<321xf32, #tpu.memory_space<smem>>
    %c3 = arith.constant 3 : index
    %3 = memref.load %arg1[%c3] : memref<321xf32, #tpu.memory_space<smem>>
    %c4 = arith.constant 4 : index
    %4 = memref.load %arg1[%c4] : memref<321xf32, #tpu.memory_space<smem>>
    %c5 = arith.constant 5 : index
    %5 = memref.load %arg1[%c5] : memref<321xf32, #tpu.memory_space<smem>>
    %c6 = arith.constant 6 : index
    %6 = memref.load %arg1[%c6] : memref<321xf32, #tpu.memory_space<smem>>
    %c7 = arith.constant 7 : index
    %7 = memref.load %arg1[%c7] : memref<321xf32, #tpu.memory_space<smem>>
    %c8 = arith.constant 8 : index
    %8 = memref.load %arg1[%c8] : memref<321xf32, #tpu.memory_space<smem>>
    %c9 = arith.constant 9 : index
    %9 = memref.load %arg1[%c9] : memref<321xf32, #tpu.memory_space<smem>>
    %c10 = arith.constant 10 : index
    %10 = memref.load %arg1[%c10] : memref<321xf32, #tpu.memory_space<smem>>
    %c11 = arith.constant 11 : index
    %11 = memref.load %arg1[%c11] : memref<321xf32, #tpu.memory_space<smem>>
    %c12 = arith.constant 12 : index
    %12 = memref.load %arg1[%c12] : memref<321xf32, #tpu.memory_space<smem>>
    %c13 = arith.constant 13 : index
    %13 = memref.load %arg1[%c13] : memref<321xf32, #tpu.memory_space<smem>>
    %c14 = arith.constant 14 : index
    %14 = memref.load %arg1[%c14] : memref<321xf32, #tpu.memory_space<smem>>
    %c15 = arith.constant 15 : index
    %15 = memref.load %arg1[%c15] : memref<321xf32, #tpu.memory_space<smem>>
    %c16 = arith.constant 16 : index
    %16 = memref.load %arg1[%c16] : memref<321xf32, #tpu.memory_space<smem>>
    %c17 = arith.constant 17 : index
    %17 = memref.load %arg1[%c17] : memref<321xf32, #tpu.memory_space<smem>>
    %c18 = arith.constant 18 : index
    %18 = memref.load %arg1[%c18] : memref<321xf32, #tpu.memory_space<smem>>
    %c19 = arith.constant 19 : index
    %19 = memref.load %arg1[%c19] : memref<321xf32, #tpu.memory_space<smem>>
    %c20 = arith.constant 20 : index
    %20 = memref.load %arg1[%c20] : memref<321xf32, #tpu.memory_space<smem>>
    %c21 = arith.constant 21 : index
    %21 = memref.load %arg1[%c21] : memref<321xf32, #tpu.memory_space<smem>>
    %c22 = arith.constant 22 : index
    %22 = memref.load %arg1[%c22] : memref<321xf32, #tpu.memory_space<smem>>
    %c23 = arith.constant 23 : index
    %23 = memref.load %arg1[%c23] : memref<321xf32, #tpu.memory_space<smem>>
    %c24 = arith.constant 24 : index
    %24 = memref.load %arg1[%c24] : memref<321xf32, #tpu.memory_space<smem>>
    %c25 = arith.constant 25 : index
    %25 = memref.load %arg1[%c25] : memref<321xf32, #tpu.memory_space<smem>>
    %c26 = arith.constant 26 : index
    %26 = memref.load %arg1[%c26] : memref<321xf32, #tpu.memory_space<smem>>
    %c27 = arith.constant 27 : index
    %27 = memref.load %arg1[%c27] : memref<321xf32, #tpu.memory_space<smem>>
    %c28 = arith.constant 28 : index
    %28 = memref.load %arg1[%c28] : memref<321xf32, #tpu.memory_space<smem>>
    %c29 = arith.constant 29 : index
    %29 = memref.load %arg1[%c29] : memref<321xf32, #tpu.memory_space<smem>>
    %c30 = arith.constant 30 : index
    %30 = memref.load %arg1[%c30] : memref<321xf32, #tpu.memory_space<smem>>
    %c31 = arith.constant 31 : index
    %31 = memref.load %arg1[%c31] : memref<321xf32, #tpu.memory_space<smem>>
    %c32 = arith.constant 32 : index
    %32 = memref.load %arg1[%c32] : memref<321xf32, #tpu.memory_space<smem>>
    %c33 = arith.constant 33 : index
    %33 = memref.load %arg1[%c33] : memref<321xf32, #tpu.memory_space<smem>>
    %c34 = arith.constant 34 : index
    %34 = memref.load %arg1[%c34] : memref<321xf32, #tpu.memory_space<smem>>
    %c35 = arith.constant 35 : index
    %35 = memref.load %arg1[%c35] : memref<321xf32, #tpu.memory_space<smem>>
    %c36 = arith.constant 36 : index
    %36 = memref.load %arg1[%c36] : memref<321xf32, #tpu.memory_space<smem>>
    %c37 = arith.constant 37 : index
    %37 = memref.load %arg1[%c37] : memref<321xf32, #tpu.memory_space<smem>>
    %c38 = arith.constant 38 : index
    %38 = memref.load %arg1[%c38] : memref<321xf32, #tpu.memory_space<smem>>
    %c39 = arith.constant 39 : index
    %39 = memref.load %arg1[%c39] : memref<321xf32, #tpu.memory_space<smem>>
    %c40 = arith.constant 40 : index
    %40 = memref.load %arg1[%c40] : memref<321xf32, #tpu.memory_space<smem>>
    %c41 = arith.constant 41 : index
    %41 = memref.load %arg1[%c41] : memref<321xf32, #tpu.memory_space<smem>>
    %c42 = arith.constant 42 : index
    %42 = memref.load %arg1[%c42] : memref<321xf32, #tpu.memory_space<smem>>
    %c43 = arith.constant 43 : index
    %43 = memref.load %arg1[%c43] : memref<321xf32, #tpu.memory_space<smem>>
    %c44 = arith.constant 44 : index
    %44 = memref.load %arg1[%c44] : memref<321xf32, #tpu.memory_space<smem>>
    %c45 = arith.constant 45 : index
    %45 = memref.load %arg1[%c45] : memref<321xf32, #tpu.memory_space<smem>>
    %c46 = arith.constant 46 : index
    %46 = memref.load %arg1[%c46] : memref<321xf32, #tpu.memory_space<smem>>
    %c47 = arith.constant 47 : index
    %47 = memref.load %arg1[%c47] : memref<321xf32, #tpu.memory_space<smem>>
    %c48 = arith.constant 48 : index
    %48 = memref.load %arg1[%c48] : memref<321xf32, #tpu.memory_space<smem>>
    %c49 = arith.constant 49 : index
    %49 = memref.load %arg1[%c49] : memref<321xf32, #tpu.memory_space<smem>>
    %c50 = arith.constant 50 : index
    %50 = memref.load %arg1[%c50] : memref<321xf32, #tpu.memory_space<smem>>
    %c51 = arith.constant 51 : index
    %51 = memref.load %arg1[%c51] : memref<321xf32, #tpu.memory_space<smem>>
    %c52 = arith.constant 52 : index
    %52 = memref.load %arg1[%c52] : memref<321xf32, #tpu.memory_space<smem>>
    %c53 = arith.constant 53 : index
    %53 = memref.load %arg1[%c53] : memref<321xf32, #tpu.memory_space<smem>>
    %c54 = arith.constant 54 : index
    %54 = memref.load %arg1[%c54] : memref<321xf32, #tpu.memory_space<smem>>
    %c55 = arith.constant 55 : index
    %55 = memref.load %arg1[%c55] : memref<321xf32, #tpu.memory_space<smem>>
    %c56 = arith.constant 56 : index
    %56 = memref.load %arg1[%c56] : memref<321xf32, #tpu.memory_space<smem>>
    %c57 = arith.constant 57 : index
    %57 = memref.load %arg1[%c57] : memref<321xf32, #tpu.memory_space<smem>>
    %c58 = arith.constant 58 : index
    %58 = memref.load %arg1[%c58] : memref<321xf32, #tpu.memory_space<smem>>
    %c59 = arith.constant 59 : index
    %59 = memref.load %arg1[%c59] : memref<321xf32, #tpu.memory_space<smem>>
    %c60 = arith.constant 60 : index
    %60 = memref.load %arg1[%c60] : memref<321xf32, #tpu.memory_space<smem>>
    %c61 = arith.constant 61 : index
    %61 = memref.load %arg1[%c61] : memref<321xf32, #tpu.memory_space<smem>>
    %c62 = arith.constant 62 : index
    %62 = memref.load %arg1[%c62] : memref<321xf32, #tpu.memory_space<smem>>
    %c63 = arith.constant 63 : index
    %63 = memref.load %arg1[%c63] : memref<321xf32, #tpu.memory_space<smem>>
    %c64 = arith.constant 64 : index
    %64 = memref.load %arg1[%c64] : memref<321xf32, #tpu.memory_space<smem>>
    %c65 = arith.constant 65 : index
    %65 = memref.load %arg1[%c65] : memref<321xf32, #tpu.memory_space<smem>>
    %c66 = arith.constant 66 : index
    %66 = memref.load %arg1[%c66] : memref<321xf32, #tpu.memory_space<smem>>
    %c67 = arith.constant 67 : index
    %67 = memref.load %arg1[%c67] : memref<321xf32, #tpu.memory_space<smem>>
    %c68 = arith.constant 68 : index
    %68 = memref.load %arg1[%c68] : memref<321xf32, #tpu.memory_space<smem>>
    %c69 = arith.constant 69 : index
    %69 = memref.load %arg1[%c69] : memref<321xf32, #tpu.memory_space<smem>>
    %c70 = arith.constant 70 : index
    %70 = memref.load %arg1[%c70] : memref<321xf32, #tpu.memory_space<smem>>
    %c71 = arith.constant 71 : index
    %71 = memref.load %arg1[%c71] : memref<321xf32, #tpu.memory_space<smem>>
    %c72 = arith.constant 72 : index
    %72 = memref.load %arg1[%c72] : memref<321xf32, #tpu.memory_space<smem>>
    %c73 = arith.constant 73 : index
    %73 = memref.load %arg1[%c73] : memref<321xf32, #tpu.memory_space<smem>>
    %c74 = arith.constant 74 : index
    %74 = memref.load %arg1[%c74] : memref<321xf32, #tpu.memory_space<smem>>
    %c75 = arith.constant 75 : index
    %75 = memref.load %arg1[%c75] : memref<321xf32, #tpu.memory_space<smem>>
    %c76 = arith.constant 76 : index
    %76 = memref.load %arg1[%c76] : memref<321xf32, #tpu.memory_space<smem>>
    %c77 = arith.constant 77 : index
    %77 = memref.load %arg1[%c77] : memref<321xf32, #tpu.memory_space<smem>>
    %c78 = arith.constant 78 : index
    %78 = memref.load %arg1[%c78] : memref<321xf32, #tpu.memory_space<smem>>
    %c79 = arith.constant 79 : index
    %79 = memref.load %arg1[%c79] : memref<321xf32, #tpu.memory_space<smem>>
    %c80 = arith.constant 80 : index
    %80 = memref.load %arg1[%c80] : memref<321xf32, #tpu.memory_space<smem>>
    %c81 = arith.constant 81 : index
    %81 = memref.load %arg1[%c81] : memref<321xf32, #tpu.memory_space<smem>>
    %c82 = arith.constant 82 : index
    %82 = memref.load %arg1[%c82] : memref<321xf32, #tpu.memory_space<smem>>
    %c83 = arith.constant 83 : index
    %83 = memref.load %arg1[%c83] : memref<321xf32, #tpu.memory_space<smem>>
    %c84 = arith.constant 84 : index
    %84 = memref.load %arg1[%c84] : memref<321xf32, #tpu.memory_space<smem>>
    %c85 = arith.constant 85 : index
    %85 = memref.load %arg1[%c85] : memref<321xf32, #tpu.memory_space<smem>>
    %c86 = arith.constant 86 : index
    %86 = memref.load %arg1[%c86] : memref<321xf32, #tpu.memory_space<smem>>
    %c87 = arith.constant 87 : index
    %87 = memref.load %arg1[%c87] : memref<321xf32, #tpu.memory_space<smem>>
    %c88 = arith.constant 88 : index
    %88 = memref.load %arg1[%c88] : memref<321xf32, #tpu.memory_space<smem>>
    %c89 = arith.constant 89 : index
    %89 = memref.load %arg1[%c89] : memref<321xf32, #tpu.memory_space<smem>>
    %c90 = arith.constant 90 : index
    %90 = memref.load %arg1[%c90] : memref<321xf32, #tpu.memory_space<smem>>
    %c91 = arith.constant 91 : index
    %91 = memref.load %arg1[%c91] : memref<321xf32, #tpu.memory_space<smem>>
    %c92 = arith.constant 92 : index
    %92 = memref.load %arg1[%c92] : memref<321xf32, #tpu.memory_space<smem>>
    %c93 = arith.constant 93 : index
    %93 = memref.load %arg1[%c93] : memref<321xf32, #tpu.memory_space<smem>>
    %c94 = arith.constant 94 : index
    %94 = memref.load %arg1[%c94] : memref<321xf32, #tpu.memory_space<smem>>
    %c95 = arith.constant 95 : index
    %95 = memref.load %arg1[%c95] : memref<321xf32, #tpu.memory_space<smem>>
    %c96 = arith.constant 96 : index
    %96 = memref.load %arg1[%c96] : memref<321xf32, #tpu.memory_space<smem>>
    %c97 = arith.constant 97 : index
    %97 = memref.load %arg1[%c97] : memref<321xf32, #tpu.memory_space<smem>>
    %c98 = arith.constant 98 : index
    %98 = memref.load %arg1[%c98] : memref<321xf32, #tpu.memory_space<smem>>
    %c99 = arith.constant 99 : index
    %99 = memref.load %arg1[%c99] : memref<321xf32, #tpu.memory_space<smem>>
    %c100 = arith.constant 100 : index
    %100 = memref.load %arg1[%c100] : memref<321xf32, #tpu.memory_space<smem>>
    %c101 = arith.constant 101 : index
    %101 = memref.load %arg1[%c101] : memref<321xf32, #tpu.memory_space<smem>>
    %c102 = arith.constant 102 : index
    %102 = memref.load %arg1[%c102] : memref<321xf32, #tpu.memory_space<smem>>
    %c103 = arith.constant 103 : index
    %103 = memref.load %arg1[%c103] : memref<321xf32, #tpu.memory_space<smem>>
    %c104 = arith.constant 104 : index
    %104 = memref.load %arg1[%c104] : memref<321xf32, #tpu.memory_space<smem>>
    %c105 = arith.constant 105 : index
    %105 = memref.load %arg1[%c105] : memref<321xf32, #tpu.memory_space<smem>>
    %c106 = arith.constant 106 : index
    %106 = memref.load %arg1[%c106] : memref<321xf32, #tpu.memory_space<smem>>
    %c107 = arith.constant 107 : index
    %107 = memref.load %arg1[%c107] : memref<321xf32, #tpu.memory_space<smem>>
    %c108 = arith.constant 108 : index
    %108 = memref.load %arg1[%c108] : memref<321xf32, #tpu.memory_space<smem>>
    %c109 = arith.constant 109 : index
    %109 = memref.load %arg1[%c109] : memref<321xf32, #tpu.memory_space<smem>>
    %c110 = arith.constant 110 : index
    %110 = memref.load %arg1[%c110] : memref<321xf32, #tpu.memory_space<smem>>
    %c111 = arith.constant 111 : index
    %111 = memref.load %arg1[%c111] : memref<321xf32, #tpu.memory_space<smem>>
    %c112 = arith.constant 112 : index
    %112 = memref.load %arg1[%c112] : memref<321xf32, #tpu.memory_space<smem>>
    %c113 = arith.constant 113 : index
    %113 = memref.load %arg1[%c113] : memref<321xf32, #tpu.memory_space<smem>>
    %c114 = arith.constant 114 : index
    %114 = memref.load %arg1[%c114] : memref<321xf32, #tpu.memory_space<smem>>
    %c115 = arith.constant 115 : index
    %115 = memref.load %arg1[%c115] : memref<321xf32, #tpu.memory_space<smem>>
    %c116 = arith.constant 116 : index
    %116 = memref.load %arg1[%c116] : memref<321xf32, #tpu.memory_space<smem>>
    %c117 = arith.constant 117 : index
    %117 = memref.load %arg1[%c117] : memref<321xf32, #tpu.memory_space<smem>>
    %c118 = arith.constant 118 : index
    %118 = memref.load %arg1[%c118] : memref<321xf32, #tpu.memory_space<smem>>
    %c119 = arith.constant 119 : index
    %119 = memref.load %arg1[%c119] : memref<321xf32, #tpu.memory_space<smem>>
    %c120 = arith.constant 120 : index
    %120 = memref.load %arg1[%c120] : memref<321xf32, #tpu.memory_space<smem>>
    %c121 = arith.constant 121 : index
    %121 = memref.load %arg1[%c121] : memref<321xf32, #tpu.memory_space<smem>>
    %c122 = arith.constant 122 : index
    %122 = memref.load %arg1[%c122] : memref<321xf32, #tpu.memory_space<smem>>
    %c123 = arith.constant 123 : index
    %123 = memref.load %arg1[%c123] : memref<321xf32, #tpu.memory_space<smem>>
    %c124 = arith.constant 124 : index
    %124 = memref.load %arg1[%c124] : memref<321xf32, #tpu.memory_space<smem>>
    %c125 = arith.constant 125 : index
    %125 = memref.load %arg1[%c125] : memref<321xf32, #tpu.memory_space<smem>>
    %c126 = arith.constant 126 : index
    %126 = memref.load %arg1[%c126] : memref<321xf32, #tpu.memory_space<smem>>
    %c127 = arith.constant 127 : index
    %127 = memref.load %arg1[%c127] : memref<321xf32, #tpu.memory_space<smem>>
    %c128 = arith.constant 128 : index
    %128 = memref.load %arg1[%c128] : memref<321xf32, #tpu.memory_space<smem>>
    %c129 = arith.constant 129 : index
    %129 = memref.load %arg1[%c129] : memref<321xf32, #tpu.memory_space<smem>>
    %c130 = arith.constant 130 : index
    %130 = memref.load %arg1[%c130] : memref<321xf32, #tpu.memory_space<smem>>
    %c131 = arith.constant 131 : index
    %131 = memref.load %arg1[%c131] : memref<321xf32, #tpu.memory_space<smem>>
    %c132 = arith.constant 132 : index
    %132 = memref.load %arg1[%c132] : memref<321xf32, #tpu.memory_space<smem>>
    %c133 = arith.constant 133 : index
    %133 = memref.load %arg1[%c133] : memref<321xf32, #tpu.memory_space<smem>>
    %c134 = arith.constant 134 : index
    %134 = memref.load %arg1[%c134] : memref<321xf32, #tpu.memory_space<smem>>
    %c135 = arith.constant 135 : index
    %135 = memref.load %arg1[%c135] : memref<321xf32, #tpu.memory_space<smem>>
    %c136 = arith.constant 136 : index
    %136 = memref.load %arg1[%c136] : memref<321xf32, #tpu.memory_space<smem>>
    %c137 = arith.constant 137 : index
    %137 = memref.load %arg1[%c137] : memref<321xf32, #tpu.memory_space<smem>>
    %c138 = arith.constant 138 : index
    %138 = memref.load %arg1[%c138] : memref<321xf32, #tpu.memory_space<smem>>
    %c139 = arith.constant 139 : index
    %139 = memref.load %arg1[%c139] : memref<321xf32, #tpu.memory_space<smem>>
    %c140 = arith.constant 140 : index
    %140 = memref.load %arg1[%c140] : memref<321xf32, #tpu.memory_space<smem>>
    %c141 = arith.constant 141 : index
    %141 = memref.load %arg1[%c141] : memref<321xf32, #tpu.memory_space<smem>>
    %c142 = arith.constant 142 : index
    %142 = memref.load %arg1[%c142] : memref<321xf32, #tpu.memory_space<smem>>
    %c143 = arith.constant 143 : index
    %143 = memref.load %arg1[%c143] : memref<321xf32, #tpu.memory_space<smem>>
    %c144 = arith.constant 144 : index
    %144 = memref.load %arg1[%c144] : memref<321xf32, #tpu.memory_space<smem>>
    %c145 = arith.constant 145 : index
    %145 = memref.load %arg1[%c145] : memref<321xf32, #tpu.memory_space<smem>>
    %c146 = arith.constant 146 : index
    %146 = memref.load %arg1[%c146] : memref<321xf32, #tpu.memory_space<smem>>
    %c147 = arith.constant 147 : index
    %147 = memref.load %arg1[%c147] : memref<321xf32, #tpu.memory_space<smem>>
    %c148 = arith.constant 148 : index
    %148 = memref.load %arg1[%c148] : memref<321xf32, #tpu.memory_space<smem>>
    %c149 = arith.constant 149 : index
    %149 = memref.load %arg1[%c149] : memref<321xf32, #tpu.memory_space<smem>>
    %c150 = arith.constant 150 : index
    %150 = memref.load %arg1[%c150] : memref<321xf32, #tpu.memory_space<smem>>
    %c151 = arith.constant 151 : index
    %151 = memref.load %arg1[%c151] : memref<321xf32, #tpu.memory_space<smem>>
    %c152 = arith.constant 152 : index
    %152 = memref.load %arg1[%c152] : memref<321xf32, #tpu.memory_space<smem>>
    %c153 = arith.constant 153 : index
    %153 = memref.load %arg1[%c153] : memref<321xf32, #tpu.memory_space<smem>>
    %c154 = arith.constant 154 : index
    %154 = memref.load %arg1[%c154] : memref<321xf32, #tpu.memory_space<smem>>
    %c155 = arith.constant 155 : index
    %155 = memref.load %arg1[%c155] : memref<321xf32, #tpu.memory_space<smem>>
    %c156 = arith.constant 156 : index
    %156 = memref.load %arg1[%c156] : memref<321xf32, #tpu.memory_space<smem>>
    %c157 = arith.constant 157 : index
    %157 = memref.load %arg1[%c157] : memref<321xf32, #tpu.memory_space<smem>>
    %c158 = arith.constant 158 : index
    %158 = memref.load %arg1[%c158] : memref<321xf32, #tpu.memory_space<smem>>
    %c159 = arith.constant 159 : index
    %159 = memref.load %arg1[%c159] : memref<321xf32, #tpu.memory_space<smem>>
    %c160 = arith.constant 160 : index
    %160 = memref.load %arg1[%c160] : memref<321xf32, #tpu.memory_space<smem>>
    %c161 = arith.constant 161 : index
    %161 = memref.load %arg1[%c161] : memref<321xf32, #tpu.memory_space<smem>>
    %c162 = arith.constant 162 : index
    %162 = memref.load %arg1[%c162] : memref<321xf32, #tpu.memory_space<smem>>
    %c163 = arith.constant 163 : index
    %163 = memref.load %arg1[%c163] : memref<321xf32, #tpu.memory_space<smem>>
    %c164 = arith.constant 164 : index
    %164 = memref.load %arg1[%c164] : memref<321xf32, #tpu.memory_space<smem>>
    %c165 = arith.constant 165 : index
    %165 = memref.load %arg1[%c165] : memref<321xf32, #tpu.memory_space<smem>>
    %c166 = arith.constant 166 : index
    %166 = memref.load %arg1[%c166] : memref<321xf32, #tpu.memory_space<smem>>
    %c167 = arith.constant 167 : index
    %167 = memref.load %arg1[%c167] : memref<321xf32, #tpu.memory_space<smem>>
    %c168 = arith.constant 168 : index
    %168 = memref.load %arg1[%c168] : memref<321xf32, #tpu.memory_space<smem>>
    %c169 = arith.constant 169 : index
    %169 = memref.load %arg1[%c169] : memref<321xf32, #tpu.memory_space<smem>>
    %c170 = arith.constant 170 : index
    %170 = memref.load %arg1[%c170] : memref<321xf32, #tpu.memory_space<smem>>
    %c171 = arith.constant 171 : index
    %171 = memref.load %arg1[%c171] : memref<321xf32, #tpu.memory_space<smem>>
    %c172 = arith.constant 172 : index
    %172 = memref.load %arg1[%c172] : memref<321xf32, #tpu.memory_space<smem>>
    %c173 = arith.constant 173 : index
    %173 = memref.load %arg1[%c173] : memref<321xf32, #tpu.memory_space<smem>>
    %c174 = arith.constant 174 : index
    %174 = memref.load %arg1[%c174] : memref<321xf32, #tpu.memory_space<smem>>
    %c175 = arith.constant 175 : index
    %175 = memref.load %arg1[%c175] : memref<321xf32, #tpu.memory_space<smem>>
    %c176 = arith.constant 176 : index
    %176 = memref.load %arg1[%c176] : memref<321xf32, #tpu.memory_space<smem>>
    %c177 = arith.constant 177 : index
    %177 = memref.load %arg1[%c177] : memref<321xf32, #tpu.memory_space<smem>>
    %c178 = arith.constant 178 : index
    %178 = memref.load %arg1[%c178] : memref<321xf32, #tpu.memory_space<smem>>
    %c179 = arith.constant 179 : index
    %179 = memref.load %arg1[%c179] : memref<321xf32, #tpu.memory_space<smem>>
    %c180 = arith.constant 180 : index
    %180 = memref.load %arg1[%c180] : memref<321xf32, #tpu.memory_space<smem>>
    %c181 = arith.constant 181 : index
    %181 = memref.load %arg1[%c181] : memref<321xf32, #tpu.memory_space<smem>>
    %c182 = arith.constant 182 : index
    %182 = memref.load %arg1[%c182] : memref<321xf32, #tpu.memory_space<smem>>
    %c183 = arith.constant 183 : index
    %183 = memref.load %arg1[%c183] : memref<321xf32, #tpu.memory_space<smem>>
    %c184 = arith.constant 184 : index
    %184 = memref.load %arg1[%c184] : memref<321xf32, #tpu.memory_space<smem>>
    %c185 = arith.constant 185 : index
    %185 = memref.load %arg1[%c185] : memref<321xf32, #tpu.memory_space<smem>>
    %c186 = arith.constant 186 : index
    %186 = memref.load %arg1[%c186] : memref<321xf32, #tpu.memory_space<smem>>
    %c187 = arith.constant 187 : index
    %187 = memref.load %arg1[%c187] : memref<321xf32, #tpu.memory_space<smem>>
    %c188 = arith.constant 188 : index
    %188 = memref.load %arg1[%c188] : memref<321xf32, #tpu.memory_space<smem>>
    %c189 = arith.constant 189 : index
    %189 = memref.load %arg1[%c189] : memref<321xf32, #tpu.memory_space<smem>>
    %c190 = arith.constant 190 : index
    %190 = memref.load %arg1[%c190] : memref<321xf32, #tpu.memory_space<smem>>
    %c191 = arith.constant 191 : index
    %191 = memref.load %arg1[%c191] : memref<321xf32, #tpu.memory_space<smem>>
    %c192 = arith.constant 192 : index
    %192 = memref.load %arg1[%c192] : memref<321xf32, #tpu.memory_space<smem>>
    %c193 = arith.constant 193 : index
    %193 = memref.load %arg1[%c193] : memref<321xf32, #tpu.memory_space<smem>>
    %c194 = arith.constant 194 : index
    %194 = memref.load %arg1[%c194] : memref<321xf32, #tpu.memory_space<smem>>
    %c195 = arith.constant 195 : index
    %195 = memref.load %arg1[%c195] : memref<321xf32, #tpu.memory_space<smem>>
    %c196 = arith.constant 196 : index
    %196 = memref.load %arg1[%c196] : memref<321xf32, #tpu.memory_space<smem>>
    %c197 = arith.constant 197 : index
    %197 = memref.load %arg1[%c197] : memref<321xf32, #tpu.memory_space<smem>>
    %c198 = arith.constant 198 : index
    %198 = memref.load %arg1[%c198] : memref<321xf32, #tpu.memory_space<smem>>
    %c199 = arith.constant 199 : index
    %199 = memref.load %arg1[%c199] : memref<321xf32, #tpu.memory_space<smem>>
    %c200 = arith.constant 200 : index
    %200 = memref.load %arg1[%c200] : memref<321xf32, #tpu.memory_space<smem>>
    %c201 = arith.constant 201 : index
    %201 = memref.load %arg1[%c201] : memref<321xf32, #tpu.memory_space<smem>>
    %c202 = arith.constant 202 : index
    %202 = memref.load %arg1[%c202] : memref<321xf32, #tpu.memory_space<smem>>
    %c203 = arith.constant 203 : index
    %203 = memref.load %arg1[%c203] : memref<321xf32, #tpu.memory_space<smem>>
    %c204 = arith.constant 204 : index
    %204 = memref.load %arg1[%c204] : memref<321xf32, #tpu.memory_space<smem>>
    %c205 = arith.constant 205 : index
    %205 = memref.load %arg1[%c205] : memref<321xf32, #tpu.memory_space<smem>>
    %c206 = arith.constant 206 : index
    %206 = memref.load %arg1[%c206] : memref<321xf32, #tpu.memory_space<smem>>
    %c207 = arith.constant 207 : index
    %207 = memref.load %arg1[%c207] : memref<321xf32, #tpu.memory_space<smem>>
    %c208 = arith.constant 208 : index
    %208 = memref.load %arg1[%c208] : memref<321xf32, #tpu.memory_space<smem>>
    %c209 = arith.constant 209 : index
    %209 = memref.load %arg1[%c209] : memref<321xf32, #tpu.memory_space<smem>>
    %c210 = arith.constant 210 : index
    %210 = memref.load %arg1[%c210] : memref<321xf32, #tpu.memory_space<smem>>
    %c211 = arith.constant 211 : index
    %211 = memref.load %arg1[%c211] : memref<321xf32, #tpu.memory_space<smem>>
    %c212 = arith.constant 212 : index
    %212 = memref.load %arg1[%c212] : memref<321xf32, #tpu.memory_space<smem>>
    %c213 = arith.constant 213 : index
    %213 = memref.load %arg1[%c213] : memref<321xf32, #tpu.memory_space<smem>>
    %c214 = arith.constant 214 : index
    %214 = memref.load %arg1[%c214] : memref<321xf32, #tpu.memory_space<smem>>
    %c215 = arith.constant 215 : index
    %215 = memref.load %arg1[%c215] : memref<321xf32, #tpu.memory_space<smem>>
    %c216 = arith.constant 216 : index
    %216 = memref.load %arg1[%c216] : memref<321xf32, #tpu.memory_space<smem>>
    %c217 = arith.constant 217 : index
    %217 = memref.load %arg1[%c217] : memref<321xf32, #tpu.memory_space<smem>>
    %c218 = arith.constant 218 : index
    %218 = memref.load %arg1[%c218] : memref<321xf32, #tpu.memory_space<smem>>
    %c219 = arith.constant 219 : index
    %219 = memref.load %arg1[%c219] : memref<321xf32, #tpu.memory_space<smem>>
    %c220 = arith.constant 220 : index
    %220 = memref.load %arg1[%c220] : memref<321xf32, #tpu.memory_space<smem>>
    %c221 = arith.constant 221 : index
    %221 = memref.load %arg1[%c221] : memref<321xf32, #tpu.memory_space<smem>>
    %c222 = arith.constant 222 : index
    %222 = memref.load %arg1[%c222] : memref<321xf32, #tpu.memory_space<smem>>
    %c223 = arith.constant 223 : index
    %223 = memref.load %arg1[%c223] : memref<321xf32, #tpu.memory_space<smem>>
    %c224 = arith.constant 224 : index
    %224 = memref.load %arg1[%c224] : memref<321xf32, #tpu.memory_space<smem>>
    %c225 = arith.constant 225 : index
    %225 = memref.load %arg1[%c225] : memref<321xf32, #tpu.memory_space<smem>>
    %c226 = arith.constant 226 : index
    %226 = memref.load %arg1[%c226] : memref<321xf32, #tpu.memory_space<smem>>
    %c227 = arith.constant 227 : index
    %227 = memref.load %arg1[%c227] : memref<321xf32, #tpu.memory_space<smem>>
    %c228 = arith.constant 228 : index
    %228 = memref.load %arg1[%c228] : memref<321xf32, #tpu.memory_space<smem>>
    %c229 = arith.constant 229 : index
    %229 = memref.load %arg1[%c229] : memref<321xf32, #tpu.memory_space<smem>>
    %c230 = arith.constant 230 : index
    %230 = memref.load %arg1[%c230] : memref<321xf32, #tpu.memory_space<smem>>
    %c231 = arith.constant 231 : index
    %231 = memref.load %arg1[%c231] : memref<321xf32, #tpu.memory_space<smem>>
    %c232 = arith.constant 232 : index
    %232 = memref.load %arg1[%c232] : memref<321xf32, #tpu.memory_space<smem>>
    %c233 = arith.constant 233 : index
    %233 = memref.load %arg1[%c233] : memref<321xf32, #tpu.memory_space<smem>>
    %c234 = arith.constant 234 : index
    %234 = memref.load %arg1[%c234] : memref<321xf32, #tpu.memory_space<smem>>
    %c235 = arith.constant 235 : index
    %235 = memref.load %arg1[%c235] : memref<321xf32, #tpu.memory_space<smem>>
    %c236 = arith.constant 236 : index
    %236 = memref.load %arg1[%c236] : memref<321xf32, #tpu.memory_space<smem>>
    %c237 = arith.constant 237 : index
    %237 = memref.load %arg1[%c237] : memref<321xf32, #tpu.memory_space<smem>>
    %c238 = arith.constant 238 : index
    %238 = memref.load %arg1[%c238] : memref<321xf32, #tpu.memory_space<smem>>
    %c239 = arith.constant 239 : index
    %239 = memref.load %arg1[%c239] : memref<321xf32, #tpu.memory_space<smem>>
    %c240 = arith.constant 240 : index
    %240 = memref.load %arg1[%c240] : memref<321xf32, #tpu.memory_space<smem>>
    %c241 = arith.constant 241 : index
    %241 = memref.load %arg1[%c241] : memref<321xf32, #tpu.memory_space<smem>>
    %c242 = arith.constant 242 : index
    %242 = memref.load %arg1[%c242] : memref<321xf32, #tpu.memory_space<smem>>
    %c243 = arith.constant 243 : index
    %243 = memref.load %arg1[%c243] : memref<321xf32, #tpu.memory_space<smem>>
    %c244 = arith.constant 244 : index
    %244 = memref.load %arg1[%c244] : memref<321xf32, #tpu.memory_space<smem>>
    %c245 = arith.constant 245 : index
    %245 = memref.load %arg1[%c245] : memref<321xf32, #tpu.memory_space<smem>>
    %c246 = arith.constant 246 : index
    %246 = memref.load %arg1[%c246] : memref<321xf32, #tpu.memory_space<smem>>
    %c247 = arith.constant 247 : index
    %247 = memref.load %arg1[%c247] : memref<321xf32, #tpu.memory_space<smem>>
    %c248 = arith.constant 248 : index
    %248 = memref.load %arg1[%c248] : memref<321xf32, #tpu.memory_space<smem>>
    %c249 = arith.constant 249 : index
    %249 = memref.load %arg1[%c249] : memref<321xf32, #tpu.memory_space<smem>>
    %c250 = arith.constant 250 : index
    %250 = memref.load %arg1[%c250] : memref<321xf32, #tpu.memory_space<smem>>
    %c251 = arith.constant 251 : index
    %251 = memref.load %arg1[%c251] : memref<321xf32, #tpu.memory_space<smem>>
    %c252 = arith.constant 252 : index
    %252 = memref.load %arg1[%c252] : memref<321xf32, #tpu.memory_space<smem>>
    %c253 = arith.constant 253 : index
    %253 = memref.load %arg1[%c253] : memref<321xf32, #tpu.memory_space<smem>>
    %c254 = arith.constant 254 : index
    %254 = memref.load %arg1[%c254] : memref<321xf32, #tpu.memory_space<smem>>
    %c255 = arith.constant 255 : index
    %255 = memref.load %arg1[%c255] : memref<321xf32, #tpu.memory_space<smem>>
    %c256 = arith.constant 256 : index
    %256 = memref.load %arg1[%c256] : memref<321xf32, #tpu.memory_space<smem>>
    %c257 = arith.constant 257 : index
    %257 = memref.load %arg1[%c257] : memref<321xf32, #tpu.memory_space<smem>>
    %c258 = arith.constant 258 : index
    %258 = memref.load %arg1[%c258] : memref<321xf32, #tpu.memory_space<smem>>
    %c259 = arith.constant 259 : index
    %259 = memref.load %arg1[%c259] : memref<321xf32, #tpu.memory_space<smem>>
    %c260 = arith.constant 260 : index
    %260 = memref.load %arg1[%c260] : memref<321xf32, #tpu.memory_space<smem>>
    %c261 = arith.constant 261 : index
    %261 = memref.load %arg1[%c261] : memref<321xf32, #tpu.memory_space<smem>>
    %c262 = arith.constant 262 : index
    %262 = memref.load %arg1[%c262] : memref<321xf32, #tpu.memory_space<smem>>
    %c263 = arith.constant 263 : index
    %263 = memref.load %arg1[%c263] : memref<321xf32, #tpu.memory_space<smem>>
    %c264 = arith.constant 264 : index
    %264 = memref.load %arg1[%c264] : memref<321xf32, #tpu.memory_space<smem>>
    %c265 = arith.constant 265 : index
    %265 = memref.load %arg1[%c265] : memref<321xf32, #tpu.memory_space<smem>>
    %c266 = arith.constant 266 : index
    %266 = memref.load %arg1[%c266] : memref<321xf32, #tpu.memory_space<smem>>
    %c267 = arith.constant 267 : index
    %267 = memref.load %arg1[%c267] : memref<321xf32, #tpu.memory_space<smem>>
    %c268 = arith.constant 268 : index
    %268 = memref.load %arg1[%c268] : memref<321xf32, #tpu.memory_space<smem>>
    %c269 = arith.constant 269 : index
    %269 = memref.load %arg1[%c269] : memref<321xf32, #tpu.memory_space<smem>>
    %c270 = arith.constant 270 : index
    %270 = memref.load %arg1[%c270] : memref<321xf32, #tpu.memory_space<smem>>
    %c271 = arith.constant 271 : index
    %271 = memref.load %arg1[%c271] : memref<321xf32, #tpu.memory_space<smem>>
    %c272 = arith.constant 272 : index
    %272 = memref.load %arg1[%c272] : memref<321xf32, #tpu.memory_space<smem>>
    %c273 = arith.constant 273 : index
    %273 = memref.load %arg1[%c273] : memref<321xf32, #tpu.memory_space<smem>>
    %c274 = arith.constant 274 : index
    %274 = memref.load %arg1[%c274] : memref<321xf32, #tpu.memory_space<smem>>
    %c275 = arith.constant 275 : index
    %275 = memref.load %arg1[%c275] : memref<321xf32, #tpu.memory_space<smem>>
    %c276 = arith.constant 276 : index
    %276 = memref.load %arg1[%c276] : memref<321xf32, #tpu.memory_space<smem>>
    %c277 = arith.constant 277 : index
    %277 = memref.load %arg1[%c277] : memref<321xf32, #tpu.memory_space<smem>>
    %c278 = arith.constant 278 : index
    %278 = memref.load %arg1[%c278] : memref<321xf32, #tpu.memory_space<smem>>
    %c279 = arith.constant 279 : index
    %279 = memref.load %arg1[%c279] : memref<321xf32, #tpu.memory_space<smem>>
    %c280 = arith.constant 280 : index
    %280 = memref.load %arg1[%c280] : memref<321xf32, #tpu.memory_space<smem>>
    %c281 = arith.constant 281 : index
    %281 = memref.load %arg1[%c281] : memref<321xf32, #tpu.memory_space<smem>>
    %c282 = arith.constant 282 : index
    %282 = memref.load %arg1[%c282] : memref<321xf32, #tpu.memory_space<smem>>
    %c283 = arith.constant 283 : index
    %283 = memref.load %arg1[%c283] : memref<321xf32, #tpu.memory_space<smem>>
    %c284 = arith.constant 284 : index
    %284 = memref.load %arg1[%c284] : memref<321xf32, #tpu.memory_space<smem>>
    %c285 = arith.constant 285 : index
    %285 = memref.load %arg1[%c285] : memref<321xf32, #tpu.memory_space<smem>>
    %c286 = arith.constant 286 : index
    %286 = memref.load %arg1[%c286] : memref<321xf32, #tpu.memory_space<smem>>
    %c287 = arith.constant 287 : index
    %287 = memref.load %arg1[%c287] : memref<321xf32, #tpu.memory_space<smem>>
    %c288 = arith.constant 288 : index
    %288 = memref.load %arg1[%c288] : memref<321xf32, #tpu.memory_space<smem>>
    %c289 = arith.constant 289 : index
    %289 = memref.load %arg1[%c289] : memref<321xf32, #tpu.memory_space<smem>>
    %c290 = arith.constant 290 : index
    %290 = memref.load %arg1[%c290] : memref<321xf32, #tpu.memory_space<smem>>
    %c291 = arith.constant 291 : index
    %291 = memref.load %arg1[%c291] : memref<321xf32, #tpu.memory_space<smem>>
    %c292 = arith.constant 292 : index
    %292 = memref.load %arg1[%c292] : memref<321xf32, #tpu.memory_space<smem>>
    %c293 = arith.constant 293 : index
    %293 = memref.load %arg1[%c293] : memref<321xf32, #tpu.memory_space<smem>>
    %c294 = arith.constant 294 : index
    %294 = memref.load %arg1[%c294] : memref<321xf32, #tpu.memory_space<smem>>
    %c295 = arith.constant 295 : index
    %295 = memref.load %arg1[%c295] : memref<321xf32, #tpu.memory_space<smem>>
    %c296 = arith.constant 296 : index
    %296 = memref.load %arg1[%c296] : memref<321xf32, #tpu.memory_space<smem>>
    %c297 = arith.constant 297 : index
    %297 = memref.load %arg1[%c297] : memref<321xf32, #tpu.memory_space<smem>>
    %c298 = arith.constant 298 : index
    %298 = memref.load %arg1[%c298] : memref<321xf32, #tpu.memory_space<smem>>
    %c299 = arith.constant 299 : index
    %299 = memref.load %arg1[%c299] : memref<321xf32, #tpu.memory_space<smem>>
    %c300 = arith.constant 300 : index
    %300 = memref.load %arg1[%c300] : memref<321xf32, #tpu.memory_space<smem>>
    %c301 = arith.constant 301 : index
    %301 = memref.load %arg1[%c301] : memref<321xf32, #tpu.memory_space<smem>>
    %c302 = arith.constant 302 : index
    %302 = memref.load %arg1[%c302] : memref<321xf32, #tpu.memory_space<smem>>
    %c303 = arith.constant 303 : index
    %303 = memref.load %arg1[%c303] : memref<321xf32, #tpu.memory_space<smem>>
    %c304 = arith.constant 304 : index
    %304 = memref.load %arg1[%c304] : memref<321xf32, #tpu.memory_space<smem>>
    %c305 = arith.constant 305 : index
    %305 = memref.load %arg1[%c305] : memref<321xf32, #tpu.memory_space<smem>>
    %c306 = arith.constant 306 : index
    %306 = memref.load %arg1[%c306] : memref<321xf32, #tpu.memory_space<smem>>
    %c307 = arith.constant 307 : index
    %307 = memref.load %arg1[%c307] : memref<321xf32, #tpu.memory_space<smem>>
    %c308 = arith.constant 308 : index
    %308 = memref.load %arg1[%c308] : memref<321xf32, #tpu.memory_space<smem>>
    %c309 = arith.constant 309 : index
    %309 = memref.load %arg1[%c309] : memref<321xf32, #tpu.memory_space<smem>>
    %c310 = arith.constant 310 : index
    %310 = memref.load %arg1[%c310] : memref<321xf32, #tpu.memory_space<smem>>
    %c311 = arith.constant 311 : index
    %311 = memref.load %arg1[%c311] : memref<321xf32, #tpu.memory_space<smem>>
    %c312 = arith.constant 312 : index
    %312 = memref.load %arg1[%c312] : memref<321xf32, #tpu.memory_space<smem>>
    %c313 = arith.constant 313 : index
    %313 = memref.load %arg1[%c313] : memref<321xf32, #tpu.memory_space<smem>>
    %c314 = arith.constant 314 : index
    %314 = memref.load %arg1[%c314] : memref<321xf32, #tpu.memory_space<smem>>
    %c315 = arith.constant 315 : index
    %315 = memref.load %arg1[%c315] : memref<321xf32, #tpu.memory_space<smem>>
    %c316 = arith.constant 316 : index
    %316 = memref.load %arg1[%c316] : memref<321xf32, #tpu.memory_space<smem>>
    %c317 = arith.constant 317 : index
    %317 = memref.load %arg1[%c317] : memref<321xf32, #tpu.memory_space<smem>>
    %c318 = arith.constant 318 : index
    %318 = memref.load %arg1[%c318] : memref<321xf32, #tpu.memory_space<smem>>
    %c319 = arith.constant 319 : index
    %319 = memref.load %arg1[%c319] : memref<321xf32, #tpu.memory_space<smem>>
    %c320 = arith.constant 320 : index
    %320 = memref.load %arg1[%c320] : memref<321xf32, #tpu.memory_space<smem>>
    %c0_i32 = arith.constant 0 : i32
    %c8_i32 = arith.constant 8 : i32
    %321 = arith.muli %c0_i32, %c8_i32 : i32
    %322 = tpu.assume_multiple %321, 8 : i32
    %323 = arith.index_cast %322 : i32 to index
    %c0_0 = arith.constant 0 : index
    %324 = vector.load %arg2[%323, %c0_0] : memref<8x128xf32, #tpu.memory_space<vmem>>, vector<8x128xf32>
    %325 = vector.broadcast %0 : f32 to vector<8x128xf32>
    %326 = arith.mulf %324, %325 : vector<8x128xf32>
    %327 = vector.broadcast %16 : f32 to vector<8x128xf32>
    %328 = arith.addf %326, %327 : vector<8x128xf32>
    %cst = arith.constant 0.000000e+00 : f32
    %329 = vector.broadcast %cst : f32 to vector<8x128xf32>
    %330 = arith.maximumf %328, %329 : vector<8x128xf32>
    %331 = vector.broadcast %1 : f32 to vector<8x128xf32>
    %332 = arith.mulf %324, %331 : vector<8x128xf32>
    %333 = vector.broadcast %17 : f32 to vector<8x128xf32>
    %334 = arith.addf %332, %333 : vector<8x128xf32>
    %cst_1 = arith.constant 0.000000e+00 : f32
    %335 = vector.broadcast %cst_1 : f32 to vector<8x128xf32>
    %336 = arith.maximumf %334, %335 : vector<8x128xf32>
    %337 = vector.broadcast %2 : f32 to vector<8x128xf32>
    %338 = arith.mulf %324, %337 : vector<8x128xf32>
    %339 = vector.broadcast %18 : f32 to vector<8x128xf32>
    %340 = arith.addf %338, %339 : vector<8x128xf32>
    %cst_2 = arith.constant 0.000000e+00 : f32
    %341 = vector.broadcast %cst_2 : f32 to vector<8x128xf32>
    %342 = arith.maximumf %340, %341 : vector<8x128xf32>
    %343 = vector.broadcast %3 : f32 to vector<8x128xf32>
    %344 = arith.mulf %324, %343 : vector<8x128xf32>
    %345 = vector.broadcast %19 : f32 to vector<8x128xf32>
    %346 = arith.addf %344, %345 : vector<8x128xf32>
    %cst_3 = arith.constant 0.000000e+00 : f32
    %347 = vector.broadcast %cst_3 : f32 to vector<8x128xf32>
    %348 = arith.maximumf %346, %347 : vector<8x128xf32>
    %349 = vector.broadcast %4 : f32 to vector<8x128xf32>
    %350 = arith.mulf %324, %349 : vector<8x128xf32>
    %351 = vector.broadcast %20 : f32 to vector<8x128xf32>
    %352 = arith.addf %350, %351 : vector<8x128xf32>
    %cst_4 = arith.constant 0.000000e+00 : f32
    %353 = vector.broadcast %cst_4 : f32 to vector<8x128xf32>
    %354 = arith.maximumf %352, %353 : vector<8x128xf32>
    %355 = vector.broadcast %5 : f32 to vector<8x128xf32>
    %356 = arith.mulf %324, %355 : vector<8x128xf32>
    %357 = vector.broadcast %21 : f32 to vector<8x128xf32>
    %358 = arith.addf %356, %357 : vector<8x128xf32>
    %cst_5 = arith.constant 0.000000e+00 : f32
    %359 = vector.broadcast %cst_5 : f32 to vector<8x128xf32>
    %360 = arith.maximumf %358, %359 : vector<8x128xf32>
    %361 = vector.broadcast %6 : f32 to vector<8x128xf32>
    %362 = arith.mulf %324, %361 : vector<8x128xf32>
    %363 = vector.broadcast %22 : f32 to vector<8x128xf32>
    %364 = arith.addf %362, %363 : vector<8x128xf32>
    %cst_6 = arith.constant 0.000000e+00 : f32
    %365 = vector.broadcast %cst_6 : f32 to vector<8x128xf32>
    %366 = arith.maximumf %364, %365 : vector<8x128xf32>
    %367 = vector.broadcast %7 : f32 to vector<8x128xf32>
    %368 = arith.mulf %324, %367 : vector<8x128xf32>
    %369 = vector.broadcast %23 : f32 to vector<8x128xf32>
    %370 = arith.addf %368, %369 : vector<8x128xf32>
    %cst_7 = arith.constant 0.000000e+00 : f32
    %371 = vector.broadcast %cst_7 : f32 to vector<8x128xf32>
    %372 = arith.maximumf %370, %371 : vector<8x128xf32>
    %373 = vector.broadcast %8 : f32 to vector<8x128xf32>
    %374 = arith.mulf %324, %373 : vector<8x128xf32>
    %375 = vector.broadcast %24 : f32 to vector<8x128xf32>
    %376 = arith.addf %374, %375 : vector<8x128xf32>
    %cst_8 = arith.constant 0.000000e+00 : f32
    %377 = vector.broadcast %cst_8 : f32 to vector<8x128xf32>
    %378 = arith.maximumf %376, %377 : vector<8x128xf32>
    %379 = vector.broadcast %9 : f32 to vector<8x128xf32>
    %380 = arith.mulf %324, %379 : vector<8x128xf32>
    %381 = vector.broadcast %25 : f32 to vector<8x128xf32>
    %382 = arith.addf %380, %381 : vector<8x128xf32>
    %cst_9 = arith.constant 0.000000e+00 : f32
    %383 = vector.broadcast %cst_9 : f32 to vector<8x128xf32>
    %384 = arith.maximumf %382, %383 : vector<8x128xf32>
    %385 = vector.broadcast %10 : f32 to vector<8x128xf32>
    %386 = arith.mulf %324, %385 : vector<8x128xf32>
    %387 = vector.broadcast %26 : f32 to vector<8x128xf32>
    %388 = arith.addf %386, %387 : vector<8x128xf32>
    %cst_10 = arith.constant 0.000000e+00 : f32
    %389 = vector.broadcast %cst_10 : f32 to vector<8x128xf32>
    %390 = arith.maximumf %388, %389 : vector<8x128xf32>
    %391 = vector.broadcast %11 : f32 to vector<8x128xf32>
    %392 = arith.mulf %324, %391 : vector<8x128xf32>
    %393 = vector.broadcast %27 : f32 to vector<8x128xf32>
    %394 = arith.addf %392, %393 : vector<8x128xf32>
    %cst_11 = arith.constant 0.000000e+00 : f32
    %395 = vector.broadcast %cst_11 : f32 to vector<8x128xf32>
    %396 = arith.maximumf %394, %395 : vector<8x128xf32>
    %397 = vector.broadcast %12 : f32 to vector<8x128xf32>
    %398 = arith.mulf %324, %397 : vector<8x128xf32>
    %399 = vector.broadcast %28 : f32 to vector<8x128xf32>
    %400 = arith.addf %398, %399 : vector<8x128xf32>
    %cst_12 = arith.constant 0.000000e+00 : f32
    %401 = vector.broadcast %cst_12 : f32 to vector<8x128xf32>
    %402 = arith.maximumf %400, %401 : vector<8x128xf32>
    %403 = vector.broadcast %13 : f32 to vector<8x128xf32>
    %404 = arith.mulf %324, %403 : vector<8x128xf32>
    %405 = vector.broadcast %29 : f32 to vector<8x128xf32>
    %406 = arith.addf %404, %405 : vector<8x128xf32>
    %cst_13 = arith.constant 0.000000e+00 : f32
    %407 = vector.broadcast %cst_13 : f32 to vector<8x128xf32>
    %408 = arith.maximumf %406, %407 : vector<8x128xf32>
    %409 = vector.broadcast %14 : f32 to vector<8x128xf32>
    %410 = arith.mulf %324, %409 : vector<8x128xf32>
    %411 = vector.broadcast %30 : f32 to vector<8x128xf32>
    %412 = arith.addf %410, %411 : vector<8x128xf32>
    %cst_14 = arith.constant 0.000000e+00 : f32
    %413 = vector.broadcast %cst_14 : f32 to vector<8x128xf32>
    %414 = arith.maximumf %412, %413 : vector<8x128xf32>
    %415 = vector.broadcast %15 : f32 to vector<8x128xf32>
    %416 = arith.mulf %324, %415 : vector<8x128xf32>
    %417 = vector.broadcast %31 : f32 to vector<8x128xf32>
    %418 = arith.addf %416, %417 : vector<8x128xf32>
    %cst_15 = arith.constant 0.000000e+00 : f32
    %419 = vector.broadcast %cst_15 : f32 to vector<8x128xf32>
    %420 = arith.maximumf %418, %419 : vector<8x128xf32>
    %cst_16 = arith.constant 0.000000e+00 : f32
    %421 = vector.broadcast %cst_16 : f32 to vector<8x128xf32>
    %422 = vector.broadcast %32 : f32 to vector<8x128xf32>
    %423 = arith.mulf %330, %422 : vector<8x128xf32>
    %424 = vector.broadcast %33 : f32 to vector<8x128xf32>
    %425 = arith.mulf %336, %424 : vector<8x128xf32>
    %426 = arith.addf %423, %425 : vector<8x128xf32>
    %427 = vector.broadcast %34 : f32 to vector<8x128xf32>
    %428 = arith.mulf %342, %427 : vector<8x128xf32>
    %429 = arith.addf %426, %428 : vector<8x128xf32>
    %430 = vector.broadcast %35 : f32 to vector<8x128xf32>
    %431 = arith.mulf %348, %430 : vector<8x128xf32>
    %432 = arith.addf %429, %431 : vector<8x128xf32>
    %433 = vector.broadcast %36 : f32 to vector<8x128xf32>
    %434 = arith.mulf %354, %433 : vector<8x128xf32>
    %435 = arith.addf %432, %434 : vector<8x128xf32>
    %436 = vector.broadcast %37 : f32 to vector<8x128xf32>
    %437 = arith.mulf %360, %436 : vector<8x128xf32>
    %438 = arith.addf %435, %437 : vector<8x128xf32>
    %439 = vector.broadcast %38 : f32 to vector<8x128xf32>
    %440 = arith.mulf %366, %439 : vector<8x128xf32>
    %441 = arith.addf %438, %440 : vector<8x128xf32>
    %442 = vector.broadcast %39 : f32 to vector<8x128xf32>
    %443 = arith.mulf %372, %442 : vector<8x128xf32>
    %444 = arith.addf %441, %443 : vector<8x128xf32>
    %445 = vector.broadcast %40 : f32 to vector<8x128xf32>
    %446 = arith.mulf %378, %445 : vector<8x128xf32>
    %447 = arith.addf %444, %446 : vector<8x128xf32>
    %448 = vector.broadcast %41 : f32 to vector<8x128xf32>
    %449 = arith.mulf %384, %448 : vector<8x128xf32>
    %450 = arith.addf %447, %449 : vector<8x128xf32>
    %451 = vector.broadcast %42 : f32 to vector<8x128xf32>
    %452 = arith.mulf %390, %451 : vector<8x128xf32>
    %453 = arith.addf %450, %452 : vector<8x128xf32>
    %454 = vector.broadcast %43 : f32 to vector<8x128xf32>
    %455 = arith.mulf %396, %454 : vector<8x128xf32>
    %456 = arith.addf %453, %455 : vector<8x128xf32>
    %457 = vector.broadcast %44 : f32 to vector<8x128xf32>
    %458 = arith.mulf %402, %457 : vector<8x128xf32>
    %459 = arith.addf %456, %458 : vector<8x128xf32>
    %460 = vector.broadcast %45 : f32 to vector<8x128xf32>
    %461 = arith.mulf %408, %460 : vector<8x128xf32>
    %462 = arith.addf %459, %461 : vector<8x128xf32>
    %463 = vector.broadcast %46 : f32 to vector<8x128xf32>
    %464 = arith.mulf %414, %463 : vector<8x128xf32>
    %465 = arith.addf %462, %464 : vector<8x128xf32>
    %466 = vector.broadcast %47 : f32 to vector<8x128xf32>
    %467 = arith.mulf %420, %466 : vector<8x128xf32>
    %468 = arith.addf %465, %467 : vector<8x128xf32>
    %469 = vector.broadcast %288 : f32 to vector<8x128xf32>
    %470 = arith.addf %468, %469 : vector<8x128xf32>
    %cst_17 = arith.constant 0.000000e+00 : f32
    %471 = vector.broadcast %cst_17 : f32 to vector<8x128xf32>
    %472 = arith.maximumf %470, %471 : vector<8x128xf32>
    %473 = vector.broadcast %304 : f32 to vector<8x128xf32>
    %474 = arith.mulf %472, %473 : vector<8x128xf32>
    %475 = arith.addf %421, %474 : vector<8x128xf32>
    %476 = vector.broadcast %48 : f32 to vector<8x128xf32>
    %477 = arith.mulf %330, %476 : vector<8x128xf32>
    %478 = vector.broadcast %49 : f32 to vector<8x128xf32>
    %479 = arith.mulf %336, %478 : vector<8x128xf32>
    %480 = arith.addf %477, %479 : vector<8x128xf32>
    %481 = vector.broadcast %50 : f32 to vector<8x128xf32>
    %482 = arith.mulf %342, %481 : vector<8x128xf32>
    %483 = arith.addf %480, %482 : vector<8x128xf32>
    %484 = vector.broadcast %51 : f32 to vector<8x128xf32>
    %485 = arith.mulf %348, %484 : vector<8x128xf32>
    %486 = arith.addf %483, %485 : vector<8x128xf32>
    %487 = vector.broadcast %52 : f32 to vector<8x128xf32>
    %488 = arith.mulf %354, %487 : vector<8x128xf32>
    %489 = arith.addf %486, %488 : vector<8x128xf32>
    %490 = vector.broadcast %53 : f32 to vector<8x128xf32>
    %491 = arith.mulf %360, %490 : vector<8x128xf32>
    %492 = arith.addf %489, %491 : vector<8x128xf32>
    %493 = vector.broadcast %54 : f32 to vector<8x128xf32>
    %494 = arith.mulf %366, %493 : vector<8x128xf32>
    %495 = arith.addf %492, %494 : vector<8x128xf32>
    %496 = vector.broadcast %55 : f32 to vector<8x128xf32>
    %497 = arith.mulf %372, %496 : vector<8x128xf32>
    %498 = arith.addf %495, %497 : vector<8x128xf32>
    %499 = vector.broadcast %56 : f32 to vector<8x128xf32>
    %500 = arith.mulf %378, %499 : vector<8x128xf32>
    %501 = arith.addf %498, %500 : vector<8x128xf32>
    %502 = vector.broadcast %57 : f32 to vector<8x128xf32>
    %503 = arith.mulf %384, %502 : vector<8x128xf32>
    %504 = arith.addf %501, %503 : vector<8x128xf32>
    %505 = vector.broadcast %58 : f32 to vector<8x128xf32>
    %506 = arith.mulf %390, %505 : vector<8x128xf32>
    %507 = arith.addf %504, %506 : vector<8x128xf32>
    %508 = vector.broadcast %59 : f32 to vector<8x128xf32>
    %509 = arith.mulf %396, %508 : vector<8x128xf32>
    %510 = arith.addf %507, %509 : vector<8x128xf32>
    %511 = vector.broadcast %60 : f32 to vector<8x128xf32>
    %512 = arith.mulf %402, %511 : vector<8x128xf32>
    %513 = arith.addf %510, %512 : vector<8x128xf32>
    %514 = vector.broadcast %61 : f32 to vector<8x128xf32>
    %515 = arith.mulf %408, %514 : vector<8x128xf32>
    %516 = arith.addf %513, %515 : vector<8x128xf32>
    %517 = vector.broadcast %62 : f32 to vector<8x128xf32>
    %518 = arith.mulf %414, %517 : vector<8x128xf32>
    %519 = arith.addf %516, %518 : vector<8x128xf32>
    %520 = vector.broadcast %63 : f32 to vector<8x128xf32>
    %521 = arith.mulf %420, %520 : vector<8x128xf32>
    %522 = arith.addf %519, %521 : vector<8x128xf32>
    %523 = vector.broadcast %289 : f32 to vector<8x128xf32>
    %524 = arith.addf %522, %523 : vector<8x128xf32>
    %cst_18 = arith.constant 0.000000e+00 : f32
    %525 = vector.broadcast %cst_18 : f32 to vector<8x128xf32>
    %526 = arith.maximumf %524, %525 : vector<8x128xf32>
    %527 = vector.broadcast %305 : f32 to vector<8x128xf32>
    %528 = arith.mulf %526, %527 : vector<8x128xf32>
    %529 = arith.addf %475, %528 : vector<8x128xf32>
    %530 = vector.broadcast %64 : f32 to vector<8x128xf32>
    %531 = arith.mulf %330, %530 : vector<8x128xf32>
    %532 = vector.broadcast %65 : f32 to vector<8x128xf32>
    %533 = arith.mulf %336, %532 : vector<8x128xf32>
    %534 = arith.addf %531, %533 : vector<8x128xf32>
    %535 = vector.broadcast %66 : f32 to vector<8x128xf32>
    %536 = arith.mulf %342, %535 : vector<8x128xf32>
    %537 = arith.addf %534, %536 : vector<8x128xf32>
    %538 = vector.broadcast %67 : f32 to vector<8x128xf32>
    %539 = arith.mulf %348, %538 : vector<8x128xf32>
    %540 = arith.addf %537, %539 : vector<8x128xf32>
    %541 = vector.broadcast %68 : f32 to vector<8x128xf32>
    %542 = arith.mulf %354, %541 : vector<8x128xf32>
    %543 = arith.addf %540, %542 : vector<8x128xf32>
    %544 = vector.broadcast %69 : f32 to vector<8x128xf32>
    %545 = arith.mulf %360, %544 : vector<8x128xf32>
    %546 = arith.addf %543, %545 : vector<8x128xf32>
    %547 = vector.broadcast %70 : f32 to vector<8x128xf32>
    %548 = arith.mulf %366, %547 : vector<8x128xf32>
    %549 = arith.addf %546, %548 : vector<8x128xf32>
    %550 = vector.broadcast %71 : f32 to vector<8x128xf32>
    %551 = arith.mulf %372, %550 : vector<8x128xf32>
    %552 = arith.addf %549, %551 : vector<8x128xf32>
    %553 = vector.broadcast %72 : f32 to vector<8x128xf32>
    %554 = arith.mulf %378, %553 : vector<8x128xf32>
    %555 = arith.addf %552, %554 : vector<8x128xf32>
    %556 = vector.broadcast %73 : f32 to vector<8x128xf32>
    %557 = arith.mulf %384, %556 : vector<8x128xf32>
    %558 = arith.addf %555, %557 : vector<8x128xf32>
    %559 = vector.broadcast %74 : f32 to vector<8x128xf32>
    %560 = arith.mulf %390, %559 : vector<8x128xf32>
    %561 = arith.addf %558, %560 : vector<8x128xf32>
    %562 = vector.broadcast %75 : f32 to vector<8x128xf32>
    %563 = arith.mulf %396, %562 : vector<8x128xf32>
    %564 = arith.addf %561, %563 : vector<8x128xf32>
    %565 = vector.broadcast %76 : f32 to vector<8x128xf32>
    %566 = arith.mulf %402, %565 : vector<8x128xf32>
    %567 = arith.addf %564, %566 : vector<8x128xf32>
    %568 = vector.broadcast %77 : f32 to vector<8x128xf32>
    %569 = arith.mulf %408, %568 : vector<8x128xf32>
    %570 = arith.addf %567, %569 : vector<8x128xf32>
    %571 = vector.broadcast %78 : f32 to vector<8x128xf32>
    %572 = arith.mulf %414, %571 : vector<8x128xf32>
    %573 = arith.addf %570, %572 : vector<8x128xf32>
    %574 = vector.broadcast %79 : f32 to vector<8x128xf32>
    %575 = arith.mulf %420, %574 : vector<8x128xf32>
    %576 = arith.addf %573, %575 : vector<8x128xf32>
    %577 = vector.broadcast %290 : f32 to vector<8x128xf32>
    %578 = arith.addf %576, %577 : vector<8x128xf32>
    %cst_19 = arith.constant 0.000000e+00 : f32
    %579 = vector.broadcast %cst_19 : f32 to vector<8x128xf32>
    %580 = arith.maximumf %578, %579 : vector<8x128xf32>
    %581 = vector.broadcast %306 : f32 to vector<8x128xf32>
    %582 = arith.mulf %580, %581 : vector<8x128xf32>
    %583 = arith.addf %529, %582 : vector<8x128xf32>
    %584 = vector.broadcast %80 : f32 to vector<8x128xf32>
    %585 = arith.mulf %330, %584 : vector<8x128xf32>
    %586 = vector.broadcast %81 : f32 to vector<8x128xf32>
    %587 = arith.mulf %336, %586 : vector<8x128xf32>
    %588 = arith.addf %585, %587 : vector<8x128xf32>
    %589 = vector.broadcast %82 : f32 to vector<8x128xf32>
    %590 = arith.mulf %342, %589 : vector<8x128xf32>
    %591 = arith.addf %588, %590 : vector<8x128xf32>
    %592 = vector.broadcast %83 : f32 to vector<8x128xf32>
    %593 = arith.mulf %348, %592 : vector<8x128xf32>
    %594 = arith.addf %591, %593 : vector<8x128xf32>
    %595 = vector.broadcast %84 : f32 to vector<8x128xf32>
    %596 = arith.mulf %354, %595 : vector<8x128xf32>
    %597 = arith.addf %594, %596 : vector<8x128xf32>
    %598 = vector.broadcast %85 : f32 to vector<8x128xf32>
    %599 = arith.mulf %360, %598 : vector<8x128xf32>
    %600 = arith.addf %597, %599 : vector<8x128xf32>
    %601 = vector.broadcast %86 : f32 to vector<8x128xf32>
    %602 = arith.mulf %366, %601 : vector<8x128xf32>
    %603 = arith.addf %600, %602 : vector<8x128xf32>
    %604 = vector.broadcast %87 : f32 to vector<8x128xf32>
    %605 = arith.mulf %372, %604 : vector<8x128xf32>
    %606 = arith.addf %603, %605 : vector<8x128xf32>
    %607 = vector.broadcast %88 : f32 to vector<8x128xf32>
    %608 = arith.mulf %378, %607 : vector<8x128xf32>
    %609 = arith.addf %606, %608 : vector<8x128xf32>
    %610 = vector.broadcast %89 : f32 to vector<8x128xf32>
    %611 = arith.mulf %384, %610 : vector<8x128xf32>
    %612 = arith.addf %609, %611 : vector<8x128xf32>
    %613 = vector.broadcast %90 : f32 to vector<8x128xf32>
    %614 = arith.mulf %390, %613 : vector<8x128xf32>
    %615 = arith.addf %612, %614 : vector<8x128xf32>
    %616 = vector.broadcast %91 : f32 to vector<8x128xf32>
    %617 = arith.mulf %396, %616 : vector<8x128xf32>
    %618 = arith.addf %615, %617 : vector<8x128xf32>
    %619 = vector.broadcast %92 : f32 to vector<8x128xf32>
    %620 = arith.mulf %402, %619 : vector<8x128xf32>
    %621 = arith.addf %618, %620 : vector<8x128xf32>
    %622 = vector.broadcast %93 : f32 to vector<8x128xf32>
    %623 = arith.mulf %408, %622 : vector<8x128xf32>
    %624 = arith.addf %621, %623 : vector<8x128xf32>
    %625 = vector.broadcast %94 : f32 to vector<8x128xf32>
    %626 = arith.mulf %414, %625 : vector<8x128xf32>
    %627 = arith.addf %624, %626 : vector<8x128xf32>
    %628 = vector.broadcast %95 : f32 to vector<8x128xf32>
    %629 = arith.mulf %420, %628 : vector<8x128xf32>
    %630 = arith.addf %627, %629 : vector<8x128xf32>
    %631 = vector.broadcast %291 : f32 to vector<8x128xf32>
    %632 = arith.addf %630, %631 : vector<8x128xf32>
    %cst_20 = arith.constant 0.000000e+00 : f32
    %633 = vector.broadcast %cst_20 : f32 to vector<8x128xf32>
    %634 = arith.maximumf %632, %633 : vector<8x128xf32>
    %635 = vector.broadcast %307 : f32 to vector<8x128xf32>
    %636 = arith.mulf %634, %635 : vector<8x128xf32>
    %637 = arith.addf %583, %636 : vector<8x128xf32>
    %638 = vector.broadcast %96 : f32 to vector<8x128xf32>
    %639 = arith.mulf %330, %638 : vector<8x128xf32>
    %640 = vector.broadcast %97 : f32 to vector<8x128xf32>
    %641 = arith.mulf %336, %640 : vector<8x128xf32>
    %642 = arith.addf %639, %641 : vector<8x128xf32>
    %643 = vector.broadcast %98 : f32 to vector<8x128xf32>
    %644 = arith.mulf %342, %643 : vector<8x128xf32>
    %645 = arith.addf %642, %644 : vector<8x128xf32>
    %646 = vector.broadcast %99 : f32 to vector<8x128xf32>
    %647 = arith.mulf %348, %646 : vector<8x128xf32>
    %648 = arith.addf %645, %647 : vector<8x128xf32>
    %649 = vector.broadcast %100 : f32 to vector<8x128xf32>
    %650 = arith.mulf %354, %649 : vector<8x128xf32>
    %651 = arith.addf %648, %650 : vector<8x128xf32>
    %652 = vector.broadcast %101 : f32 to vector<8x128xf32>
    %653 = arith.mulf %360, %652 : vector<8x128xf32>
    %654 = arith.addf %651, %653 : vector<8x128xf32>
    %655 = vector.broadcast %102 : f32 to vector<8x128xf32>
    %656 = arith.mulf %366, %655 : vector<8x128xf32>
    %657 = arith.addf %654, %656 : vector<8x128xf32>
    %658 = vector.broadcast %103 : f32 to vector<8x128xf32>
    %659 = arith.mulf %372, %658 : vector<8x128xf32>
    %660 = arith.addf %657, %659 : vector<8x128xf32>
    %661 = vector.broadcast %104 : f32 to vector<8x128xf32>
    %662 = arith.mulf %378, %661 : vector<8x128xf32>
    %663 = arith.addf %660, %662 : vector<8x128xf32>
    %664 = vector.broadcast %105 : f32 to vector<8x128xf32>
    %665 = arith.mulf %384, %664 : vector<8x128xf32>
    %666 = arith.addf %663, %665 : vector<8x128xf32>
    %667 = vector.broadcast %106 : f32 to vector<8x128xf32>
    %668 = arith.mulf %390, %667 : vector<8x128xf32>
    %669 = arith.addf %666, %668 : vector<8x128xf32>
    %670 = vector.broadcast %107 : f32 to vector<8x128xf32>
    %671 = arith.mulf %396, %670 : vector<8x128xf32>
    %672 = arith.addf %669, %671 : vector<8x128xf32>
    %673 = vector.broadcast %108 : f32 to vector<8x128xf32>
    %674 = arith.mulf %402, %673 : vector<8x128xf32>
    %675 = arith.addf %672, %674 : vector<8x128xf32>
    %676 = vector.broadcast %109 : f32 to vector<8x128xf32>
    %677 = arith.mulf %408, %676 : vector<8x128xf32>
    %678 = arith.addf %675, %677 : vector<8x128xf32>
    %679 = vector.broadcast %110 : f32 to vector<8x128xf32>
    %680 = arith.mulf %414, %679 : vector<8x128xf32>
    %681 = arith.addf %678, %680 : vector<8x128xf32>
    %682 = vector.broadcast %111 : f32 to vector<8x128xf32>
    %683 = arith.mulf %420, %682 : vector<8x128xf32>
    %684 = arith.addf %681, %683 : vector<8x128xf32>
    %685 = vector.broadcast %292 : f32 to vector<8x128xf32>
    %686 = arith.addf %684, %685 : vector<8x128xf32>
    %cst_21 = arith.constant 0.000000e+00 : f32
    %687 = vector.broadcast %cst_21 : f32 to vector<8x128xf32>
    %688 = arith.maximumf %686, %687 : vector<8x128xf32>
    %689 = vector.broadcast %308 : f32 to vector<8x128xf32>
    %690 = arith.mulf %688, %689 : vector<8x128xf32>
    %691 = arith.addf %637, %690 : vector<8x128xf32>
    %692 = vector.broadcast %112 : f32 to vector<8x128xf32>
    %693 = arith.mulf %330, %692 : vector<8x128xf32>
    %694 = vector.broadcast %113 : f32 to vector<8x128xf32>
    %695 = arith.mulf %336, %694 : vector<8x128xf32>
    %696 = arith.addf %693, %695 : vector<8x128xf32>
    %697 = vector.broadcast %114 : f32 to vector<8x128xf32>
    %698 = arith.mulf %342, %697 : vector<8x128xf32>
    %699 = arith.addf %696, %698 : vector<8x128xf32>
    %700 = vector.broadcast %115 : f32 to vector<8x128xf32>
    %701 = arith.mulf %348, %700 : vector<8x128xf32>
    %702 = arith.addf %699, %701 : vector<8x128xf32>
    %703 = vector.broadcast %116 : f32 to vector<8x128xf32>
    %704 = arith.mulf %354, %703 : vector<8x128xf32>
    %705 = arith.addf %702, %704 : vector<8x128xf32>
    %706 = vector.broadcast %117 : f32 to vector<8x128xf32>
    %707 = arith.mulf %360, %706 : vector<8x128xf32>
    %708 = arith.addf %705, %707 : vector<8x128xf32>
    %709 = vector.broadcast %118 : f32 to vector<8x128xf32>
    %710 = arith.mulf %366, %709 : vector<8x128xf32>
    %711 = arith.addf %708, %710 : vector<8x128xf32>
    %712 = vector.broadcast %119 : f32 to vector<8x128xf32>
    %713 = arith.mulf %372, %712 : vector<8x128xf32>
    %714 = arith.addf %711, %713 : vector<8x128xf32>
    %715 = vector.broadcast %120 : f32 to vector<8x128xf32>
    %716 = arith.mulf %378, %715 : vector<8x128xf32>
    %717 = arith.addf %714, %716 : vector<8x128xf32>
    %718 = vector.broadcast %121 : f32 to vector<8x128xf32>
    %719 = arith.mulf %384, %718 : vector<8x128xf32>
    %720 = arith.addf %717, %719 : vector<8x128xf32>
    %721 = vector.broadcast %122 : f32 to vector<8x128xf32>
    %722 = arith.mulf %390, %721 : vector<8x128xf32>
    %723 = arith.addf %720, %722 : vector<8x128xf32>
    %724 = vector.broadcast %123 : f32 to vector<8x128xf32>
    %725 = arith.mulf %396, %724 : vector<8x128xf32>
    %726 = arith.addf %723, %725 : vector<8x128xf32>
    %727 = vector.broadcast %124 : f32 to vector<8x128xf32>
    %728 = arith.mulf %402, %727 : vector<8x128xf32>
    %729 = arith.addf %726, %728 : vector<8x128xf32>
    %730 = vector.broadcast %125 : f32 to vector<8x128xf32>
    %731 = arith.mulf %408, %730 : vector<8x128xf32>
    %732 = arith.addf %729, %731 : vector<8x128xf32>
    %733 = vector.broadcast %126 : f32 to vector<8x128xf32>
    %734 = arith.mulf %414, %733 : vector<8x128xf32>
    %735 = arith.addf %732, %734 : vector<8x128xf32>
    %736 = vector.broadcast %127 : f32 to vector<8x128xf32>
    %737 = arith.mulf %420, %736 : vector<8x128xf32>
    %738 = arith.addf %735, %737 : vector<8x128xf32>
    %739 = vector.broadcast %293 : f32 to vector<8x128xf32>
    %740 = arith.addf %738, %739 : vector<8x128xf32>
    %cst_22 = arith.constant 0.000000e+00 : f32
    %741 = vector.broadcast %cst_22 : f32 to vector<8x128xf32>
    %742 = arith.maximumf %740, %741 : vector<8x128xf32>
    %743 = vector.broadcast %309 : f32 to vector<8x128xf32>
    %744 = arith.mulf %742, %743 : vector<8x128xf32>
    %745 = arith.addf %691, %744 : vector<8x128xf32>
    %746 = vector.broadcast %128 : f32 to vector<8x128xf32>
    %747 = arith.mulf %330, %746 : vector<8x128xf32>
    %748 = vector.broadcast %129 : f32 to vector<8x128xf32>
    %749 = arith.mulf %336, %748 : vector<8x128xf32>
    %750 = arith.addf %747, %749 : vector<8x128xf32>
    %751 = vector.broadcast %130 : f32 to vector<8x128xf32>
    %752 = arith.mulf %342, %751 : vector<8x128xf32>
    %753 = arith.addf %750, %752 : vector<8x128xf32>
    %754 = vector.broadcast %131 : f32 to vector<8x128xf32>
    %755 = arith.mulf %348, %754 : vector<8x128xf32>
    %756 = arith.addf %753, %755 : vector<8x128xf32>
    %757 = vector.broadcast %132 : f32 to vector<8x128xf32>
    %758 = arith.mulf %354, %757 : vector<8x128xf32>
    %759 = arith.addf %756, %758 : vector<8x128xf32>
    %760 = vector.broadcast %133 : f32 to vector<8x128xf32>
    %761 = arith.mulf %360, %760 : vector<8x128xf32>
    %762 = arith.addf %759, %761 : vector<8x128xf32>
    %763 = vector.broadcast %134 : f32 to vector<8x128xf32>
    %764 = arith.mulf %366, %763 : vector<8x128xf32>
    %765 = arith.addf %762, %764 : vector<8x128xf32>
    %766 = vector.broadcast %135 : f32 to vector<8x128xf32>
    %767 = arith.mulf %372, %766 : vector<8x128xf32>
    %768 = arith.addf %765, %767 : vector<8x128xf32>
    %769 = vector.broadcast %136 : f32 to vector<8x128xf32>
    %770 = arith.mulf %378, %769 : vector<8x128xf32>
    %771 = arith.addf %768, %770 : vector<8x128xf32>
    %772 = vector.broadcast %137 : f32 to vector<8x128xf32>
    %773 = arith.mulf %384, %772 : vector<8x128xf32>
    %774 = arith.addf %771, %773 : vector<8x128xf32>
    %775 = vector.broadcast %138 : f32 to vector<8x128xf32>
    %776 = arith.mulf %390, %775 : vector<8x128xf32>
    %777 = arith.addf %774, %776 : vector<8x128xf32>
    %778 = vector.broadcast %139 : f32 to vector<8x128xf32>
    %779 = arith.mulf %396, %778 : vector<8x128xf32>
    %780 = arith.addf %777, %779 : vector<8x128xf32>
    %781 = vector.broadcast %140 : f32 to vector<8x128xf32>
    %782 = arith.mulf %402, %781 : vector<8x128xf32>
    %783 = arith.addf %780, %782 : vector<8x128xf32>
    %784 = vector.broadcast %141 : f32 to vector<8x128xf32>
    %785 = arith.mulf %408, %784 : vector<8x128xf32>
    %786 = arith.addf %783, %785 : vector<8x128xf32>
    %787 = vector.broadcast %142 : f32 to vector<8x128xf32>
    %788 = arith.mulf %414, %787 : vector<8x128xf32>
    %789 = arith.addf %786, %788 : vector<8x128xf32>
    %790 = vector.broadcast %143 : f32 to vector<8x128xf32>
    %791 = arith.mulf %420, %790 : vector<8x128xf32>
    %792 = arith.addf %789, %791 : vector<8x128xf32>
    %793 = vector.broadcast %294 : f32 to vector<8x128xf32>
    %794 = arith.addf %792, %793 : vector<8x128xf32>
    %cst_23 = arith.constant 0.000000e+00 : f32
    %795 = vector.broadcast %cst_23 : f32 to vector<8x128xf32>
    %796 = arith.maximumf %794, %795 : vector<8x128xf32>
    %797 = vector.broadcast %310 : f32 to vector<8x128xf32>
    %798 = arith.mulf %796, %797 : vector<8x128xf32>
    %799 = arith.addf %745, %798 : vector<8x128xf32>
    %800 = vector.broadcast %144 : f32 to vector<8x128xf32>
    %801 = arith.mulf %330, %800 : vector<8x128xf32>
    %802 = vector.broadcast %145 : f32 to vector<8x128xf32>
    %803 = arith.mulf %336, %802 : vector<8x128xf32>
    %804 = arith.addf %801, %803 : vector<8x128xf32>
    %805 = vector.broadcast %146 : f32 to vector<8x128xf32>
    %806 = arith.mulf %342, %805 : vector<8x128xf32>
    %807 = arith.addf %804, %806 : vector<8x128xf32>
    %808 = vector.broadcast %147 : f32 to vector<8x128xf32>
    %809 = arith.mulf %348, %808 : vector<8x128xf32>
    %810 = arith.addf %807, %809 : vector<8x128xf32>
    %811 = vector.broadcast %148 : f32 to vector<8x128xf32>
    %812 = arith.mulf %354, %811 : vector<8x128xf32>
    %813 = arith.addf %810, %812 : vector<8x128xf32>
    %814 = vector.broadcast %149 : f32 to vector<8x128xf32>
    %815 = arith.mulf %360, %814 : vector<8x128xf32>
    %816 = arith.addf %813, %815 : vector<8x128xf32>
    %817 = vector.broadcast %150 : f32 to vector<8x128xf32>
    %818 = arith.mulf %366, %817 : vector<8x128xf32>
    %819 = arith.addf %816, %818 : vector<8x128xf32>
    %820 = vector.broadcast %151 : f32 to vector<8x128xf32>
    %821 = arith.mulf %372, %820 : vector<8x128xf32>
    %822 = arith.addf %819, %821 : vector<8x128xf32>
    %823 = vector.broadcast %152 : f32 to vector<8x128xf32>
    %824 = arith.mulf %378, %823 : vector<8x128xf32>
    %825 = arith.addf %822, %824 : vector<8x128xf32>
    %826 = vector.broadcast %153 : f32 to vector<8x128xf32>
    %827 = arith.mulf %384, %826 : vector<8x128xf32>
    %828 = arith.addf %825, %827 : vector<8x128xf32>
    %829 = vector.broadcast %154 : f32 to vector<8x128xf32>
    %830 = arith.mulf %390, %829 : vector<8x128xf32>
    %831 = arith.addf %828, %830 : vector<8x128xf32>
    %832 = vector.broadcast %155 : f32 to vector<8x128xf32>
    %833 = arith.mulf %396, %832 : vector<8x128xf32>
    %834 = arith.addf %831, %833 : vector<8x128xf32>
    %835 = vector.broadcast %156 : f32 to vector<8x128xf32>
    %836 = arith.mulf %402, %835 : vector<8x128xf32>
    %837 = arith.addf %834, %836 : vector<8x128xf32>
    %838 = vector.broadcast %157 : f32 to vector<8x128xf32>
    %839 = arith.mulf %408, %838 : vector<8x128xf32>
    %840 = arith.addf %837, %839 : vector<8x128xf32>
    %841 = vector.broadcast %158 : f32 to vector<8x128xf32>
    %842 = arith.mulf %414, %841 : vector<8x128xf32>
    %843 = arith.addf %840, %842 : vector<8x128xf32>
    %844 = vector.broadcast %159 : f32 to vector<8x128xf32>
    %845 = arith.mulf %420, %844 : vector<8x128xf32>
    %846 = arith.addf %843, %845 : vector<8x128xf32>
    %847 = vector.broadcast %295 : f32 to vector<8x128xf32>
    %848 = arith.addf %846, %847 : vector<8x128xf32>
    %cst_24 = arith.constant 0.000000e+00 : f32
    %849 = vector.broadcast %cst_24 : f32 to vector<8x128xf32>
    %850 = arith.maximumf %848, %849 : vector<8x128xf32>
    %851 = vector.broadcast %311 : f32 to vector<8x128xf32>
    %852 = arith.mulf %850, %851 : vector<8x128xf32>
    %853 = arith.addf %799, %852 : vector<8x128xf32>
    %854 = vector.broadcast %160 : f32 to vector<8x128xf32>
    %855 = arith.mulf %330, %854 : vector<8x128xf32>
    %856 = vector.broadcast %161 : f32 to vector<8x128xf32>
    %857 = arith.mulf %336, %856 : vector<8x128xf32>
    %858 = arith.addf %855, %857 : vector<8x128xf32>
    %859 = vector.broadcast %162 : f32 to vector<8x128xf32>
    %860 = arith.mulf %342, %859 : vector<8x128xf32>
    %861 = arith.addf %858, %860 : vector<8x128xf32>
    %862 = vector.broadcast %163 : f32 to vector<8x128xf32>
    %863 = arith.mulf %348, %862 : vector<8x128xf32>
    %864 = arith.addf %861, %863 : vector<8x128xf32>
    %865 = vector.broadcast %164 : f32 to vector<8x128xf32>
    %866 = arith.mulf %354, %865 : vector<8x128xf32>
    %867 = arith.addf %864, %866 : vector<8x128xf32>
    %868 = vector.broadcast %165 : f32 to vector<8x128xf32>
    %869 = arith.mulf %360, %868 : vector<8x128xf32>
    %870 = arith.addf %867, %869 : vector<8x128xf32>
    %871 = vector.broadcast %166 : f32 to vector<8x128xf32>
    %872 = arith.mulf %366, %871 : vector<8x128xf32>
    %873 = arith.addf %870, %872 : vector<8x128xf32>
    %874 = vector.broadcast %167 : f32 to vector<8x128xf32>
    %875 = arith.mulf %372, %874 : vector<8x128xf32>
    %876 = arith.addf %873, %875 : vector<8x128xf32>
    %877 = vector.broadcast %168 : f32 to vector<8x128xf32>
    %878 = arith.mulf %378, %877 : vector<8x128xf32>
    %879 = arith.addf %876, %878 : vector<8x128xf32>
    %880 = vector.broadcast %169 : f32 to vector<8x128xf32>
    %881 = arith.mulf %384, %880 : vector<8x128xf32>
    %882 = arith.addf %879, %881 : vector<8x128xf32>
    %883 = vector.broadcast %170 : f32 to vector<8x128xf32>
    %884 = arith.mulf %390, %883 : vector<8x128xf32>
    %885 = arith.addf %882, %884 : vector<8x128xf32>
    %886 = vector.broadcast %171 : f32 to vector<8x128xf32>
    %887 = arith.mulf %396, %886 : vector<8x128xf32>
    %888 = arith.addf %885, %887 : vector<8x128xf32>
    %889 = vector.broadcast %172 : f32 to vector<8x128xf32>
    %890 = arith.mulf %402, %889 : vector<8x128xf32>
    %891 = arith.addf %888, %890 : vector<8x128xf32>
    %892 = vector.broadcast %173 : f32 to vector<8x128xf32>
    %893 = arith.mulf %408, %892 : vector<8x128xf32>
    %894 = arith.addf %891, %893 : vector<8x128xf32>
    %895 = vector.broadcast %174 : f32 to vector<8x128xf32>
    %896 = arith.mulf %414, %895 : vector<8x128xf32>
    %897 = arith.addf %894, %896 : vector<8x128xf32>
    %898 = vector.broadcast %175 : f32 to vector<8x128xf32>
    %899 = arith.mulf %420, %898 : vector<8x128xf32>
    %900 = arith.addf %897, %899 : vector<8x128xf32>
    %901 = vector.broadcast %296 : f32 to vector<8x128xf32>
    %902 = arith.addf %900, %901 : vector<8x128xf32>
    %cst_25 = arith.constant 0.000000e+00 : f32
    %903 = vector.broadcast %cst_25 : f32 to vector<8x128xf32>
    %904 = arith.maximumf %902, %903 : vector<8x128xf32>
    %905 = vector.broadcast %312 : f32 to vector<8x128xf32>
    %906 = arith.mulf %904, %905 : vector<8x128xf32>
    %907 = arith.addf %853, %906 : vector<8x128xf32>
    %908 = vector.broadcast %176 : f32 to vector<8x128xf32>
    %909 = arith.mulf %330, %908 : vector<8x128xf32>
    %910 = vector.broadcast %177 : f32 to vector<8x128xf32>
    %911 = arith.mulf %336, %910 : vector<8x128xf32>
    %912 = arith.addf %909, %911 : vector<8x128xf32>
    %913 = vector.broadcast %178 : f32 to vector<8x128xf32>
    %914 = arith.mulf %342, %913 : vector<8x128xf32>
    %915 = arith.addf %912, %914 : vector<8x128xf32>
    %916 = vector.broadcast %179 : f32 to vector<8x128xf32>
    %917 = arith.mulf %348, %916 : vector<8x128xf32>
    %918 = arith.addf %915, %917 : vector<8x128xf32>
    %919 = vector.broadcast %180 : f32 to vector<8x128xf32>
    %920 = arith.mulf %354, %919 : vector<8x128xf32>
    %921 = arith.addf %918, %920 : vector<8x128xf32>
    %922 = vector.broadcast %181 : f32 to vector<8x128xf32>
    %923 = arith.mulf %360, %922 : vector<8x128xf32>
    %924 = arith.addf %921, %923 : vector<8x128xf32>
    %925 = vector.broadcast %182 : f32 to vector<8x128xf32>
    %926 = arith.mulf %366, %925 : vector<8x128xf32>
    %927 = arith.addf %924, %926 : vector<8x128xf32>
    %928 = vector.broadcast %183 : f32 to vector<8x128xf32>
    %929 = arith.mulf %372, %928 : vector<8x128xf32>
    %930 = arith.addf %927, %929 : vector<8x128xf32>
    %931 = vector.broadcast %184 : f32 to vector<8x128xf32>
    %932 = arith.mulf %378, %931 : vector<8x128xf32>
    %933 = arith.addf %930, %932 : vector<8x128xf32>
    %934 = vector.broadcast %185 : f32 to vector<8x128xf32>
    %935 = arith.mulf %384, %934 : vector<8x128xf32>
    %936 = arith.addf %933, %935 : vector<8x128xf32>
    %937 = vector.broadcast %186 : f32 to vector<8x128xf32>
    %938 = arith.mulf %390, %937 : vector<8x128xf32>
    %939 = arith.addf %936, %938 : vector<8x128xf32>
    %940 = vector.broadcast %187 : f32 to vector<8x128xf32>
    %941 = arith.mulf %396, %940 : vector<8x128xf32>
    %942 = arith.addf %939, %941 : vector<8x128xf32>
    %943 = vector.broadcast %188 : f32 to vector<8x128xf32>
    %944 = arith.mulf %402, %943 : vector<8x128xf32>
    %945 = arith.addf %942, %944 : vector<8x128xf32>
    %946 = vector.broadcast %189 : f32 to vector<8x128xf32>
    %947 = arith.mulf %408, %946 : vector<8x128xf32>
    %948 = arith.addf %945, %947 : vector<8x128xf32>
    %949 = vector.broadcast %190 : f32 to vector<8x128xf32>
    %950 = arith.mulf %414, %949 : vector<8x128xf32>
    %951 = arith.addf %948, %950 : vector<8x128xf32>
    %952 = vector.broadcast %191 : f32 to vector<8x128xf32>
    %953 = arith.mulf %420, %952 : vector<8x128xf32>
    %954 = arith.addf %951, %953 : vector<8x128xf32>
    %955 = vector.broadcast %297 : f32 to vector<8x128xf32>
    %956 = arith.addf %954, %955 : vector<8x128xf32>
    %cst_26 = arith.constant 0.000000e+00 : f32
    %957 = vector.broadcast %cst_26 : f32 to vector<8x128xf32>
    %958 = arith.maximumf %956, %957 : vector<8x128xf32>
    %959 = vector.broadcast %313 : f32 to vector<8x128xf32>
    %960 = arith.mulf %958, %959 : vector<8x128xf32>
    %961 = arith.addf %907, %960 : vector<8x128xf32>
    %962 = vector.broadcast %192 : f32 to vector<8x128xf32>
    %963 = arith.mulf %330, %962 : vector<8x128xf32>
    %964 = vector.broadcast %193 : f32 to vector<8x128xf32>
    %965 = arith.mulf %336, %964 : vector<8x128xf32>
    %966 = arith.addf %963, %965 : vector<8x128xf32>
    %967 = vector.broadcast %194 : f32 to vector<8x128xf32>
    %968 = arith.mulf %342, %967 : vector<8x128xf32>
    %969 = arith.addf %966, %968 : vector<8x128xf32>
    %970 = vector.broadcast %195 : f32 to vector<8x128xf32>
    %971 = arith.mulf %348, %970 : vector<8x128xf32>
    %972 = arith.addf %969, %971 : vector<8x128xf32>
    %973 = vector.broadcast %196 : f32 to vector<8x128xf32>
    %974 = arith.mulf %354, %973 : vector<8x128xf32>
    %975 = arith.addf %972, %974 : vector<8x128xf32>
    %976 = vector.broadcast %197 : f32 to vector<8x128xf32>
    %977 = arith.mulf %360, %976 : vector<8x128xf32>
    %978 = arith.addf %975, %977 : vector<8x128xf32>
    %979 = vector.broadcast %198 : f32 to vector<8x128xf32>
    %980 = arith.mulf %366, %979 : vector<8x128xf32>
    %981 = arith.addf %978, %980 : vector<8x128xf32>
    %982 = vector.broadcast %199 : f32 to vector<8x128xf32>
    %983 = arith.mulf %372, %982 : vector<8x128xf32>
    %984 = arith.addf %981, %983 : vector<8x128xf32>
    %985 = vector.broadcast %200 : f32 to vector<8x128xf32>
    %986 = arith.mulf %378, %985 : vector<8x128xf32>
    %987 = arith.addf %984, %986 : vector<8x128xf32>
    %988 = vector.broadcast %201 : f32 to vector<8x128xf32>
    %989 = arith.mulf %384, %988 : vector<8x128xf32>
    %990 = arith.addf %987, %989 : vector<8x128xf32>
    %991 = vector.broadcast %202 : f32 to vector<8x128xf32>
    %992 = arith.mulf %390, %991 : vector<8x128xf32>
    %993 = arith.addf %990, %992 : vector<8x128xf32>
    %994 = vector.broadcast %203 : f32 to vector<8x128xf32>
    %995 = arith.mulf %396, %994 : vector<8x128xf32>
    %996 = arith.addf %993, %995 : vector<8x128xf32>
    %997 = vector.broadcast %204 : f32 to vector<8x128xf32>
    %998 = arith.mulf %402, %997 : vector<8x128xf32>
    %999 = arith.addf %996, %998 : vector<8x128xf32>
    %1000 = vector.broadcast %205 : f32 to vector<8x128xf32>
    %1001 = arith.mulf %408, %1000 : vector<8x128xf32>
    %1002 = arith.addf %999, %1001 : vector<8x128xf32>
    %1003 = vector.broadcast %206 : f32 to vector<8x128xf32>
    %1004 = arith.mulf %414, %1003 : vector<8x128xf32>
    %1005 = arith.addf %1002, %1004 : vector<8x128xf32>
    %1006 = vector.broadcast %207 : f32 to vector<8x128xf32>
    %1007 = arith.mulf %420, %1006 : vector<8x128xf32>
    %1008 = arith.addf %1005, %1007 : vector<8x128xf32>
    %1009 = vector.broadcast %298 : f32 to vector<8x128xf32>
    %1010 = arith.addf %1008, %1009 : vector<8x128xf32>
    %cst_27 = arith.constant 0.000000e+00 : f32
    %1011 = vector.broadcast %cst_27 : f32 to vector<8x128xf32>
    %1012 = arith.maximumf %1010, %1011 : vector<8x128xf32>
    %1013 = vector.broadcast %314 : f32 to vector<8x128xf32>
    %1014 = arith.mulf %1012, %1013 : vector<8x128xf32>
    %1015 = arith.addf %961, %1014 : vector<8x128xf32>
    %1016 = vector.broadcast %208 : f32 to vector<8x128xf32>
    %1017 = arith.mulf %330, %1016 : vector<8x128xf32>
    %1018 = vector.broadcast %209 : f32 to vector<8x128xf32>
    %1019 = arith.mulf %336, %1018 : vector<8x128xf32>
    %1020 = arith.addf %1017, %1019 : vector<8x128xf32>
    %1021 = vector.broadcast %210 : f32 to vector<8x128xf32>
    %1022 = arith.mulf %342, %1021 : vector<8x128xf32>
    %1023 = arith.addf %1020, %1022 : vector<8x128xf32>
    %1024 = vector.broadcast %211 : f32 to vector<8x128xf32>
    %1025 = arith.mulf %348, %1024 : vector<8x128xf32>
    %1026 = arith.addf %1023, %1025 : vector<8x128xf32>
    %1027 = vector.broadcast %212 : f32 to vector<8x128xf32>
    %1028 = arith.mulf %354, %1027 : vector<8x128xf32>
    %1029 = arith.addf %1026, %1028 : vector<8x128xf32>
    %1030 = vector.broadcast %213 : f32 to vector<8x128xf32>
    %1031 = arith.mulf %360, %1030 : vector<8x128xf32>
    %1032 = arith.addf %1029, %1031 : vector<8x128xf32>
    %1033 = vector.broadcast %214 : f32 to vector<8x128xf32>
    %1034 = arith.mulf %366, %1033 : vector<8x128xf32>
    %1035 = arith.addf %1032, %1034 : vector<8x128xf32>
    %1036 = vector.broadcast %215 : f32 to vector<8x128xf32>
    %1037 = arith.mulf %372, %1036 : vector<8x128xf32>
    %1038 = arith.addf %1035, %1037 : vector<8x128xf32>
    %1039 = vector.broadcast %216 : f32 to vector<8x128xf32>
    %1040 = arith.mulf %378, %1039 : vector<8x128xf32>
    %1041 = arith.addf %1038, %1040 : vector<8x128xf32>
    %1042 = vector.broadcast %217 : f32 to vector<8x128xf32>
    %1043 = arith.mulf %384, %1042 : vector<8x128xf32>
    %1044 = arith.addf %1041, %1043 : vector<8x128xf32>
    %1045 = vector.broadcast %218 : f32 to vector<8x128xf32>
    %1046 = arith.mulf %390, %1045 : vector<8x128xf32>
    %1047 = arith.addf %1044, %1046 : vector<8x128xf32>
    %1048 = vector.broadcast %219 : f32 to vector<8x128xf32>
    %1049 = arith.mulf %396, %1048 : vector<8x128xf32>
    %1050 = arith.addf %1047, %1049 : vector<8x128xf32>
    %1051 = vector.broadcast %220 : f32 to vector<8x128xf32>
    %1052 = arith.mulf %402, %1051 : vector<8x128xf32>
    %1053 = arith.addf %1050, %1052 : vector<8x128xf32>
    %1054 = vector.broadcast %221 : f32 to vector<8x128xf32>
    %1055 = arith.mulf %408, %1054 : vector<8x128xf32>
    %1056 = arith.addf %1053, %1055 : vector<8x128xf32>
    %1057 = vector.broadcast %222 : f32 to vector<8x128xf32>
    %1058 = arith.mulf %414, %1057 : vector<8x128xf32>
    %1059 = arith.addf %1056, %1058 : vector<8x128xf32>
    %1060 = vector.broadcast %223 : f32 to vector<8x128xf32>
    %1061 = arith.mulf %420, %1060 : vector<8x128xf32>
    %1062 = arith.addf %1059, %1061 : vector<8x128xf32>
    %1063 = vector.broadcast %299 : f32 to vector<8x128xf32>
    %1064 = arith.addf %1062, %1063 : vector<8x128xf32>
    %cst_28 = arith.constant 0.000000e+00 : f32
    %1065 = vector.broadcast %cst_28 : f32 to vector<8x128xf32>
    %1066 = arith.maximumf %1064, %1065 : vector<8x128xf32>
    %1067 = vector.broadcast %315 : f32 to vector<8x128xf32>
    %1068 = arith.mulf %1066, %1067 : vector<8x128xf32>
    %1069 = arith.addf %1015, %1068 : vector<8x128xf32>
    %1070 = vector.broadcast %224 : f32 to vector<8x128xf32>
    %1071 = arith.mulf %330, %1070 : vector<8x128xf32>
    %1072 = vector.broadcast %225 : f32 to vector<8x128xf32>
    %1073 = arith.mulf %336, %1072 : vector<8x128xf32>
    %1074 = arith.addf %1071, %1073 : vector<8x128xf32>
    %1075 = vector.broadcast %226 : f32 to vector<8x128xf32>
    %1076 = arith.mulf %342, %1075 : vector<8x128xf32>
    %1077 = arith.addf %1074, %1076 : vector<8x128xf32>
    %1078 = vector.broadcast %227 : f32 to vector<8x128xf32>
    %1079 = arith.mulf %348, %1078 : vector<8x128xf32>
    %1080 = arith.addf %1077, %1079 : vector<8x128xf32>
    %1081 = vector.broadcast %228 : f32 to vector<8x128xf32>
    %1082 = arith.mulf %354, %1081 : vector<8x128xf32>
    %1083 = arith.addf %1080, %1082 : vector<8x128xf32>
    %1084 = vector.broadcast %229 : f32 to vector<8x128xf32>
    %1085 = arith.mulf %360, %1084 : vector<8x128xf32>
    %1086 = arith.addf %1083, %1085 : vector<8x128xf32>
    %1087 = vector.broadcast %230 : f32 to vector<8x128xf32>
    %1088 = arith.mulf %366, %1087 : vector<8x128xf32>
    %1089 = arith.addf %1086, %1088 : vector<8x128xf32>
    %1090 = vector.broadcast %231 : f32 to vector<8x128xf32>
    %1091 = arith.mulf %372, %1090 : vector<8x128xf32>
    %1092 = arith.addf %1089, %1091 : vector<8x128xf32>
    %1093 = vector.broadcast %232 : f32 to vector<8x128xf32>
    %1094 = arith.mulf %378, %1093 : vector<8x128xf32>
    %1095 = arith.addf %1092, %1094 : vector<8x128xf32>
    %1096 = vector.broadcast %233 : f32 to vector<8x128xf32>
    %1097 = arith.mulf %384, %1096 : vector<8x128xf32>
    %1098 = arith.addf %1095, %1097 : vector<8x128xf32>
    %1099 = vector.broadcast %234 : f32 to vector<8x128xf32>
    %1100 = arith.mulf %390, %1099 : vector<8x128xf32>
    %1101 = arith.addf %1098, %1100 : vector<8x128xf32>
    %1102 = vector.broadcast %235 : f32 to vector<8x128xf32>
    %1103 = arith.mulf %396, %1102 : vector<8x128xf32>
    %1104 = arith.addf %1101, %1103 : vector<8x128xf32>
    %1105 = vector.broadcast %236 : f32 to vector<8x128xf32>
    %1106 = arith.mulf %402, %1105 : vector<8x128xf32>
    %1107 = arith.addf %1104, %1106 : vector<8x128xf32>
    %1108 = vector.broadcast %237 : f32 to vector<8x128xf32>
    %1109 = arith.mulf %408, %1108 : vector<8x128xf32>
    %1110 = arith.addf %1107, %1109 : vector<8x128xf32>
    %1111 = vector.broadcast %238 : f32 to vector<8x128xf32>
    %1112 = arith.mulf %414, %1111 : vector<8x128xf32>
    %1113 = arith.addf %1110, %1112 : vector<8x128xf32>
    %1114 = vector.broadcast %239 : f32 to vector<8x128xf32>
    %1115 = arith.mulf %420, %1114 : vector<8x128xf32>
    %1116 = arith.addf %1113, %1115 : vector<8x128xf32>
    %1117 = vector.broadcast %300 : f32 to vector<8x128xf32>
    %1118 = arith.addf %1116, %1117 : vector<8x128xf32>
    %cst_29 = arith.constant 0.000000e+00 : f32
    %1119 = vector.broadcast %cst_29 : f32 to vector<8x128xf32>
    %1120 = arith.maximumf %1118, %1119 : vector<8x128xf32>
    %1121 = vector.broadcast %316 : f32 to vector<8x128xf32>
    %1122 = arith.mulf %1120, %1121 : vector<8x128xf32>
    %1123 = arith.addf %1069, %1122 : vector<8x128xf32>
    %1124 = vector.broadcast %240 : f32 to vector<8x128xf32>
    %1125 = arith.mulf %330, %1124 : vector<8x128xf32>
    %1126 = vector.broadcast %241 : f32 to vector<8x128xf32>
    %1127 = arith.mulf %336, %1126 : vector<8x128xf32>
    %1128 = arith.addf %1125, %1127 : vector<8x128xf32>
    %1129 = vector.broadcast %242 : f32 to vector<8x128xf32>
    %1130 = arith.mulf %342, %1129 : vector<8x128xf32>
    %1131 = arith.addf %1128, %1130 : vector<8x128xf32>
    %1132 = vector.broadcast %243 : f32 to vector<8x128xf32>
    %1133 = arith.mulf %348, %1132 : vector<8x128xf32>
    %1134 = arith.addf %1131, %1133 : vector<8x128xf32>
    %1135 = vector.broadcast %244 : f32 to vector<8x128xf32>
    %1136 = arith.mulf %354, %1135 : vector<8x128xf32>
    %1137 = arith.addf %1134, %1136 : vector<8x128xf32>
    %1138 = vector.broadcast %245 : f32 to vector<8x128xf32>
    %1139 = arith.mulf %360, %1138 : vector<8x128xf32>
    %1140 = arith.addf %1137, %1139 : vector<8x128xf32>
    %1141 = vector.broadcast %246 : f32 to vector<8x128xf32>
    %1142 = arith.mulf %366, %1141 : vector<8x128xf32>
    %1143 = arith.addf %1140, %1142 : vector<8x128xf32>
    %1144 = vector.broadcast %247 : f32 to vector<8x128xf32>
    %1145 = arith.mulf %372, %1144 : vector<8x128xf32>
    %1146 = arith.addf %1143, %1145 : vector<8x128xf32>
    %1147 = vector.broadcast %248 : f32 to vector<8x128xf32>
    %1148 = arith.mulf %378, %1147 : vector<8x128xf32>
    %1149 = arith.addf %1146, %1148 : vector<8x128xf32>
    %1150 = vector.broadcast %249 : f32 to vector<8x128xf32>
    %1151 = arith.mulf %384, %1150 : vector<8x128xf32>
    %1152 = arith.addf %1149, %1151 : vector<8x128xf32>
    %1153 = vector.broadcast %250 : f32 to vector<8x128xf32>
    %1154 = arith.mulf %390, %1153 : vector<8x128xf32>
    %1155 = arith.addf %1152, %1154 : vector<8x128xf32>
    %1156 = vector.broadcast %251 : f32 to vector<8x128xf32>
    %1157 = arith.mulf %396, %1156 : vector<8x128xf32>
    %1158 = arith.addf %1155, %1157 : vector<8x128xf32>
    %1159 = vector.broadcast %252 : f32 to vector<8x128xf32>
    %1160 = arith.mulf %402, %1159 : vector<8x128xf32>
    %1161 = arith.addf %1158, %1160 : vector<8x128xf32>
    %1162 = vector.broadcast %253 : f32 to vector<8x128xf32>
    %1163 = arith.mulf %408, %1162 : vector<8x128xf32>
    %1164 = arith.addf %1161, %1163 : vector<8x128xf32>
    %1165 = vector.broadcast %254 : f32 to vector<8x128xf32>
    %1166 = arith.mulf %414, %1165 : vector<8x128xf32>
    %1167 = arith.addf %1164, %1166 : vector<8x128xf32>
    %1168 = vector.broadcast %255 : f32 to vector<8x128xf32>
    %1169 = arith.mulf %420, %1168 : vector<8x128xf32>
    %1170 = arith.addf %1167, %1169 : vector<8x128xf32>
    %1171 = vector.broadcast %301 : f32 to vector<8x128xf32>
    %1172 = arith.addf %1170, %1171 : vector<8x128xf32>
    %cst_30 = arith.constant 0.000000e+00 : f32
    %1173 = vector.broadcast %cst_30 : f32 to vector<8x128xf32>
    %1174 = arith.maximumf %1172, %1173 : vector<8x128xf32>
    %1175 = vector.broadcast %317 : f32 to vector<8x128xf32>
    %1176 = arith.mulf %1174, %1175 : vector<8x128xf32>
    %1177 = arith.addf %1123, %1176 : vector<8x128xf32>
    %1178 = vector.broadcast %256 : f32 to vector<8x128xf32>
    %1179 = arith.mulf %330, %1178 : vector<8x128xf32>
    %1180 = vector.broadcast %257 : f32 to vector<8x128xf32>
    %1181 = arith.mulf %336, %1180 : vector<8x128xf32>
    %1182 = arith.addf %1179, %1181 : vector<8x128xf32>
    %1183 = vector.broadcast %258 : f32 to vector<8x128xf32>
    %1184 = arith.mulf %342, %1183 : vector<8x128xf32>
    %1185 = arith.addf %1182, %1184 : vector<8x128xf32>
    %1186 = vector.broadcast %259 : f32 to vector<8x128xf32>
    %1187 = arith.mulf %348, %1186 : vector<8x128xf32>
    %1188 = arith.addf %1185, %1187 : vector<8x128xf32>
    %1189 = vector.broadcast %260 : f32 to vector<8x128xf32>
    %1190 = arith.mulf %354, %1189 : vector<8x128xf32>
    %1191 = arith.addf %1188, %1190 : vector<8x128xf32>
    %1192 = vector.broadcast %261 : f32 to vector<8x128xf32>
    %1193 = arith.mulf %360, %1192 : vector<8x128xf32>
    %1194 = arith.addf %1191, %1193 : vector<8x128xf32>
    %1195 = vector.broadcast %262 : f32 to vector<8x128xf32>
    %1196 = arith.mulf %366, %1195 : vector<8x128xf32>
    %1197 = arith.addf %1194, %1196 : vector<8x128xf32>
    %1198 = vector.broadcast %263 : f32 to vector<8x128xf32>
    %1199 = arith.mulf %372, %1198 : vector<8x128xf32>
    %1200 = arith.addf %1197, %1199 : vector<8x128xf32>
    %1201 = vector.broadcast %264 : f32 to vector<8x128xf32>
    %1202 = arith.mulf %378, %1201 : vector<8x128xf32>
    %1203 = arith.addf %1200, %1202 : vector<8x128xf32>
    %1204 = vector.broadcast %265 : f32 to vector<8x128xf32>
    %1205 = arith.mulf %384, %1204 : vector<8x128xf32>
    %1206 = arith.addf %1203, %1205 : vector<8x128xf32>
    %1207 = vector.broadcast %266 : f32 to vector<8x128xf32>
    %1208 = arith.mulf %390, %1207 : vector<8x128xf32>
    %1209 = arith.addf %1206, %1208 : vector<8x128xf32>
    %1210 = vector.broadcast %267 : f32 to vector<8x128xf32>
    %1211 = arith.mulf %396, %1210 : vector<8x128xf32>
    %1212 = arith.addf %1209, %1211 : vector<8x128xf32>
    %1213 = vector.broadcast %268 : f32 to vector<8x128xf32>
    %1214 = arith.mulf %402, %1213 : vector<8x128xf32>
    %1215 = arith.addf %1212, %1214 : vector<8x128xf32>
    %1216 = vector.broadcast %269 : f32 to vector<8x128xf32>
    %1217 = arith.mulf %408, %1216 : vector<8x128xf32>
    %1218 = arith.addf %1215, %1217 : vector<8x128xf32>
    %1219 = vector.broadcast %270 : f32 to vector<8x128xf32>
    %1220 = arith.mulf %414, %1219 : vector<8x128xf32>
    %1221 = arith.addf %1218, %1220 : vector<8x128xf32>
    %1222 = vector.broadcast %271 : f32 to vector<8x128xf32>
    %1223 = arith.mulf %420, %1222 : vector<8x128xf32>
    %1224 = arith.addf %1221, %1223 : vector<8x128xf32>
    %1225 = vector.broadcast %302 : f32 to vector<8x128xf32>
    %1226 = arith.addf %1224, %1225 : vector<8x128xf32>
    %cst_31 = arith.constant 0.000000e+00 : f32
    %1227 = vector.broadcast %cst_31 : f32 to vector<8x128xf32>
    %1228 = arith.maximumf %1226, %1227 : vector<8x128xf32>
    %1229 = vector.broadcast %318 : f32 to vector<8x128xf32>
    %1230 = arith.mulf %1228, %1229 : vector<8x128xf32>
    %1231 = arith.addf %1177, %1230 : vector<8x128xf32>
    %1232 = vector.broadcast %272 : f32 to vector<8x128xf32>
    %1233 = arith.mulf %330, %1232 : vector<8x128xf32>
    %1234 = vector.broadcast %273 : f32 to vector<8x128xf32>
    %1235 = arith.mulf %336, %1234 : vector<8x128xf32>
    %1236 = arith.addf %1233, %1235 : vector<8x128xf32>
    %1237 = vector.broadcast %274 : f32 to vector<8x128xf32>
    %1238 = arith.mulf %342, %1237 : vector<8x128xf32>
    %1239 = arith.addf %1236, %1238 : vector<8x128xf32>
    %1240 = vector.broadcast %275 : f32 to vector<8x128xf32>
    %1241 = arith.mulf %348, %1240 : vector<8x128xf32>
    %1242 = arith.addf %1239, %1241 : vector<8x128xf32>
    %1243 = vector.broadcast %276 : f32 to vector<8x128xf32>
    %1244 = arith.mulf %354, %1243 : vector<8x128xf32>
    %1245 = arith.addf %1242, %1244 : vector<8x128xf32>
    %1246 = vector.broadcast %277 : f32 to vector<8x128xf32>
    %1247 = arith.mulf %360, %1246 : vector<8x128xf32>
    %1248 = arith.addf %1245, %1247 : vector<8x128xf32>
    %1249 = vector.broadcast %278 : f32 to vector<8x128xf32>
    %1250 = arith.mulf %366, %1249 : vector<8x128xf32>
    %1251 = arith.addf %1248, %1250 : vector<8x128xf32>
    %1252 = vector.broadcast %279 : f32 to vector<8x128xf32>
    %1253 = arith.mulf %372, %1252 : vector<8x128xf32>
    %1254 = arith.addf %1251, %1253 : vector<8x128xf32>
    %1255 = vector.broadcast %280 : f32 to vector<8x128xf32>
    %1256 = arith.mulf %378, %1255 : vector<8x128xf32>
    %1257 = arith.addf %1254, %1256 : vector<8x128xf32>
    %1258 = vector.broadcast %281 : f32 to vector<8x128xf32>
    %1259 = arith.mulf %384, %1258 : vector<8x128xf32>
    %1260 = arith.addf %1257, %1259 : vector<8x128xf32>
    %1261 = vector.broadcast %282 : f32 to vector<8x128xf32>
    %1262 = arith.mulf %390, %1261 : vector<8x128xf32>
    %1263 = arith.addf %1260, %1262 : vector<8x128xf32>
    %1264 = vector.broadcast %283 : f32 to vector<8x128xf32>
    %1265 = arith.mulf %396, %1264 : vector<8x128xf32>
    %1266 = arith.addf %1263, %1265 : vector<8x128xf32>
    %1267 = vector.broadcast %284 : f32 to vector<8x128xf32>
    %1268 = arith.mulf %402, %1267 : vector<8x128xf32>
    %1269 = arith.addf %1266, %1268 : vector<8x128xf32>
    %1270 = vector.broadcast %285 : f32 to vector<8x128xf32>
    %1271 = arith.mulf %408, %1270 : vector<8x128xf32>
    %1272 = arith.addf %1269, %1271 : vector<8x128xf32>
    %1273 = vector.broadcast %286 : f32 to vector<8x128xf32>
    %1274 = arith.mulf %414, %1273 : vector<8x128xf32>
    %1275 = arith.addf %1272, %1274 : vector<8x128xf32>
    %1276 = vector.broadcast %287 : f32 to vector<8x128xf32>
    %1277 = arith.mulf %420, %1276 : vector<8x128xf32>
    %1278 = arith.addf %1275, %1277 : vector<8x128xf32>
    %1279 = vector.broadcast %303 : f32 to vector<8x128xf32>
    %1280 = arith.addf %1278, %1279 : vector<8x128xf32>
    %cst_32 = arith.constant 0.000000e+00 : f32
    %1281 = vector.broadcast %cst_32 : f32 to vector<8x128xf32>
    %1282 = arith.maximumf %1280, %1281 : vector<8x128xf32>
    %1283 = vector.broadcast %319 : f32 to vector<8x128xf32>
    %1284 = arith.mulf %1282, %1283 : vector<8x128xf32>
    %1285 = arith.addf %1231, %1284 : vector<8x128xf32>
    %1286 = vector.broadcast %320 : f32 to vector<8x128xf32>
    %1287 = arith.addf %1285, %1286 : vector<8x128xf32>
    %cst_33 = arith.constant 5.000000e-01 : f32
    %1288 = vector.broadcast %cst_33 : f32 to vector<8x128xf32>
    %1289 = arith.mulf %1288, %1287 : vector<8x128xf32>
    %1290 = math.tanh %1289 : vector<8x128xf32>
    %cst_34 = arith.constant 1.000000e+00 : f32
    %1291 = vector.broadcast %cst_34 : f32 to vector<8x128xf32>
    %1292 = arith.addf %1290, %1291 : vector<8x128xf32>
    %cst_35 = arith.constant 5.000000e-01 : f32
    %1293 = vector.broadcast %cst_35 : f32 to vector<8x128xf32>
    %1294 = arith.mulf %1293, %1292 : vector<8x128xf32>
    %cst_36 = arith.constant 9.99999997E-7 : f32
    %1295 = vector.broadcast %cst_36 : f32 to vector<8x128xf32>
    %1296 = arith.addf %1294, %1295 : vector<8x128xf32>
    %1297 = arith.index_cast %322 : i32 to index
    %c0_37 = arith.constant 0 : index
    %1298 = vector.load %arg3[%1297, %c0_37] : memref<8x128xf32, #tpu.memory_space<vmem>>, vector<8x128xf32>
    tpu.vector_store %arg3[%1297, %c0_37], %1296 {strides = array<i32>} : memref<8x128xf32, #tpu.memory_space<vmem>>, vector<8x128xf32>,
    %c1_i32 = arith.constant 1 : i32
    return
  }
  func.func @transform_0(%arg0: i32) -> i32 {
    %c0_i32 = arith.constant 0 : i32
    %c0_i32_0 = arith.constant 0 : i32
    return %c0_i32 : i32
  }
  func.func @transform_1(%arg0: i32) -> (i32, i32) {
    %c0_i32 = arith.constant 0 : i32
    %c0_i32_0 = arith.constant 0 : i32
    return %arg0, %c0_i32 : i32, i32
  }
  func.func @transform_2(%arg0: i32) -> (i32, i32) {
    %c0_i32 = arith.constant 0 : i32
    %c0_i32_0 = arith.constant 0 : i32
    return %arg0, %c0_i32 : i32, i32
  }
}

</mosaic_0001>

<bundles_post_ra>
// kernel: neural_spectral_filter.1
= control target key start
LH: loop header
LB: loop body
LE: loop exit
PB: predicated region body
PF: predicated region fallthrough
CT: control target
= control target key end

     0   :  { %7 = vsyncpa [#allocation3], 0  ;;  %s3004_s0 = inlined_call_operand.vmem [shape: f32[321], index: 0, kind: input, shape index: {}]   ;;  %s3005_s1 = inlined_call_operand.vmem [shape: f32[8,128], index: 1, kind: input, shape index: {}]   ;;  %s3006_s2 = inlined_call_operand.vmem [shape: f32[8,128], index: 2, kind: output, shape index: {}]  }
   0x1   :  { %s14_s11 = sshll.u32 %s3004_s0, 4  ;;  %s15_s11 = int_to_ptr.vmem [resolvable:$true] %s14_s11 }
   0x2   :  { %s1610_s12 = scalar_lea.vmem %s15_s11, 48  ;;  %s1614_s13 = scalar_lea.vmem %s15_s11, 64 }
   0x3   :  { %p1611_p0 = scmp.ne.s32.totalorder %s15_s11, %s1610_s12  ;;  %p1615_p1 = scmp.lt.s32.totalorder %s15_s11, %s15_s11 }
   0x4   :  { %p1616_p2 = scmp.lt.s32.totalorder %s1614_s13, %s1610_s12 }
   0x6   :  { %p1617_p3 = por %p1616_p2, %p1615_p1 }
   0x8   :  { %p1618_p4 = pnand %p1617_p3, %p1611_p0 }
   0xa   :  { %1621 = shalt.err (!%p1618_p4)
}
   0xb   :  { %s1624_s14 = smov [#allocation2]  }
   0xc   :  { %17 = dma.vmem_to_smem %s15_s11, 48, %s1624_s14, [#allocation3]  }
   0xd   :  { %1622 = dma.done.wait [#allocation3], 48  }
   0xe   :  { %1623 = vsyncadd [#allocation3], 4294967248 }
   0xf   :  { %23 = sfence }
  0x10   :  { %s24_s15 = sld [smem:[#allocation2]]  ;;  %s1287_s16 = sld [smem:[#allocation2 + $0x1]]  ;;  %v1676_v0 = vld [vmem:[%s3005_s1] sm:$0xff] }
  0x11   :  { %s1643_s17 = sld [smem:[#allocation2 + $0x2]]  ;;  %s1645_s18 = sld [smem:[#allocation2 + $0x3]] }
  0x12   :  { %s1647_s0 = sld [smem:[#allocation2 + $0x4]]  ;;  %s1649_s19 = sld [smem:[#allocation2 + $0x5]] }
  0x13   :  { %s1651_s20 = sld [smem:[#allocation2 + $0x6]]  ;;  %s1653_s21 = sld [smem:[#allocation2 + $0x10]] }
  0x14   :  { %s1655_s22 = sld [smem:[#allocation2 + $0x11]]  ;;  %s1657_s23 = sld [smem:[#allocation2 + $0x7]] }
  0x15   :  { %s1659_s24 = sld [smem:[#allocation2 + $0x12]]  ;;  %s1661_s25 = sld [smem:[#allocation2 + $0x13]] }
  0x16   :  { %s1663_s26 = sld [smem:[#allocation2 + $0x14]]  ;;  %s1665_s27 = sld [smem:[#allocation2 + $0x8]]  ;;  %v346_v1 = vstv %s24_s15  ;;  %v351_v2 = vstv %s1287_s16 }
  0x17   :  { %s1667_s28 = sld [smem:[#allocation2 + $0x9]]  ;;  %s1669_s29 = sld [smem:[#allocation2 + $0xa]]  ;;  %v356_v3 = vstv %s1643_s17  ;;  %v361_v4 = vstv %s1645_s18  ;;  %v347_v6 = vmul.f32 %v346_v1, %v1676_v0  ;;  %v352_v7 = vmul.f32 %v351_v2, %v1676_v0 }
  0x18   :  { %s1671_s30 = sld [smem:[#allocation2 + $0xb]]  ;;  %s1678_s5 = sld [smem:[#allocation2 + $0xc]]  ;;  %v366_v5 = vstv %s1647_s0  ;;  %v371_v8 = vstv %s1649_s19  ;;  %v357_v12 = vmul.f32 %v356_v3, %v1676_v0  ;;  %v362_v14 = vmul.f32 %v361_v4, %v1676_v0 }
  0x19   :  { %s1680_s6 = sld [smem:[#allocation2 + $0x15]]  ;;  %s1683_s7 = sld [smem:[#allocation2 + $0x16]]  ;;  %v376_v9 = vstv %s1651_s20  ;;  %v348_v10 = vstv %s1653_s21  ;;  %v367_v15 = vmul.f32 %v366_v5, %v1676_v0  ;;  %v372_v19 = vmul.f32 %v371_v8, %v1676_v0 }
  0x1a   :  { %s1685_s8 = sld [smem:[#allocation2 + $0x17]]  ;;  %s1693_s1 = sld [smem:[#allocation2 + $0xd]]  ;;  %v353_v11 = vstv %s1655_s22  ;;  %v381_v16 = vstv %s1657_s23  ;;  %v377_v20 = vmul.f32 %v376_v9, %v1676_v0  ;;  %v349_v21 = vadd.f32 %v348_v10, %v347_v6 }
  0x1b   :  { %s1698_s9 = sld [smem:[#allocation2 + $0x18]]  ;;  %s1700_s10 = sld [smem:[#allocation2 + $0x19]]  ;;  %v358_v13 = vstv %s1659_s24  ;;  %v363_v17 = vstv %s1661_s25  ;;  %v354_v22 = vadd.f32 %v353_v11, %v352_v7  ;;  %v382_v26 = vmul.f32 %v381_v16, %v1676_v0 }
  0x1c   :  { %s1706_s11 = sld [smem:[#allocation2 + $0x20]]  ;;  %s1708_s12 = sld [smem:[#allocation2 + $0x21]]  ;;  %v368_v18 = vstv %s1663_s26  ;;  %v386_v23 = vstv %s1665_s27  ;;  %v359_v25 = vadd.f32 %v358_v13, %v357_v12  ;;  %v364_v29 = vadd.f32 %v363_v17, %v362_v14 }
  0x1d   :  { %s1714_s13 = sld [smem:[#allocation2 + $0x22]]  ;;  %s1716_s14 = sld [smem:[#allocation2 + $0x23]]  ;;  %v391_v24 = vstv %s1667_s28  ;;  %v396_v27 = vstv %s1669_s29  ;;  %v369_v30 = vadd.f32 %v368_v18, %v367_v15  ;;  %v387_v35 = vmul.f32 %v386_v23, %v1676_v0 }
  0x1e   :  { %s1720_s15 = sld [smem:[#allocation2 + $0x1a]]  ;;  %v401_v28 = vstv %s1671_s30  ;;  %s1725_s16 = sld [smem:[#allocation2 + $0x1b]]  ;;  %v406_v32 = vstv %s1678_s5  ;;  %v392_v36 = vmul.f32 %v391_v24, %v1676_v0  ;;  %v1739_v37 = vmax.f32 %v349_v21, 0.0 }
  0x1f   :  { %s1727_s17 = sld [smem:[#allocation2 + $0x24]]  ;;  %v373_v31 = vstv %s1680_s6  ;;  %s1731_s18 = sld [smem:[#allocation2 + $0xe]]  ;;  %v378_v33 = vstv %s1683_s7  ;;  %v1741_v38 = vmax.f32 %v354_v22, 0.0  ;;  %v397_v39 = vmul.f32 %v396_v27, %v1676_v0 }
  0x20   :  { %s1733_s0 = sld [smem:[#allocation2 + $0x25]]  ;;  %v383_v34 = vstv %s1685_s8  ;;  %v402_v40 = vmul.f32 %v401_v28, %v1676_v0  ;;  %s1745_s19 = sld [smem:[#allocation2 + $0x1c]]  ;;  %v1749_v41 = vmax.f32 %v359_v25, 0.0  ;;  %v374_v42 = vadd.f32 %v373_v31, %v372_v19 }
  0x21   :  { %s1747_s20 = sld [smem:[#allocation2 + $0x26]]  ;;  %v1752_v43 = vmul.f32 %v406_v32, %v1676_v0  ;;  %v411_v44 = vstv %s1693_s1  ;;  %s1755_s21 = sld [smem:[#allocation2 + $0x1d]]  ;;  %v1759_v45 = vmax.f32 %v364_v29, 0.0  ;;  %v1761_v46 = vmax.f32 %v369_v30, 0.0 }
  0x22   :  { %s1757_s22 = sld [smem:[#allocation2 + $0x27]]  ;;  %v379_v47 = vadd.f32 %v378_v33, %v377_v20  ;;  %v384_v48 = vadd.f32 %v383_v34, %v382_v26  ;;  %s1765_s24 = sld [smem:[#allocation2 + $0x1e]]  ;;  %v388_v49 = vstv %s1698_s9  ;;  %v393_v50 = vstv %s1700_s10 }
  0x23   :  { %s1763_s23 = sld [smem:[#allocation2 + $0xf]]  ;;  %v426_v51 = vstv %s1706_s11  ;;  %v428_v52 = vstv %s1708_s12  ;;  %s1771_s25 = sld [smem:[#allocation2 + $0x28]]  ;;  %v431_v55 = vstv %s1714_s13  ;;  %v434_v56 = vstv %s1716_s14 }
  0x24   :  { %s1773_s26 = sld [smem:[#allocation2 + $0x30]]  ;;  %v427_v53 = vmul.f32 %v426_v51, %v1739_v37  ;;  %v429_v54 = vmul.f32 %v428_v52, %v1741_v38  ;;  %s1779_s27 = sld [smem:[#allocation2 + $0x31]]  ;;  %v1783_v57 = vmax.f32 %v374_v42, 0.0  ;;  %v398_v58 = vstv %s1720_s15 }
  0x25   :  { %s1781_s28 = sld [smem:[#allocation2 + $0x32]]  ;;  %v412_v59 = vmul.f32 %v411_v44, %v1676_v0  ;;  %v432_v60 = vmul.f32 %v431_v55, %v1749_v41  ;;  %v403_v61 = vstv %s1725_s16  ;;  %v435_v63 = vmul.f32 %v434_v56, %v1759_v45  ;;  %s1791_s29 = sld [smem:[#allocation2 + $0x33]] }
  0x26   :  { %v430_v62 = vadd.f32 %v429_v54, %v427_v53  ;;  %v437_v1 = vstv %s1727_s17  ;;  %s1793_s30 = sld [smem:[#allocation2 + $0x34]]  ;;  %v389_v2 = vadd.f32 %v388_v49, %v387_v35  ;;  %v394_v3 = vadd.f32 %v393_v50, %v392_v36  ;;  %s1802_s3 = sld [smem:[#allocation2 + $0x35]] }
  0x27   :  { %v416_v4 = vstv %s1731_s18  ;;  %v440_v5 = vstv %s1733_s0  ;;  %v1797_v6 = vmax.f32 %v379_v47, 0.0  ;;  %v1799_v7 = vmax.f32 %v384_v48, 0.0  ;;  %s1806_s4 = sld [smem:[#allocation2 + $0x29]]  ;;  %s1811_s5 = sld [smem:[#allocation2 + $0x1f]] }
  0x28   :  { %v433_v8 = vadd.f32 %v432_v60, %v430_v62  ;;  %v438_v9 = vmul.f32 %v437_v1, %v1761_v46  ;;  %v399_v10 = vadd.f32 %v398_v58, %v397_v39  ;;  %v404_v11 = vadd.f32 %v403_v61, %v402_v40  ;;  %s1813_s6 = sld [smem:[#allocation2 + $0x2a]]  ;;  %s1821_s7 = sld [smem:[#allocation2 + $0x36]] }
  0x29   :  { %v408_v12 = vstv %s1745_s19  ;;  %v443_v13 = vstv %s1747_s20  ;;  %v413_v14 = vstv %s1755_s21  ;;  %v441_v16 = vmul.f32 %v440_v5, %v1783_v57  ;;  %s1830_s8 = sld [smem:[#allocation2 + $0x40]]  ;;  %s1835_s1 = sld [smem:[#allocation2 + $0x41]] }
  0x2a   :  { %v436_v15 = vadd.f32 %v435_v63, %v433_v8  ;;  %v446_v17 = vstv %s1757_s22  ;;  %v1815_v18 = vmax.f32 %v389_v2, 0.0  ;;  %v1817_v19 = vmax.f32 %v394_v3, 0.0  ;;  %s1837_s9 = sld [smem:[#allocation2 + $0x42]]  ;;  %s1842_s10 = sld [smem:[#allocation2 + $0x2b]] }
  0x2b   :  { %v417_v20 = vmul.f32 %v416_v4, %v1676_v0  ;;  %v418_v21 = vstv %s1765_s24  ;;  %v421_v22 = vstv %s1763_s23  ;;  %v444_v24 = vmul.f32 %v443_v13, %v1797_v6  ;;  %s1844_s11 = sld [smem:[#allocation2 + $0x37]]  ;;  %s1849_s12 = sld [smem:[#allocation2 + $0x2c]] }
  0x2c   :  { %v439_v23 = vadd.f32 %v438_v9, %v436_v15  ;;  %v449_v25 = vstv %s1771_s25  ;;  %v447_v26 = vmul.f32 %v446_v17, %v1799_v7  ;;  %v479_v27 = vstv %s1773_s26  ;;  %s1851_s13 = sld [smem:[#allocation2 + $0x43]]  ;;  %s1856_s14 = sld [smem:[#allocation2 + $0x38]] }
  0x2d   :  { %v481_v28 = vstv %s1779_s27  ;;  %v484_v29 = vstv %s1781_s28  ;;  %v480_v31 = vmul.f32 %v479_v27, %v1739_v37  ;;  %v409_v34 = vadd.f32 %v408_v12, %v1752_v43  ;;  %s1858_s15 = sld [smem:[#allocation2 + $0x44]]  ;;  %s1862_s16 = sld [smem:[#allocation2 + $0x2d]] }
  0x2e   :  { %v442_v30 = vadd.f32 %v441_v16, %v439_v23  ;;  %v482_v32 = vmul.f32 %v481_v28, %v1741_v38  ;;  %v485_v33 = vmul.f32 %v484_v29, %v1749_v41  ;;  %v414_v35 = vadd.f32 %v413_v14, %v412_v59  ;;  %s1866_s17 = sld [smem:[#allocation2 + $0x2e]]  ;;  %s1868_s18 = sld [smem:[#allocation2 + $0x45]] }
  0x2f   :  { %v487_v36 = vstv %s1791_s29  ;;  %v490_v39 = vstv %s1793_s30  ;;  %v1846_v40 = vmax.f32 %v399_v10, 0.0  ;;  %v419_v43 = vadd.f32 %v418_v21, %v417_v20  ;;  %s1874_s0 = sld [smem:[#allocation2 + $0x2f]]  ;;  %s1881_s19 = sld [smem:[#allocation2 + $0x39]] }
  0x30   :  { %v445_v42 = vadd.f32 %v444_v24, %v442_v30  ;;  %v483_v44 = vadd.f32 %v482_v32, %v480_v31  ;;  %v488_v47 = vmul.f32 %v487_v36, %v1759_v45  ;;  %v422_v48 = vmul.f32 %v421_v22, %v1676_v0  ;;  %s1883_s20 = sld [smem:[#allocation2 + $0x3a]]  ;;  %s1888_s21 = sld [smem:[#allocation2 + $0x46]] }
  0x31   :  { %v450_v49 = vmul.f32 %v449_v25, %v1815_v18  ;;  %v493_v50 = vstv %s1802_s3  ;;  %v452_v52 = vstv %s1806_s4  ;;  %v491_v54 = vmul.f32 %v490_v39, %v1761_v46  ;;  %s1897_s22 = sld [smem:[#allocation2 + $0x3b]]  ;;  %s1899_s23 = sld [smem:[#allocation2 + $0x3c]] }
  0x32   :  { %v448_v51 = vadd.f32 %v447_v26, %v445_v42  ;;  %v486_v53 = vadd.f32 %v485_v33, %v483_v44  ;;  %v423_v55 = vstv %s1811_s5  ;;  %v455_v56 = vstv %s1813_s6  ;;  %s1904_s24 = sld [smem:[#allocation2 + $0x47]]  ;;  %s1911_s25 = sld [smem:[#allocation2 + $0x50]] }
  0x33   :  { %v1870_v0 = vmax.f32 %v404_v11, 0.0  ;;  %v494_v59 = vmul.f32 %v493_v50, %v1783_v57  ;;  %v496_v60 = vstv %s1821_s7  ;;  %v1876_v61 = vmax.f32 %v409_v34, 0.0  ;;  %s1913_s26 = sld [smem:[#allocation2 + $0x51]]  ;;  %s1917_s27 = sld [smem:[#allocation2 + $0x3d]] }
  0x34   :  { %v489_v58 = vadd.f32 %v488_v47, %v486_v53  ;;  %v1878_v62 = vmax.f32 %v414_v35, 0.0  ;;  %v451_v63 = vadd.f32 %v450_v49, %v448_v51  ;;  %v453_v1 = vmul.f32 %v452_v52, %v1817_v19  ;;  %s1919_s28 = sld [smem:[#allocation2 + $0x52]]  ;;  %s1925_s29 = sld [smem:[#allocation2 + $0x53]] }
  0x35   :  { %v1885_v2 = vmax.f32 %v419_v43, 0.0  ;;  %v424_v3 = vadd.f32 %v423_v55, %v422_v48  ;;  %v456_v4 = vmul.f32 %v455_v56, %v1846_v40  ;;  %v497_v8 = vmul.f32 %v496_v60, %v1797_v6  ;;  %s1927_s30 = sld [smem:[#allocation2 + $0x54]]  ;;  %s1934_s3 = sld [smem:[#allocation2 + $0x48]] }
  0x36   :  { %v492_v5 = vadd.f32 %v491_v54, %v489_v58  ;;  %v532_v9 = vstv %s1830_s8  ;;  %v534_v10 = vstv %s1835_s1  ;;  %v537_v11 = vstv %s1837_s9  ;;  %s1936_s4 = sld [smem:[#allocation2 + $0x55]]  ;;  %s1940_s5 = sld [smem:[#allocation2 + $0x3e]] }
  0x37   :  { %v458_v12 = vstv %s1842_s10  ;;  %v499_v14 = vstv %s1844_s11  ;;  %v533_v15 = vmul.f32 %v532_v9, %v1739_v37  ;;  %v454_v16 = vadd.f32 %v453_v1, %v451_v63  ;;  %s1942_s6 = sld [smem:[#allocation2 + $0x3f]]  ;;  %s1952_s7 = sld [smem:[#allocation2 + $0x49]] }
  0x38   :  { %v495_v13 = vadd.f32 %v494_v59, %v492_v5  ;;  %v535_v17 = vmul.f32 %v534_v10, %v1741_v38  ;;  %v538_v20 = vmul.f32 %v537_v11, %v1749_v41  ;;  %v540_v21 = vstv %s1851_s13  ;;  %s1954_s8 = sld [smem:[#allocation2 + $0x56]]  ;;  %s1962_s1 = sld [smem:[#allocation2 + $0x4a]] }
  0x39   :  { %v1906_v22 = vmax.f32 %v424_v3, 0.0  ;;  %v461_v23 = vstv %s1849_s12  ;;  %v502_v24 = vstv %s1856_s14  ;;  %v543_v25 = vstv %s1858_s15  ;;  %s1964_s9 = sld [smem:[#allocation2 + $0x57]]  ;;  %s1968_s10 = sld [smem:[#allocation2 + $0x4b]] }
  0x3a   :  { %v498_v26 = vadd.f32 %v497_v8, %v495_v13  ;;  %v500_v27 = vmul.f32 %v499_v14, %v1799_v7  ;;  %v536_v28 = vadd.f32 %v535_v17, %v533_v15  ;;  %v541_v29 = vmul.f32 %v540_v21, %v1759_v45  ;;  %s1974_s11 = sld [smem:[#allocation2 + $0x4c]]  ;;  %s1976_s12 = sld [smem:[#allocation2 + $0x58]] }
  0x3b   :  { %v459_v30 = vmul.f32 %v458_v12, %v1870_v0  ;;  %v464_v31 = vstv %s1862_s16  ;;  %v467_v32 = vstv %s1866_s17  ;;  %v546_v33 = vstv %s1868_s18  ;;  %s1984_s13 = sld [smem:[#allocation2 + $0x60]]  ;;  %s1986_s14 = sld [smem:[#allocation2 + $0x61]] }
  0x3c   :  { %v457_v34 = vadd.f32 %v456_v4, %v454_v16  ;;  %v470_v35 = vstv %s1874_s0  ;;  %v539_v36 = vadd.f32 %v538_v20, %v536_v28  ;;  %v544_v39 = vmul.f32 %v543_v25, %v1761_v46  ;;  %s1990_s15 = sld [smem:[#allocation2 + $0x59]]  ;;  %s1992_s16 = sld [smem:[#allocation2 + $0x62]] }
  0x3d   :  { %v503_v42 = vmul.f32 %v502_v24, %v1815_v18  ;;  %v505_v44 = vstv %s1881_s19  ;;  %v508_v47 = vstv %s1883_s20  ;;  %v501_v43 = vadd.f32 %v500_v27, %v498_v26  ;;  %s1999_s17 = sld [smem:[#allocation2 + $0x63]]  ;;  %s2001_s18 = sld [smem:[#allocation2 + $0x64]] }
  0x3e   :  { %v542_v48 = vadd.f32 %v541_v29, %v539_v36  ;;  %v547_v49 = vmul.f32 %v546_v33, %v1783_v57  ;;  %v549_v50 = vstv %s1888_s21  ;;  %v462_v51 = vmul.f32 %v461_v23, %v1876_v61  ;;  %s2011_s0 = sld [smem:[#allocation2 + $0x65]]  ;;  %s2024_s20 = sld [smem:[#allocation2 + $0x5a]] }
  0x3f   :  { %v465_v52 = vmul.f32 %v464_v31, %v1878_v62  ;;  %v1947_v53 = vmul.f32 %v467_v32, %v1885_v2  ;;  %v1950_v54 = vmul.f32 %v470_v35, %v1906_v22  ;;  %v460_v55 = vadd.f32 %v459_v30, %v457_v34  ;;  %s2015_s19 = sld [smem:[#allocation2 + $0x4d]]  ;;  %s2026_s21 = sld [smem:[#allocation2 + $0x66]] }
  0x40   :  { %v511_v56 = vstv %s1897_s22  ;;  %v514_v58 = vstv %s1899_s23  ;;  %v545_v59 = vadd.f32 %v544_v39, %v542_v48  ;;  %v506_v60 = vmul.f32 %v505_v44, %v1817_v19  ;;  %s2032_s22 = sld [smem:[#allocation2 + $0x4e]]  ;;  %s2034_s23 = sld [smem:[#allocation2 + $0x4f]] }
  0x41   :  { %v509_v63 = vmul.f32 %v508_v47, %v1846_v40  ;;  %v550_v1 = vmul.f32 %v549_v50, %v1797_v6  ;;  %v552_v3 = vstv %s1904_s24  ;;  %v504_v4 = vadd.f32 %v503_v42, %v501_v43  ;;  %s2039_s24 = sld [smem:[#allocation2 + $0x5b]] }
  0x42   :  { %v548_v5 = vadd.f32 %v547_v49, %v545_v59  ;;  %v585_v8 = vstv %s1911_s25  ;;  %v587_v9 = vstv %s1913_s26  ;;  %v512_v10 = vmul.f32 %v511_v56, %v1870_v0  ;;  %s2041_s25 = sld [smem:[#allocation2 + $0x67]]  ;;  %s2052_s26 = sld [smem:[#allocation2 + $0x5c]] }
  0x43   :  { %v517_v11 = vstv %s1917_s27  ;;  %v586_v12 = vmul.f32 %v585_v8, %v1739_v37  ;;  %v588_v13 = vmul.f32 %v587_v9, %v1741_v38  ;;  %v463_v14 = vadd.f32 %v462_v51, %v460_v55  ;;  %s2054_s27 = sld [smem:[#allocation2 + $0x68]] }
  0x44   :  { %v590_v15 = vstv %s1919_s28  ;;  %v593_v16 = vstv %s1925_s29  ;;  %v596_v17 = vstv %s1927_s30  ;;  %v553_v20 = vmul.f32 %v552_v3, %v1799_v7  ;;  %s2058_s28 = sld [smem:[#allocation2 + $0x70]]  ;;  %s2060_s29 = sld [smem:[#allocation2 + $0x71]] }
  0x45   :  { %v589_v21 = vadd.f32 %v588_v13, %v586_v12  ;;  %v591_v23 = vmul.f32 %v590_v15, %v1749_v41  ;;  %v594_v24 = vmul.f32 %v593_v16, %v1759_v45  ;;  %v507_v25 = vadd.f32 %v506_v60, %v504_v4  ;;  %s2067_s30 = sld [smem:[#allocation2 + $0x72]] }
  0x46   :  { %v551_v26 = vadd.f32 %v550_v1, %v548_v5  ;;  %v555_v27 = vstv %s1934_s3  ;;  %v599_v28 = vstv %s1936_s4  ;;  %v1995_v29 = vmul.f32 %v514_v58, %v1876_v61  ;;  %s2071_s3 = sld [smem:[#allocation2 + $0x73]]  ;;  %s2073_s4 = sld [smem:[#allocation2 + $0x74]] }
  0x47   :  { %v520_v30 = vstv %s1940_s5  ;;  %v592_v31 = vadd.f32 %v591_v23, %v589_v21  ;;  %v597_v32 = vmul.f32 %v596_v17, %v1761_v46  ;;  %v2004_v33 = vmul.f32 %v517_v11, %v1878_v62  ;;  %s2079_s5 = sld [smem:[#allocation2 + $0x5d]] }
  0x48   :  { %v523_v34 = vstv %s1942_s6  ;;  %v558_v35 = vstv %s1952_s7  ;;  %v602_v36 = vstv %s1954_s8  ;;  %v466_v39 = vadd.f32 %v465_v52, %v463_v14  ;;  %s2081_s6 = sld [smem:[#allocation2 + $0x69]]  ;;  %s2086_s7 = sld [smem:[#allocation2 + $0x5e]] }
  0x49   :  { %v556_v42 = vmul.f32 %v555_v27, %v1815_v18  ;;  %v595_v44 = vadd.f32 %v594_v24, %v592_v31  ;;  %v600_v47 = vmul.f32 %v599_v28, %v1783_v57  ;;  %v510_v43 = vadd.f32 %v509_v63, %v507_v25  ;;  %s2088_s8 = sld [smem:[#allocation2 + $0x75]] }
  0x4a   :  { %v554_v48 = vadd.f32 %v553_v20, %v551_v26  ;;  %v561_v49 = vstv %s1962_s1  ;;  %v605_v50 = vstv %s1964_s9  ;;  %v2018_v51 = vmul.f32 %v520_v30, %v1885_v2  ;;  %s2097_s1 = sld [smem:[#allocation2 + $0x76]]  ;;  %s2109_s9 = sld [smem:[#allocation2 + $0x5f]] }
  0x4b   :  { %v2021_v52 = vmul.f32 %v523_v34, %v1906_v22  ;;  %v598_v55 = vadd.f32 %v597_v32, %v595_v44  ;;  %v603_v56 = vmul.f32 %v602_v36, %v1797_v6  ;;  %v559_v58 = vmul.f32 %v558_v35, %v1817_v19 }
  0x4c   :  { %v564_v59 = vstv %s1968_s10  ;;  %v567_v60 = vstv %s1974_s11  ;;  %v608_v63 = vstv %s1976_s12  ;;  %v469_v1 = vadd.f32 %v1947_v53, %v466_v39  ;;  %s2111_s10 = sld [smem:[#allocation2 + $0x6a]]  ;;  %s2116_s11 = sld [smem:[#allocation2 + $0x6b]] }
  0x4d   :  { %v562_v3 = vmul.f32 %v561_v49, %v1846_v40  ;;  %v601_v4 = vadd.f32 %v600_v47, %v598_v55  ;;  %v606_v5 = vmul.f32 %v605_v50, %v1799_v7  ;;  %v513_v8 = vadd.f32 %v512_v10, %v510_v43  ;;  %s2118_s12 = sld [smem:[#allocation2 + $0x77]] }
  0x4e   :  { %v557_v9 = vadd.f32 %v556_v42, %v554_v48  ;;  %v638_v11 = vstv %s1984_s13  ;;  %v640_v12 = vstv %s1986_s14  ;;  %v609_v14 = vmul.f32 %v608_v63, %v1815_v18  ;;  %s2125_s13 = sld [smem:[#allocation2 + $0x6c]]  ;;  %s2131_s14 = sld [smem:[#allocation2 + $0x78]] }
  0x4f   :  { %v604_v13 = vadd.f32 %v603_v56, %v601_v4  ;;  %v639_v53 = vmul.f32 %v638_v11, %v1739_v37  ;;  %v641_v15 = vmul.f32 %v640_v12, %v1741_v38  ;;  %v611_v16 = vstv %s1990_s15  ;;  %s2133_s15 = sld [smem:[#allocation2 + $0x80]] }
  0x50   :  { %v643_v17 = vstv %s1992_s16  ;;  %v646_v20 = vstv %s1999_s17  ;;  %v649_v21 = vstv %s2001_s18  ;;  %v560_v26 = vadd.f32 %v559_v58, %v557_v9  ;;  %s2137_s16 = sld [smem:[#allocation2 + $0x81]]  ;;  %s2139_s17 = sld [smem:[#allocation2 + $0x82]] }
  0x51   :  { %v607_v10 = vadd.f32 %v606_v5, %v604_v13  ;;  %v642_v23 = vadd.f32 %v641_v15, %v639_v53  ;;  %v644_v24 = vmul.f32 %v643_v17, %v1749_v41  ;;  %v647_v25 = vmul.f32 %v646_v20, %v1759_v45  ;;  %s2147_s18 = sld [smem:[#allocation2 + $0x83]] }
  0x52   :  { %v565_v27 = vmul.f32 %v564_v59, %v1870_v0  ;;  %v2064_v28 = vmul.f32 %v567_v60, %v1876_v61  ;;  %v652_v30 = vstv %s2011_s0  ;;  %v612_v32 = vmul.f32 %v611_v16, %v1817_v19  ;;  %s2149_s0 = sld [smem:[#allocation2 + $0x84]] }
  0x53   :  { %v610_v31 = vadd.f32 %v609_v14, %v607_v10  ;;  %v645_v34 = vadd.f32 %v644_v24, %v642_v23  ;;  %v650_v35 = vmul.f32 %v649_v21, %v1761_v46  ;;  %v516_v36 = vadd.f32 %v1995_v29, %v513_v8 }
  0x54   :  { %v570_v39 = vstv %s2015_s19  ;;  %v614_v42 = vstv %s2024_s20  ;;  %v655_v44 = vstv %s2026_s21  ;;  %v573_v47 = vstv %s2032_s22  ;;  %s2154_s19 = sld [smem:[#allocation2 + $0x6d]]  ;;  %s2159_s20 = sld [smem:[#allocation2 + $0x79]] }
  0x55   :  { %v576_v43 = vstv %s2034_s23  ;;  %v648_v48 = vadd.f32 %v647_v25, %v645_v34  ;;  %v653_v49 = vmul.f32 %v652_v30, %v1783_v57  ;;  %v2091_v50 = vadd.f32 %v1950_v54, %v469_v1  ;;  %s2161_s21 = sld [smem:[#allocation2 + $0x85]]  ;;  %s2169_s22 = sld [smem:[#allocation2 + $0x6e]] }
  0x56   :  { %v563_v29 = vadd.f32 %v562_v3, %v560_v26  ;;  %v617_v55 = vstv %s2039_s24  ;;  %v658_v56 = vstv %s2041_s25  ;;  %v613_v58 = vadd.f32 %v612_v32, %v610_v31  ;;  %s2171_s23 = sld [smem:[#allocation2 + $0x6f]]  ;;  %s2175_s24 = sld [smem:[#allocation2 + $0x86]] }
  0x57   :  { %v615_v59 = vmul.f32 %v614_v42, %v1846_v40  ;;  %v651_v60 = vadd.f32 %v650_v35, %v648_v48  ;;  %v656_v63 = vmul.f32 %v655_v44, %v1797_v6  ;;  %v519_v4 = vadd.f32 %v2004_v33, %v516_v36  ;;  %s2185_s25 = sld [smem:[#allocation2 + $0x7a]] }
  0x58   :  { %v2101_v54 = vmul.f32 %v570_v39, %v1878_v62  ;;  %v2104_v1 = vmul.f32 %v573_v47, %v1885_v2  ;;  %v2107_v3 = vmul.f32 %v576_v43, %v1906_v22  ;;  %v618_v5 = vmul.f32 %v617_v55, %v1870_v0 }
  0x59   :  { %v654_v8 = vadd.f32 %v653_v49, %v651_v60  ;;  %v659_v33 = vmul.f32 %v658_v56, %v1799_v7  ;;  %v661_v9 = vstv %s2054_s27  ;;  %v566_v11 = vadd.f32 %v565_v27, %v563_v29  ;;  %s2195_s27 = sld [smem:[#allocation2 + $0x87]] }
  0x5a   :  { %v620_v12 = vstv %s2052_s26  ;;  %v691_v13 = vstv %s2058_s28  ;;  %v693_v14 = vstv %s2060_s29  ;;  %v616_v53 = vadd.f32 %v615_v59, %v613_v58  ;;  %s2191_s26 = sld [smem:[#allocation2 + $0x7b]]  ;;  %s2197_s28 = sld [smem:[#allocation2 + $0x90]] }
  0x5b   :  { %v657_v15 = vadd.f32 %v656_v63, %v654_v8  ;;  %v692_v16 = vmul.f32 %v691_v13, %v1739_v37  ;;  %v694_v17 = vmul.f32 %v693_v14, %v1741_v38  ;;  %v662_v20 = vmul.f32 %v661_v9, %v1815_v18  ;;  %s2204_s29 = sld [smem:[#allocation2 + $0x91]] }
  0x5c   :  { %v696_v21 = vstv %s2067_s30  ;;  %v699_v10 = vstv %s2071_s3  ;;  %v702_v23 = vstv %s2073_s4  ;;  %v664_v25 = vstv %s2081_s6  ;;  %s2206_s30 = sld [smem:[#allocation2 + $0x92]]  ;;  %s2212_s3 = sld [smem:[#allocation2 + $0x7c]] }
  0x5d   :  { %v660_v24 = vadd.f32 %v659_v33, %v657_v15  ;;  %v695_v26 = vadd.f32 %v694_v17, %v692_v16  ;;  %v697_v27 = vmul.f32 %v696_v21, %v1749_v41  ;;  %v623_v30 = vstv %s2079_s5  ;;  %s2214_s4 = sld [smem:[#allocation2 + $0x88]]  ;;  %s2219_s5 = sld [smem:[#allocation2 + $0x93]] }
  0x5e   :  { %v626_v31 = vstv %s2086_s7  ;;  %v700_v32 = vmul.f32 %v699_v10, %v1759_v45  ;;  %v705_v34 = vstv %s2088_s8  ;;  %v619_v35 = vadd.f32 %v618_v5, %v616_v53  ;;  %s2221_s6 = sld [smem:[#allocation2 + $0x94]]  ;;  %s2225_s7 = sld [smem:[#allocation2 + $0x7d]] }
  0x5f   :  { %v621_v36 = vmul.f32 %v620_v12, %v1876_v61  ;;  %v698_v39 = vadd.f32 %v697_v27, %v695_v26  ;;  %v703_v42 = vmul.f32 %v702_v23, %v1761_v46  ;;  %v569_v44 = vadd.f32 %v2064_v28, %v566_v11  ;;  %s2227_s8 = sld [smem:[#allocation2 + $0x7e]] }
  0x60   :  { %v663_v47 = vadd.f32 %v662_v20, %v660_v24  ;;  %v665_v43 = vmul.f32 %v664_v25, %v1817_v19  ;;  %v708_v48 = vstv %s2097_s1  ;;  %v629_v49 = vstv %s2109_s9  ;;  %s2231_s1 = sld [smem:[#allocation2 + $0x7f]]  ;;  %s2233_s9 = sld [smem:[#allocation2 + $0x95]] }
  0x61   :  { %v667_v29 = vstv %s2111_s10  ;;  %v701_v55 = vadd.f32 %v700_v32, %v698_v39  ;;  %v706_v56 = vmul.f32 %v705_v34, %v1783_v57  ;;  %v2164_v58 = vadd.f32 %v2018_v51, %v519_v4  ;;  %s2247_s10 = sld [smem:[#allocation2 + $0x89]] }
  0x62   :  { %v624_v28 = vmul.f32 %v623_v30, %v1878_v62  ;;  %v670_v59 = vstv %s2116_s11  ;;  %v711_v60 = vstv %s2118_s12  ;;  %v622_v63 = vadd.f32 %v621_v36, %v619_v35  ;;  %s2249_s11 = sld [smem:[#allocation2 + $0x96]]  ;;  %s2256_s12 = sld [smem:[#allocation2 + $0x8a]] }
  0x63   :  { %v627_v5 = vmul.f32 %v626_v31, %v1885_v2  ;;  %v704_v8 = vadd.f32 %v703_v42, %v701_v55  ;;  %v709_v51 = vmul.f32 %v708_v48, %v1797_v6  ;;  %v572_v4 = vadd.f32 %v2101_v54, %v569_v44 }
  0x64   :  { %v2179_v33 = vmul.f32 %v629_v49, %v1906_v22  ;;  %v666_v9 = vadd.f32 %v665_v43, %v663_v47  ;;  %v668_v11 = vmul.f32 %v667_v29, %v1846_v40  ;;  %v671_v12 = vmul.f32 %v670_v59, %v1870_v0 }
  0x65   :  { %v673_v13 = vstv %s2125_s13  ;;  %v707_v14 = vadd.f32 %v706_v56, %v704_v8  ;;  %v712_v53 = vmul.f32 %v711_v60, %v1799_v7  ;;  %v714_v15 = vstv %s2131_s14  ;;  %s2262_s13 = sld [smem:[#allocation2 + $0x97]]  ;;  %s2271_s14 = sld [smem:[#allocation2 + $0x8b]] }
  0x66   :  { %v744_v16 = vstv %s2133_s15  ;;  %v746_v17 = vstv %s2137_s16  ;;  %v749_v54 = vstv %s2139_s17  ;;  %v625_v20 = vadd.f32 %v624_v28, %v622_v63  ;;  %s2273_s15 = sld [smem:[#allocation2 + $0xa0]]  ;;  %s2280_s17 = sld [smem:[#allocation2 + $0xa1]] }
  0x67   :  { %v710_v21 = vadd.f32 %v709_v51, %v707_v14  ;;  %v745_v10 = vmul.f32 %v744_v16, %v1739_v37  ;;  %v747_v23 = vmul.f32 %v746_v17, %v1741_v38  ;;  %v669_v24 = vadd.f32 %v668_v11, %v666_v9  ;;  %s2278_s16 = sld [smem:[#allocation2 + $0x98]] }
  0x68   :  { %v750_v25 = vmul.f32 %v749_v54, %v1749_v41  ;;  %v752_v26 = vstv %s2147_s18  ;;  %v755_v27 = vstv %s2149_s0  ;;  %v715_v31 = vmul.f32 %v714_v15, %v1815_v18  ;;  %s2284_s18 = sld [smem:[#allocation2 + $0xa2]]  ;;  %s2286_s0 = sld [smem:[#allocation2 + $0xa3]] }
  0x69   :  { %v713_v30 = vadd.f32 %v712_v53, %v710_v21  ;;  %v748_v32 = vadd.f32 %v747_v23, %v745_v10  ;;  %v753_v34 = vmul.f32 %v752_v26, %v1759_v45  ;;  %v575_v35 = vadd.f32 %v2104_v1, %v572_v4 }
  0x6a   :  { %v676_v36 = vstv %s2154_s19  ;;  %v717_v39 = vstv %s2159_s20  ;;  %v758_v42 = vstv %s2161_s21  ;;  %v679_v44 = vstv %s2169_s22  ;;  %s2292_s19 = sld [smem:[#allocation2 + $0x8c]]  ;;  %s2296_s20 = sld [smem:[#allocation2 + $0x8d]] }
  0x6b   :  { %v682_v47 = vstv %s2171_s23  ;;  %v751_v43 = vadd.f32 %v750_v25, %v748_v32  ;;  %v756_v48 = vmul.f32 %v755_v27, %v1761_v46  ;;  %v628_v49 = vadd.f32 %v627_v5, %v625_v20  ;;  %s2298_s21 = sld [smem:[#allocation2 + $0xa4]]  ;;  %s2303_s22 = sld [smem:[#allocation2 + $0x8e]] }
  0x6c   :  { %v672_v29 = vadd.f32 %v671_v12, %v669_v24  ;;  %v674_v1 = vmul.f32 %v673_v13, %v1876_v61  ;;  %v761_v55 = vstv %s2175_s24  ;;  %v716_v56 = vadd.f32 %v715_v31, %v713_v30  ;;  %s2305_s23 = sld [smem:[#allocation2 + $0x99]]  ;;  %s2309_s24 = sld [smem:[#allocation2 + $0x8f]] }
  0x6d   :  { %v718_v28 = vmul.f32 %v717_v39, %v1817_v19  ;;  %v754_v59 = vadd.f32 %v753_v34, %v751_v43  ;;  %v759_v60 = vmul.f32 %v758_v42, %v1783_v57  ;;  %v2237_v63 = vadd.f32 %v2021_v52, %v2164_v58 }
  0x6e   :  { %v2240_v5 = vadd.f32 %v2107_v3, %v575_v35  ;;  %v677_v8 = vmul.f32 %v676_v36, %v1878_v62  ;;  %v720_v51 = vstv %s2185_s25  ;;  %v680_v4 = vmul.f32 %v679_v44, %v1885_v2  ;;  %s2311_s25 = sld [smem:[#allocation2 + $0xa5]] }
  0x6f   :  { %v723_v9 = vstv %s2191_s26  ;;  %v757_v11 = vadd.f32 %v756_v48, %v754_v59  ;;  %v762_v12 = vmul.f32 %v761_v55, %v1797_v6  ;;  %v675_v52 = vadd.f32 %v674_v1, %v672_v29  ;;  %s2323_s26 = sld [smem:[#allocation2 + $0xa6]] }
  0x70   :  { %v2252_v58 = vmul.f32 %v682_v47, %v1906_v22  ;;  %v764_v3 = vstv %s2195_s27  ;;  %v797_v13 = vstv %s2197_s28  ;;  %v2259_v14 = vadd.f32 %v2179_v33, %v628_v49  ;;  %s2331_s27 = sld [smem:[#allocation2 + $0x9a]]  ;;  %s2335_s28 = sld [smem:[#allocation2 + $0x9b]] }
  0x71   :  { %v719_v53 = vadd.f32 %v718_v28, %v716_v56  ;;  %v721_v15 = vmul.f32 %v720_v51, %v1846_v40  ;;  %v760_v16 = vadd.f32 %v759_v60, %v757_v11  ;;  %v724_v17 = vmul.f32 %v723_v9, %v1870_v0 }
  0x72   :  { %v798_v54 = vmul.f32 %v797_v13, %v1739_v37  ;;  %v799_v20 = vstv %s2204_s29  ;;  %v802_v21 = vstv %s2206_s30  ;;  %v765_v33 = vmul.f32 %v764_v3, %v1799_v7  ;;  %s2337_s29 = sld [smem:[#allocation2 + $0xa7]]  ;;  %s2345_s30 = sld [smem:[#allocation2 + $0xb0]] }
  0x73   :  { %v763_v10 = vadd.f32 %v762_v12, %v760_v16  ;;  %v800_v23 = vmul.f32 %v799_v20, %v1741_v38  ;;  %v803_v24 = vmul.f32 %v802_v21, %v1749_v41  ;;  %v678_v25 = vadd.f32 %v677_v8, %v675_v52 }
  0x74   :  { %v767_v26 = vstv %s2214_s4  ;;  %v805_v27 = vstv %s2219_s5  ;;  %v808_v30 = vstv %s2221_s6  ;;  %v722_v31 = vadd.f32 %v721_v15, %v719_v53  ;;  %s2353_s4 = sld [smem:[#allocation2 + $0xa8]]  ;;  %s2357_s5 = sld [smem:[#allocation2 + $0xb2]] }
  0x75   :  { %v726_v32 = vstv %s2212_s3  ;;  %v801_v34 = vadd.f32 %v800_v23, %v798_v54  ;;  %v806_v35 = vmul.f32 %v805_v27, %v1759_v45  ;;  %v729_v36 = vstv %s2225_s7  ;;  %s2347_s3 = sld [smem:[#allocation2 + $0xb1]]  ;;  %s2359_s6 = sld [smem:[#allocation2 + $0xb3]] }
  0x76   :  { %v732_v39 = vstv %s2227_s8  ;;  %v735_v42 = vstv %s2231_s1  ;;  %v811_v44 = vstv %s2233_s9  ;;  %v766_v47 = vadd.f32 %v765_v33, %v763_v10  ;;  %s2365_s7 = sld [smem:[#allocation2 + $0x9c]]  ;;  %s2373_s1 = sld [smem:[#allocation2 + $0xb5]] }
  0x77   :  { %v768_v43 = vmul.f32 %v767_v26, %v1815_v18  ;;  %v804_v48 = vadd.f32 %v803_v24, %v801_v34  ;;  %v809_v49 = vmul.f32 %v808_v30, %v1761_v46  ;;  %v681_v29 = vadd.f32 %v680_v4, %v678_v25  ;;  %s2368_s8 = sld [smem:[#allocation2 + $0xb4]]  ;;  %s2378_s9 = sld [smem:[#allocation2 + $0x9d]] }
  0x78   :  { %v727_v1 = vmul.f32 %v726_v32, %v1876_v61  ;;  %v770_v55 = vstv %s2247_s10  ;;  %v814_v56 = vstv %s2249_s11  ;;  %v725_v28 = vadd.f32 %v724_v17, %v722_v31  ;;  %s2380_s10 = sld [smem:[#allocation2 + $0xa9]]  ;;  %s2390_s11 = sld [smem:[#allocation2 + $0x9e]] }
  0x79   :  { %v773_v59 = vstv %s2256_s12  ;;  %v807_v60 = vadd.f32 %v806_v35, %v804_v48  ;;  %v812_v8 = vmul.f32 %v811_v44, %v1783_v57  ;;  %v730_v51 = vmul.f32 %v729_v36, %v1878_v62  ;;  %s2392_s12 = sld [smem:[#allocation2 + $0xb6]] }
  0x7a   :  { %v2315_v4 = vmul.f32 %v732_v39, %v1885_v2  ;;  %v2318_v9 = vmul.f32 %v735_v42, %v1906_v22  ;;  %v817_v11 = vstv %s2262_s13  ;;  %v769_v12 = vadd.f32 %v768_v43, %v766_v47  ;;  %s2396_s13 = sld [smem:[#allocation2 + $0xaa]] }
  0x7b   :  { %v771_v52 = vmul.f32 %v770_v55, %v1817_v19  ;;  %v810_v3 = vadd.f32 %v809_v49, %v807_v60  ;;  %v815_v13 = vmul.f32 %v814_v56, %v1797_v6  ;;  %v2326_v53 = vadd.f32 %v2252_v58, %v681_v29 }
  0x7c   :  { %v774_v15 = vmul.f32 %v773_v59, %v1846_v40  ;;  %v776_v16 = vstv %s2271_s14  ;;  %v850_v17 = vstv %s2273_s15  ;;  %v728_v54 = vadd.f32 %v727_v1, %v725_v28  ;;  %s2401_s14 = sld [smem:[#allocation2 + $0xb7]] }
  0x7d   :  { %v813_v20 = vadd.f32 %v812_v8, %v810_v3  ;;  %v818_v21 = vmul.f32 %v817_v11, %v1799_v7  ;;  %v820_v10 = vstv %s2278_s16  ;;  %v851_v58 = vmul.f32 %v850_v17, %v1739_v37  ;;  %s2406_s15 = sld [smem:[#allocation2 + $0x9f]]  ;;  %s2408_s16 = sld [smem:[#allocation2 + $0xb8]] }
  0x7e   :  { %v852_v33 = vstv %s2280_s17  ;;  %v855_v23 = vstv %s2284_s18  ;;  %v858_v24 = vstv %s2286_s0  ;;  %v772_v25 = vadd.f32 %v771_v52, %v769_v12  ;;  %s2414_s17 = sld [smem:[#allocation2 + $0xab]]  ;;  %s2418_s18 = sld [smem:[#allocation2 + $0xc0]] }
  0x7f   :  { %v816_v26 = vadd.f32 %v815_v13, %v813_v20  ;;  %v853_v27 = vmul.f32 %v852_v33, %v1741_v38  ;;  %v856_v30 = vmul.f32 %v855_v23, %v1749_v41  ;;  %v777_v31 = vmul.f32 %v776_v16, %v1870_v0  ;;  %s2422_s0 = sld [smem:[#allocation2 + $0xac]] }
  0x80   :  { %v779_v32 = vstv %s2292_s19  ;;  %v821_v34 = vmul.f32 %v820_v10, %v1815_v18  ;;  %v861_v35 = vstv %s2298_s21  ;;  %v823_v39 = vstv %s2305_s23  ;;  %s2424_s19 = sld [smem:[#allocation2 + $0xc1]]  ;;  %s2433_s21 = sld [smem:[#allocation2 + $0xc3]] }
  0x81   :  { %v819_v36 = vadd.f32 %v818_v21, %v816_v26  ;;  %v854_v42 = vadd.f32 %v853_v27, %v851_v58  ;;  %v859_v44 = vmul.f32 %v858_v24, %v1759_v45  ;;  %v782_v47 = vstv %s2296_s20  ;;  %s2431_s20 = sld [smem:[#allocation2 + $0xc2]]  ;;  %s2440_s23 = sld [smem:[#allocation2 + $0xb9]] }
  0x82   :  { %v785_v43 = vstv %s2303_s22  ;;  %v788_v48 = vstv %s2309_s24  ;;  %v864_v49 = vstv %s2311_s25  ;;  %v731_v29 = vadd.f32 %v730_v51, %v728_v54  ;;  %s2438_s22 = sld [smem:[#allocation2 + $0xad]]  ;;  %s2447_s24 = sld [smem:[#allocation2 + $0xc4]] }
  0x83   :  { %v775_v1 = vadd.f32 %v774_v15, %v772_v25  ;;  %v857_v55 = vadd.f32 %v856_v30, %v854_v42  ;;  %v862_v56 = vmul.f32 %v861_v35, %v1761_v46  ;;  %v780_v28 = vmul.f32 %v779_v32, %v1876_v61  ;;  %s2452_s25 = sld [smem:[#allocation2 + $0xba]] }
  0x84   :  { %v822_v59 = vadd.f32 %v821_v34, %v819_v36  ;;  %v824_v60 = vmul.f32 %v823_v39, %v1817_v19  ;;  %v867_v8 = vstv %s2323_s26  ;;  %v783_v11 = vmul.f32 %v782_v47, %v1878_v62  ;;  %s2457_s26 = sld [smem:[#allocation2 + $0xae]] }
  0x85   :  { %v826_v12 = vstv %s2331_s27  ;;  %v860_v51 = vadd.f32 %v859_v44, %v857_v55  ;;  %v865_v52 = vmul.f32 %v864_v49, %v1783_v57  ;;  %v2383_v3 = vmul.f32 %v785_v43, %v1885_v2  ;;  %s2463_s27 = sld [smem:[#allocation2 + $0xaf]] }
  0x86   :  { %v2386_v13 = vmul.f32 %v788_v48, %v1906_v22  ;;  %v829_v15 = vstv %s2335_s28  ;;  %v870_v16 = vstv %s2337_s29  ;;  %v734_v17 = vadd.f32 %v2315_v4, %v731_v29  ;;  %s2467_s28 = sld [smem:[#allocation2 + $0xbb]]  ;;  %s2469_s29 = sld [smem:[#allocation2 + $0xc5]] }
  0x87   :  { %v778_v54 = vadd.f32 %v777_v31, %v775_v1  ;;  %v863_v20 = vadd.f32 %v862_v56, %v860_v51  ;;  %v868_v21 = vmul.f32 %v867_v8, %v1797_v6  ;;  %v825_v10 = vadd.f32 %v824_v60, %v822_v59 }
  0x88   :  { %v827_v58 = vmul.f32 %v826_v12, %v1846_v40  ;;  %v903_v33 = vstv %s2345_s30  ;;  %v905_v23 = vstv %s2347_s3  ;;  %v830_v24 = vmul.f32 %v829_v15, %v1870_v0  ;;  %s2474_s30 = sld [smem:[#allocation2 + $0xbc]]  ;;  %s2479_s3 = sld [smem:[#allocation2 + $0xbd]] }
  0x89   :  { %v866_v25 = vadd.f32 %v865_v52, %v863_v20  ;;  %v871_v4 = vmul.f32 %v870_v16, %v1799_v7  ;;  %v873_v26 = vstv %s2353_s4  ;;  %v904_v27 = vmul.f32 %v903_v33, %v1739_v37  ;;  %s2481_s4 = sld [smem:[#allocation2 + $0xc6]] }
  0x8a   :  { %v906_v30 = vmul.f32 %v905_v23, %v1741_v38  ;;  %v908_v31 = vstv %s2357_s5  ;;  %v911_v32 = vstv %s2359_s6  ;;  %v781_v34 = vadd.f32 %v780_v28, %v778_v54  ;;  %s2487_s5 = sld [smem:[#allocation2 + $0x120]]  ;;  %s2489_s6 = sld [smem:[#allocation2 + $0x121]] }
  0x8b   :  { %v832_v35 = vstv %s2365_s7  ;;  %v869_v36 = vadd.f32 %v868_v21, %v866_v25  ;;  %v909_v39 = vmul.f32 %v908_v31, %v1749_v41  ;;  %v828_v42 = vadd.f32 %v827_v58, %v825_v10  ;;  %s2492_s7 = sld [smem:[#allocation2 + $0x122]] }
  0x8c   :  { %v907_v44 = vadd.f32 %v906_v30, %v904_v27  ;;  %v912_v47 = vmul.f32 %v911_v32, %v1759_v45  ;;  %v914_v43 = vstv %s2368_s8  ;;  %v2427_v48 = vadd.f32 %v2318_v9, %v734_v17  ;;  %s2494_s8 = sld [smem:[#allocation2 + $0x123]] }
  0x8d   :  { %v872_v49 = vadd.f32 %v871_v4, %v869_v36  ;;  %v874_v29 = vmul.f32 %v873_v26, %v1815_v18  ;;  %v917_v1 = vstv %s2373_s1  ;;  %v835_v55 = vstv %s2378_s9  ;;  %s2501_s1 = sld [smem:[#allocation2 + $0x124]]  ;;  %s2509_s9 = sld [smem:[#allocation2 + $0xbe]] }
  0x8e   :  { %v876_v56 = vstv %s2380_s10  ;;  %v910_v28 = vadd.f32 %v909_v39, %v907_v44  ;;  %v915_v59 = vmul.f32 %v914_v43, %v1761_v46  ;;  %v784_v9 = vadd.f32 %v783_v11, %v781_v34  ;;  %s2513_s10 = sld [smem:[#allocation2 + $0xc7]] }
  0x8f   :  { %v833_v60 = vmul.f32 %v832_v35, %v1876_v61  ;;  %v838_v8 = vstv %s2390_s11  ;;  %v920_v12 = vstv %s2392_s12  ;;  %v831_v51 = vadd.f32 %v830_v24, %v828_v42  ;;  %s2515_s11 = sld [smem:[#allocation2 + $0x125]]  ;;  %s2520_s12 = sld [smem:[#allocation2 + $0xbf]] }
  0x90   :  { %v879_v52 = vstv %s2396_s13  ;;  %v913_v15 = vadd.f32 %v912_v47, %v910_v28  ;;  %v918_v16 = vmul.f32 %v917_v1, %v1783_v57  ;;  %v836_v17 = vmul.f32 %v835_v55, %v1878_v62  ;;  %s2525_s13 = sld [smem:[#allocation2 + $0xc8]] }
  0x91   :  { %v875_v54 = vadd.f32 %v874_v29, %v872_v49  ;;  %v877_v20 = vmul.f32 %v876_v56, %v1817_v19  ;;  %v923_v11 = vstv %s2401_s14  ;;  %v841_v21 = vstv %s2406_s15  ;;  %s2527_s14 = sld [smem:[#allocation2 + $0xc9]]  ;;  %s2533_s15 = sld [smem:[#allocation2 + $0x130]] }
  0x92   :  { %v916_v10 = vadd.f32 %v915_v59, %v913_v15  ;;  %v921_v58 = vmul.f32 %v920_v12, %v1797_v6  ;;  %v926_v33 = vstv %s2408_s16  ;;  %v787_v23 = vadd.f32 %v2383_v3, %v784_v9  ;;  %s2535_s16 = sld [smem:[#allocation2 + $0x131]] }
  0x93   :  { %v839_v24 = vmul.f32 %v838_v8, %v1885_v2  ;;  %v880_v25 = vmul.f32 %v879_v52, %v1846_v40  ;;  %v882_v4 = vstv %s2414_s17  ;;  %v834_v26 = vadd.f32 %v833_v60, %v831_v51  ;;  %s2540_s17 = sld [smem:[#allocation2 + $0x132]] }
  0x94   :  { %v919_v27 = vadd.f32 %v918_v16, %v916_v10  ;;  %v924_v30 = vmul.f32 %v923_v11, %v1799_v7  ;;  %v956_v31 = vstv %s2418_s18  ;;  %v878_v3 = vadd.f32 %v877_v20, %v875_v54  ;;  %s2542_s18 = sld [smem:[#allocation2 + $0x133]] }
  0x95   :  { %v927_v32 = vmul.f32 %v926_v33, %v1815_v18  ;;  %v957_v34 = vmul.f32 %v956_v31, %v1739_v37  ;;  %v958_v35 = vstv %s2424_s19  ;;  %v961_v42 = vstv %s2431_s20  ;;  %s2549_s19 = sld [smem:[#allocation2 + $0x126]]  ;;  %s2557_s20 = sld [smem:[#allocation2 + $0x134]] }
  0x96   :  { %v922_v36 = vadd.f32 %v921_v58, %v919_v27  ;;  %v959_v39 = vmul.f32 %v958_v35, %v1741_v38  ;;  %v964_v44 = vstv %s2433_s21  ;;  %v885_v47 = vstv %s2422_s0  ;;  %s2547_s0 = sld [smem:[#allocation2 + $0xca]]  ;;  %s2564_s21 = sld [smem:[#allocation2 + $0xcb]] }
  0x97   :  { %v888_v43 = vstv %s2438_s22  ;;  %v929_v49 = vstv %s2440_s23  ;;  %v962_v29 = vmul.f32 %v961_v42, %v1749_v41  ;;  %v837_v1 = vadd.f32 %v836_v17, %v834_v26  ;;  %s2566_s22 = sld [smem:[#allocation2 + $0x127]]  ;;  %s2571_s23 = sld [smem:[#allocation2 + $0xd0]] }
  0x98   :  { %v925_v55 = vadd.f32 %v924_v30, %v922_v36  ;;  %v960_v56 = vadd.f32 %v959_v39, %v957_v34  ;;  %v965_v28 = vmul.f32 %v964_v44, %v1759_v45  ;;  %v842_v59 = vmul.f32 %v841_v21, %v1906_v22 }
  0x99   :  { %v881_v9 = vadd.f32 %v880_v25, %v878_v3  ;;  %v883_v60 = vmul.f32 %v882_v4, %v1870_v0  ;;  %v967_v8 = vstv %s2447_s24  ;;  %v930_v51 = vmul.f32 %v929_v49, %v1817_v19  ;;  %s2573_s24 = sld [smem:[#allocation2 + $0x128]] }
  0x9a   :  { %v928_v12 = vadd.f32 %v927_v32, %v925_v55  ;;  %v932_v52 = vstv %s2452_s25  ;;  %v963_v15 = vadd.f32 %v962_v29, %v960_v56  ;;  %v2504_v16 = vadd.f32 %v2386_v13, %v787_v23  ;;  %s2576_s25 = sld [smem:[#allocation2 + $0xd1]] }
  0x9b   :  { %v886_v17 = vmul.f32 %v885_v47, %v1876_v61  ;;  %v889_v54 = vmul.f32 %v888_v43, %v1878_v62  ;;  %v891_v20 = vstv %s2457_s26  ;;  %v840_v11 = vadd.f32 %v839_v24, %v837_v1  ;;  %s2578_s26 = sld [smem:[#allocation2 + $0xd2]] }
  0x9c   :  { %v894_v21 = vstv %s2463_s27  ;;  %v966_v10 = vadd.f32 %v965_v28, %v963_v15  ;;  %v968_v58 = vmul.f32 %v967_v8, %v1761_v46  ;;  %v884_v13 = vadd.f32 %v883_v60, %v881_v9  ;;  %s2582_s27 = sld [smem:[#allocation2 + $0x135]] }
  0x9d   :  { %v933_v33 = vmul.f32 %v932_v52, %v1846_v40  ;;  %v935_v23 = vstv %s2467_s28  ;;  %v970_v25 = vstv %s2469_s29  ;;  %v473_v4 = vstv %s2487_s5  ;;  %s2586_s28 = sld [smem:[#allocation2 + $0xd3]]  ;;  %s2588_s29 = sld [smem:[#allocation2 + $0xd4]] }
  0x9e   :  { %v526_v26 = vstv %s2489_s6  ;;  %v931_v24 = vadd.f32 %v930_v51, %v928_v12  ;;  %v938_v27 = vstv %s2474_s30  ;;  %v474_v30 = vadd.f32 %v473_v4, %v2091_v50  ;;  %s2594_s30 = sld [smem:[#allocation2 + $0x136]]  ;;  %s2610_s5 = sld [smem:[#allocation2 + $0x137]] }
  0x9f   :  { %v527_v31 = vadd.f32 %v526_v26, %v2237_v63  ;;  %v579_v3 = vstv %s2492_s7  ;;  %v632_v32 = vstv %s2494_s8  ;;  %v892_v35 = vmul.f32 %v891_v20, %v1885_v2  ;;  %s2612_s6 = sld [smem:[#allocation2 + $0x138]]  ;;  %s2617_s7 = sld [smem:[#allocation2 + $0xcc]] }
  0xa0   :  { %v580_v34 = vadd.f32 %v579_v3, %v2240_v5  ;;  %v969_v36 = vadd.f32 %v968_v58, %v966_v10  ;;  %v971_v39 = vmul.f32 %v970_v25, %v1783_v57  ;;  %v887_v50 = vadd.f32 %v886_v17, %v884_v13  ;;  %s2619_s8 = sld [smem:[#allocation2 + $0xcd]] }
  0xa1   :  { %v895_v63 = vmul.f32 %v894_v21, %v1906_v22  ;;  %v941_v42 = vstv %s2479_s3  ;;  %v973_v44 = vstv %s2481_s4  ;;  %v633_v5 = vadd.f32 %v632_v32, %v2259_v14  ;;  %s2602_s3 = sld [smem:[#allocation2 + $0xd5]]  ;;  %s2604_s4 = sld [smem:[#allocation2 + $0x129]] }
  0xa2   :  { %v2552_v47 = vadd.f32 %v842_v59, %v840_v11  ;;  %v936_v43 = vmul.f32 %v935_v23, %v1870_v0  ;;  %v939_v49 = vmul.f32 %v938_v27, %v1876_v61  ;;  %v475_v29 = vmax.f32 %v474_v30, 0.0 }
  0xa3   :  { %v528_v1 = vmax.f32 %v527_v31, 0.0  ;;  %v685_v55 = vstv %s2501_s1  ;;  %v934_v56 = vadd.f32 %v933_v33, %v931_v24  ;;  %v581_v28 = vmax.f32 %v580_v34, 0.0  ;;  %s2625_s1 = sld [smem:[#allocation2 + $0xd6]] }
  0xa4   :  { %v942_v9 = vmul.f32 %v941_v42, %v1878_v62  ;;  %v972_v60 = vadd.f32 %v971_v39, %v969_v36  ;;  %v974_v14 = vmul.f32 %v973_v44, %v1797_v6  ;;  %v738_v59 = vstv %s2515_s11  ;;  %s2636_s11 = sld [smem:[#allocation2 + $0xd7]] }
  0xa5   :  { %v890_v8 = vadd.f32 %v889_v54, %v887_v50  ;;  %v944_v12 = vstv %s2509_s9  ;;  %v976_v51 = vstv %s2513_s10  ;;  %v476_v52 = vstv %s2533_s15  ;;  %s2630_s9 = sld [smem:[#allocation2 + $0x139]]  ;;  %s2633_s10 = sld [smem:[#allocation2 + $0xce]] }
  0xa6   :  { %v529_v15 = vstv %s2535_s16  ;;  %v634_v17 = vmax.f32 %v633_v5, 0.0  ;;  %v686_v20 = vadd.f32 %v685_v55, %v2326_v53  ;;  %v477_v11 = vmul.f32 %v476_v52, %v475_v29  ;;  %s2648_s15 = sld [smem:[#allocation2 + $0xe3]]  ;;  %s2650_s16 = sld [smem:[#allocation2 + $0xd8]] }
  0xa7   :  { %v530_v54 = vmul.f32 %v529_v15, %v528_v1  ;;  %v582_v21 = vstv %s2540_s17  ;;  %v937_v10 = vadd.f32 %v936_v43, %v934_v56  ;;  %v635_v13 = vstv %s2542_s18  ;;  %s2652_s17 = sld [smem:[#allocation2 + $0xe4]]  ;;  %s2659_s18 = sld [smem:[#allocation2 + $0xe5]] }
  0xa8   :  { %v583_v58 = vmul.f32 %v582_v21, %v581_v28  ;;  %v975_v53 = vadd.f32 %v974_v14, %v972_v60  ;;  %v977_v33 = vmul.f32 %v976_v51, %v1799_v7  ;;  %v893_v25 = vadd.f32 %v892_v35, %v890_v8 }
  0xa9   :  { %v531_v23 = vadd.f32 %v530_v54, %v477_v11  ;;  %v947_v4 = vstv %s2520_s12  ;;  %v979_v26 = vstv %s2525_s13  ;;  %v739_v24 = vadd.f32 %v738_v59, %v2427_v48  ;;  %s2638_s12 = sld [smem:[#allocation2 + $0xe0]]  ;;  %s2641_s13 = sld [smem:[#allocation2 + $0xe1]] }
  0xaa   :  { %v791_v27 = vstv %s2549_s19  ;;  %v982_v30 = vstv %s2527_s14  ;;  %v985_v31 = vstv %s2547_s0  ;;  %v636_v32 = vmul.f32 %v635_v13, %v634_v17  ;;  %s2643_s14 = sld [smem:[#allocation2 + $0xe2]]  ;;  %s2662_s0 = sld [smem:[#allocation2 + $0xcf]] }
  0xab   :  { %v584_v3 = vadd.f32 %v583_v58, %v531_v23  ;;  %v687_v34 = vmax.f32 %v686_v20, 0.0  ;;  %v940_v36 = vadd.f32 %v939_v49, %v937_v10  ;;  %v688_v35 = vstv %s2557_s20  ;;  %s2665_s19 = sld [smem:[#allocation2 + $0xe6]]  ;;  %s2669_s20 = sld [smem:[#allocation2 + $0xd9]] }
  0xac   :  { %v945_v39 = vmul.f32 %v944_v12, %v1885_v2  ;;  %v978_v50 = vadd.f32 %v977_v33, %v975_v53  ;;  %v980_v42 = vmul.f32 %v979_v26, %v1815_v18  ;;  %v896_v44 = vadd.f32 %v895_v63, %v893_v25 }
  0xad   :  { %v948_v48 = vmul.f32 %v947_v4, %v1906_v22  ;;  %v983_v5 = vmul.f32 %v982_v30, %v1817_v19  ;;  %v986_v43 = vmul.f32 %v985_v31, %v1846_v40  ;;  %v740_v49 = vmax.f32 %v739_v24, 0.0 }
  0xae   :  { %v792_v29 = vadd.f32 %v791_v27, %v2504_v16  ;;  %v844_v1 = vstv %s2566_s22  ;;  %v988_v55 = vstv %s2564_s21  ;;  %v637_v63 = vadd.f32 %v636_v32, %v584_v3  ;;  %s2674_s21 = sld [smem:[#allocation2 + $0xda]] }
  0xaf   :  { %v689_v56 = vmul.f32 %v688_v35, %v687_v34  ;;  %v897_v28 = vstv %s2573_s24  ;;  %v943_v60 = vadd.f32 %v942_v9, %v940_v36  ;;  %v981_v14 = vadd.f32 %v980_v42, %v978_v50  ;;  %s2676_s22 = sld [smem:[#allocation2 + $0x12a]] }
  0xb0   :  { %v1009_v59 = vstv %s2571_s23  ;;  %v1011_v8 = vstv %s2576_s25  ;;  %v1014_v12 = vstv %s2578_s26  ;;  %v741_v16 = vstv %s2582_s27  ;;  %s2682_s23 = sld [smem:[#allocation2 + $0xdb]]  ;;  %s2684_s24 = sld [smem:[#allocation2 + $0x13a]] }
  0xb1   :  { %v845_v51 = vadd.f32 %v844_v1, %v2552_v47  ;;  %v1010_v9 = vmul.f32 %v1009_v59, %v1739_v37  ;;  %v1012_v52 = vmul.f32 %v1011_v8, %v1741_v38  ;;  %v793_v15 = vmax.f32 %v792_v29, 0.0  ;;  %s2689_s25 = sld [smem:[#allocation2 + $0xdc]]  ;;  %s2691_s26 = sld [smem:[#allocation2 + $0xe7]] }
  0xb2   :  { %v1015_v17 = vmul.f32 %v1014_v12, %v1749_v41  ;;  %v1017_v20 = vstv %s2586_s28  ;;  %v1020_v11 = vstv %s2588_s29  ;;  %v898_v54 = vadd.f32 %v897_v28, %v896_v44  ;;  %s2695_s27 = sld [smem:[#allocation2 + $0xf0]]  ;;  %s2697_s28 = sld [smem:[#allocation2 + $0xf1]] }
  0xb3   :  { %v946_v21 = vadd.f32 %v945_v39, %v943_v60  ;;  %v1013_v10 = vadd.f32 %v1012_v52, %v1010_v9  ;;  %v1018_v47 = vmul.f32 %v1017_v20, %v1759_v45  ;;  %v690_v58 = vadd.f32 %v689_v56, %v637_v63  ;;  %s2701_s29 = sld [smem:[#allocation2 + $0xf2]] }
  0xb4   :  { %v742_v13 = vmul.f32 %v741_v16, %v740_v49  ;;  %v794_v53 = vstv %s2594_s30  ;;  %v984_v33 = vadd.f32 %v983_v5, %v981_v14  ;;  %v1021_v25 = vmul.f32 %v1020_v11, %v1761_v46  ;;  %s2703_s30 = sld [smem:[#allocation2 + $0xf3]] }
  0xb5   :  { %v1016_v23 = vadd.f32 %v1015_v17, %v1013_v10  ;;  %v846_v4 = vmax.f32 %v845_v51, 0.0  ;;  %v950_v26 = vstv %s2604_s4  ;;  %v989_v24 = vmul.f32 %v988_v55, %v1870_v0  ;;  %s2711_s4 = sld [smem:[#allocation2 + $0xf4]] }
  0xb6   :  { %v1023_v27 = vstv %s2602_s3  ;;  %v795_v30 = vmul.f32 %v794_v53, %v793_v15  ;;  %v899_v31 = vmax.f32 %v898_v54, 0.0  ;;  %v949_v3 = vadd.f32 %v948_v48, %v946_v21  ;;  %s2709_s3 = sld [smem:[#allocation2 + $0xe8]] }
  0xb7   :  { %v1019_v32 = vadd.f32 %v1018_v47, %v1016_v23  ;;  %v743_v34 = vadd.f32 %v742_v13, %v690_v58  ;;  %v847_v36 = vstv %s2610_s5  ;;  %v900_v35 = vstv %s2612_s6  ;;  %s2715_s5 = sld [smem:[#allocation2 + $0xdd]]  ;;  %s2719_s6 = sld [smem:[#allocation2 + $0xde]] }
  0xb8   :  { %v987_v39 = vadd.f32 %v986_v43, %v984_v33  ;;  %v991_v50 = vstv %s2617_s7  ;;  %v994_v42 = vstv %s2619_s8  ;;  %v1024_v5 = vmul.f32 %v1023_v27, %v1783_v57  ;;  %s2721_s7 = sld [smem:[#allocation2 + $0xf5]]  ;;  %s2729_s8 = sld [smem:[#allocation2 + $0xe9]] }
  0xb9   :  { %v1022_v44 = vadd.f32 %v1021_v25, %v1019_v32  ;;  %v1026_v48 = vstv %s2625_s1  ;;  %v848_v49 = vmul.f32 %v847_v36, %v846_v4  ;;  %v901_v29 = vmul.f32 %v900_v35, %v899_v31  ;;  %s2731_s1 = sld [smem:[#allocation2 + $0xf6]] }
  0xba   :  { %v951_v1 = vadd.f32 %v950_v26, %v949_v3  ;;  %v953_v55 = vstv %s2630_s9  ;;  %v796_v43 = vadd.f32 %v795_v30, %v743_v34  ;;  %v990_v63 = vadd.f32 %v989_v24, %v987_v39  ;;  %s2737_s9 = sld [smem:[#allocation2 + $0xdf]] }
  0xbb   :  { %v992_v56 = vmul.f32 %v991_v50, %v1876_v61  ;;  %v995_v28 = vmul.f32 %v994_v42, %v1878_v62  ;;  %v997_v60 = vstv %s2633_s10  ;;  %v1025_v14 = vadd.f32 %v1024_v5, %v1022_v44  ;;  %s2739_s10 = sld [smem:[#allocation2 + $0xea]] }
  0xbc   :  { %v1027_v59 = vmul.f32 %v1026_v48, %v1797_v6  ;;  %v1062_v8 = vstv %s2638_s12  ;;  %v1029_v12 = vstv %s2636_s11  ;;  %v1064_v51 = vstv %s2641_s13  ;;  %s2743_s11 = sld [smem:[#allocation2 + $0xf7]]  ;;  %s2745_s12 = sld [smem:[#allocation2 + $0x12b]] }
  0xbd   :  { %v1063_v16 = vmul.f32 %v1062_v8, %v1739_v37  ;;  %v1067_v9 = vstv %s2643_s14  ;;  %v952_v52 = vmax.f32 %v951_v1, 0.0  ;;  %v1065_v15 = vmul.f32 %v1064_v51, %v1741_v38  ;;  %s2754_s13 = sld [smem:[#allocation2 + $0xeb]]  ;;  %s2756_s14 = sld [smem:[#allocation2 + $0xf8]] }
  0xbe   :  { %v1068_v17 = vmul.f32 %v1067_v9, %v1749_v41  ;;  %v1070_v20 = vstv %s2648_s15  ;;  %v849_v11 = vadd.f32 %v848_v49, %v796_v43  ;;  %v993_v54 = vadd.f32 %v992_v56, %v990_v63  ;;  %s2761_s15 = sld [smem:[#allocation2 + $0xec]] }
  0xbf   :  { %v1032_v21 = vstv %s2650_s16  ;;  %v1073_v10 = vstv %s2652_s17  ;;  %v1028_v47 = vadd.f32 %v1027_v59, %v1025_v14  ;;  %v1030_v58 = vmul.f32 %v1029_v12, %v1799_v7  ;;  %s2763_s16 = sld [smem:[#allocation2 + $0xed]]  ;;  %s2768_s17 = sld [smem:[#allocation2 + $0xf9]] }
  0xc0   :  { %v1066_v13 = vadd.f32 %v1065_v15, %v1063_v16  ;;  %v1071_v53 = vmul.f32 %v1070_v20, %v1759_v45  ;;  %v998_v33 = vmul.f32 %v997_v60, %v1885_v2  ;;  %v1076_v23 = vstv %s2659_s18  ;;  %s2770_s18 = sld [smem:[#allocation2 + $0x100]] }
  0xc1   :  { %v954_v25 = vmul.f32 %v953_v55, %v952_v52  ;;  %v1000_v4 = vstv %s2662_s0  ;;  %v1074_v24 = vmul.f32 %v1073_v10, %v1761_v46  ;;  %v902_v27 = vadd.f32 %v901_v29, %v849_v11  ;;  %s2775_s0 = sld [smem:[#allocation2 + $0xfa]] }
  0xc2   :  { %v1069_v26 = vadd.f32 %v1068_v17, %v1066_v13  ;;  %v996_v30 = vadd.f32 %v995_v28, %v993_v54  ;;  %v1033_v31 = vmul.f32 %v1032_v21, %v1815_v18  ;;  %v1079_v3 = vstv %s2665_s19  ;;  %s2777_s19 = sld [smem:[#allocation2 + $0x101]] }
  0xc3   :  { %v1031_v32 = vadd.f32 %v1030_v58, %v1028_v47  ;;  %v1035_v34 = vstv %s2669_s20  ;;  %v1077_v35 = vmul.f32 %v1076_v23, %v1783_v57  ;;  %v1001_v39 = vmul.f32 %v1000_v4, %v1906_v22  ;;  %s2781_s20 = sld [smem:[#allocation2 + $0x102]] }
  0xc4   :  { %v1072_v36 = vadd.f32 %v1071_v53, %v1069_v26  ;;  %v1003_v50 = vstv %s2676_s22  ;;  %v1038_v42 = vstv %s2674_s21  ;;  %v1006_v44 = vstv %s2684_s24  ;;  %s2783_s21 = sld [smem:[#allocation2 + $0x103]]  ;;  %s2795_s22 = sld [smem:[#allocation2 + $0xee]] }
  0xc5   :  { %v1041_v5 = vstv %s2682_s23  ;;  %v1080_v49 = vmul.f32 %v1079_v3, %v1797_v6  ;;  %v2733_v29 = vadd.f32 %v954_v25, %v902_v27  ;;  %v999_v1 = vadd.f32 %v998_v33, %v996_v30  ;;  %s2797_s23 = sld [smem:[#allocation2 + $0x104]]  ;;  %s2981_s24 = sld [smem:[#allocation2 + $0x11f]] }
  0xc6   :  { %v1075_v48 = vadd.f32 %v1074_v24, %v1072_v36  ;;  %v1036_v55 = vmul.f32 %v1035_v34, %v1817_v19  ;;  %v1082_v43 = vstv %s2691_s26  ;;  %v1034_v63 = vadd.f32 %v1033_v31, %v1031_v32  ;;  %s2814_s26 = sld [smem:[#allocation2 + $0xef]] }
  0xc7   :  { %v1039_v56 = vmul.f32 %v1038_v42, %v1846_v40  ;;  %v1044_v28 = vstv %s2689_s25  ;;  %v1115_v14 = vstv %s2695_s27  ;;  %v1117_v59 = vstv %s2697_s28  ;;  %s2806_s25 = sld [smem:[#allocation2 + $0x105]]  ;;  %s2816_s27 = sld [smem:[#allocation2 + $0xfb]] }
  0xc8   :  { %v1078_v60 = vadd.f32 %v1077_v35, %v1075_v48  ;;  %v1120_v8 = vstv %s2701_s29  ;;  %v1123_v12 = vstv %s2703_s30  ;;  %v1083_v51 = vmul.f32 %v1082_v43, %v1799_v7  ;;  %s2821_s28 = sld [smem:[#allocation2 + $0xfc]]  ;;  %s2823_s29 = sld [smem:[#allocation2 + $0x106]] }
  0xc9   :  { %v1116_v9 = vmul.f32 %v1115_v14, %v1739_v37  ;;  %v1118_v52 = vmul.f32 %v1117_v59, %v1741_v38  ;;  %v1002_v15 = vadd.f32 %v1001_v39, %v999_v1  ;;  %v1085_v17 = vstv %s2709_s3  ;;  %s2828_s30 = sld [smem:[#allocation2 + $0xfd]]  ;;  %s2832_s3 = sld [smem:[#allocation2 + $0x107]] }
  0xca   :  { %v1081_v16 = vadd.f32 %v1080_v49, %v1078_v60  ;;  %v1121_v20 = vmul.f32 %v1120_v8, %v1749_v41  ;;  %v1126_v11 = vstv %s2711_s4  ;;  %v1042_v54 = vmul.f32 %v1041_v5, %v1870_v0  ;;  %s2838_s4 = sld [smem:[#allocation2 + $0x12c]] }
  0xcb   :  { %v1047_v21 = vstv %s2715_s5  ;;  %v1119_v10 = vadd.f32 %v1118_v52, %v1116_v9  ;;  %v1124_v47 = vmul.f32 %v1123_v12, %v1759_v45  ;;  %v1037_v58 = vadd.f32 %v1036_v55, %v1034_v63  ;;  %s2843_s5 = sld [smem:[#allocation2 + $0x108]] }
  0xcc   :  { %v1045_v13 = vmul.f32 %v1044_v28, %v1876_v61  ;;  %v1050_v53 = vstv %s2719_s6  ;;  %v1129_v33 = vstv %s2721_s7  ;;  %v1084_v23 = vadd.f32 %v1083_v51, %v1081_v16  ;;  %s2848_s6 = sld [smem:[#allocation2 + $0x109]]  ;;  %s2850_s7 = sld [smem:[#allocation2 + $0x110]] }
  0xcd   :  { %v1086_v25 = vmul.f32 %v1085_v17, %v1815_v18  ;;  %v1122_v4 = vadd.f32 %v1121_v20, %v1119_v10  ;;  %v1127_v26 = vmul.f32 %v1126_v11, %v1761_v46  ;;  %v2785_v24 = vadd.f32 %v1003_v50, %v1002_v15 }
  0xce   :  { %v2788_v27 = vmul.f32 %v1047_v21, %v1878_v62  ;;  %v1088_v30 = vstv %s2729_s8  ;;  %v1132_v31 = vstv %s2731_s1  ;;  %v1053_v3 = vstv %s2737_s9  ;;  %s2853_s8 = sld [smem:[#allocation2 + $0x111]]  ;;  %s2855_s1 = sld [smem:[#allocation2 + $0x112]] }
  0xcf   :  { %v1091_v32 = vstv %s2739_s10  ;;  %v1125_v34 = vadd.f32 %v1124_v47, %v1122_v4  ;;  %v1130_v36 = vmul.f32 %v1129_v33, %v1783_v57  ;;  %v1040_v35 = vadd.f32 %v1039_v56, %v1037_v58  ;;  %s2861_s9 = sld [smem:[#allocation2 + $0xfe]]  ;;  %s2865_s10 = sld [smem:[#allocation2 + $0x10a]] }
  0xd0   :  { %v2800_v39 = vmul.f32 %v1050_v53, %v1885_v2  ;;  %v1056_v50 = vstv %s2745_s12  ;;  %v1135_v42 = vstv %s2743_s11  ;;  %v1087_v5 = vadd.f32 %v1086_v25, %v1084_v23  ;;  %s2867_s11 = sld [smem:[#allocation2 + $0x113]]  ;;  %s2961_s12 = sld [smem:[#allocation2 + $0x11d]] }
  0xd1   :  { %v1089_v48 = vmul.f32 %v1088_v30, %v1817_v19  ;;  %v1128_v49 = vadd.f32 %v1127_v26, %v1125_v34  ;;  %v1133_v1 = vmul.f32 %v1132_v31, %v1797_v6  ;;  %v1005_v55 = vmax.f32 %v2785_v24, 0.0 }
  0xd2   :  { %v2810_v43 = vmul.f32 %v1053_v3, %v1906_v22  ;;  %v1092_v63 = vmul.f32 %v1091_v32, %v1846_v40  ;;  %v1138_v56 = vstv %s2756_s14  ;;  %v1094_v28 = vstv %s2754_s13  ;;  %s2873_s13 = sld [smem:[#allocation2 + $0x114]]  ;;  %s2877_s14 = sld [smem:[#allocation2 + $0x10b]] }
  0xd3   :  { %v1097_v60 = vstv %s2761_s15  ;;  %v1131_v14 = vadd.f32 %v1130_v36, %v1128_v49  ;;  %v1136_v59 = vmul.f32 %v1135_v42, %v1799_v7  ;;  %v1043_v8 = vadd.f32 %v1042_v54, %v1040_v35  ;;  %s2882_s15 = sld [smem:[#allocation2 + $0x115]] }
  0xd4   :  { %v1100_v12 = vstv %s2763_s16  ;;  %v1141_v16 = vstv %s2768_s17  ;;  %v1168_v51 = vstv %s2770_s18  ;;  %v1090_v9 = vadd.f32 %v1089_v48, %v1087_v5  ;;  %s2889_s16 = sld [smem:[#allocation2 + $0x10c]]  ;;  %s2895_s17 = sld [smem:[#allocation2 + $0x116]] }
  0xd5   :  { %v1134_v52 = vadd.f32 %v1133_v1, %v1131_v14  ;;  %v1139_v15 = vmul.f32 %v1138_v56, %v1815_v18  ;;  %v1169_v17 = vmul.f32 %v1168_v51, %v1739_v37  ;;  %v1144_v20 = vstv %s2775_s0  ;;  %s2899_s18 = sld [smem:[#allocation2 + $0x10d]]  ;;  %s2904_s0 = sld [smem:[#allocation2 + $0xff]] }
  0xd6   :  { %v1170_v11 = vstv %s2777_s19  ;;  %v1173_v21 = vstv %s2781_s20  ;;  %v1176_v10 = vstv %s2783_s21  ;;  %v1142_v47 = vmul.f32 %v1141_v16, %v1817_v19  ;;  %s2906_s19 = sld [smem:[#allocation2 + $0x117]]  ;;  %s2911_s20 = sld [smem:[#allocation2 + $0x10e]] }
  0xd7   :  { %v1137_v54 = vadd.f32 %v1136_v59, %v1134_v52  ;;  %v1171_v58 = vmul.f32 %v1170_v11, %v1741_v38  ;;  %v1174_v53 = vmul.f32 %v1173_v21, %v1749_v41  ;;  %v1046_v33 = vadd.f32 %v1045_v13, %v1043_v8  ;;  %s2917_s21 = sld [smem:[#allocation2 + $0x118]] }
  0xd8   :  { %v1095_v23 = vmul.f32 %v1094_v28, %v1870_v0  ;;  %v1103_v25 = vstv %s2795_s22  ;;  %v1179_v4 = vstv %s2797_s23  ;;  %v1093_v26 = vadd.f32 %v1092_v63, %v1090_v9  ;;  %s2923_s22 = sld [smem:[#allocation2 + $0x10f]]  ;;  %s2925_s23 = sld [smem:[#allocation2 + $0x119]] }
  0xd9   :  { %v1140_v30 = vadd.f32 %v1139_v15, %v1137_v54  ;;  %v1172_v31 = vadd.f32 %v1171_v58, %v1169_v17  ;;  %v1177_v3 = vmul.f32 %v1176_v10, %v1759_v45  ;;  %v1098_v13 = vmul.f32 %v1097_v60, %v1876_v61 }
  0xda   :  { %v1101_v32 = vmul.f32 %v1100_v12, %v1878_v62  ;;  %v1145_v34 = vmul.f32 %v1144_v20, %v1846_v40  ;;  %v1182_v36 = vstv %s2806_s25  ;;  %v1147_v42 = vstv %s2816_s27  ;;  %s2930_s25 = sld [smem:[#allocation2 + $0x13b]] }
  0xdb   :  { %v1143_v35 = vadd.f32 %v1142_v47, %v1140_v30  ;;  %v1175_v5 = vadd.f32 %v1174_v53, %v1172_v31  ;;  %v1180_v48 = vmul.f32 %v1179_v4, %v1761_v46  ;;  %v1049_v49 = vadd.f32 %v2788_v27, %v1046_v33  ;;  %s2941_s27 = sld [smem:[#allocation2 + $0x11b]] }
  0xdc   :  { %v1106_v1 = vstv %s2814_s26  ;;  %v1150_v63 = vstv %s2821_s28  ;;  %v1185_v56 = vstv %s2823_s29  ;;  %v1096_v28 = vadd.f32 %v1095_v23, %v1093_v26  ;;  %s2935_s26 = sld [smem:[#allocation2 + $0x11a]]  ;;  %s2943_s28 = sld [smem:[#allocation2 + $0x12d]] }
  0xdd   :  { %v1153_v60 = vstv %s2828_s30  ;;  %v1178_v14 = vadd.f32 %v1177_v3, %v1175_v5  ;;  %v1183_v59 = vmul.f32 %v1182_v36, %v1783_v57  ;;  %v1104_v8 = vmul.f32 %v1103_v25, %v1885_v2  ;;  %s2952_s29 = sld [smem:[#allocation2 + $0x11c]] }
  0xde   :  { %v1146_v12 = vadd.f32 %v1145_v34, %v1143_v35  ;;  %v1148_v16 = vmul.f32 %v1147_v42, %v1870_v0  ;;  %v1188_v27 = vstv %s2832_s3  ;;  %v2885_v51 = vmul.f32 %v1106_v1, %v1906_v22  ;;  %s2954_s30 = sld [smem:[#allocation2 + $0x13c]]  ;;  %s2963_s3 = sld [smem:[#allocation2 + $0x12e]] }
  0xdf   :  { %v1109_v9 = vstv %s2838_s4  ;;  %v1181_v52 = vadd.f32 %v1180_v48, %v1178_v14  ;;  %v1186_v15 = vmul.f32 %v1185_v56, %v1797_v6  ;;  %v1052_v17 = vadd.f32 %v2800_v39, %v1049_v49  ;;  %s1604_s4 = sld [smem:[#allocation2 + $0x13e]] }
  0xe0   :  { %v1151_v20 = vmul.f32 %v1150_v63, %v1876_v61  ;;  %v1154_v11 = vmul.f32 %v1153_v60, %v1878_v62  ;;  %v1191_v21 = vstv %s2843_s5  ;;  %v1099_v10 = vadd.f32 %v1098_v13, %v1096_v28  ;;  %s2974_s5 = sld [smem:[#allocation2 + $0x11e]] }
  0xe1   :  { %v1184_v54 = vadd.f32 %v1183_v59, %v1181_v52  ;;  %v1189_v47 = vmul.f32 %v1188_v27, %v1799_v7  ;;  %v1194_v58 = vstv %s2848_s6  ;;  %v1149_v53 = vadd.f32 %v1148_v16, %v1146_v12  ;;  %s2983_s6 = sld [smem:[#allocation2 + $0x13d]] }
  0xe2   :  { %v1221_v33 = vstv %s2850_s7  ;;  %v1223_v39 = vstv %s2853_s8  ;;  %v1226_v23 = vstv %s2855_s1  ;;  %v1156_v25 = vstv %s2861_s9  ;;  %s1589_s7 = sld [smem:[#allocation2 + $0x12f]]  ;;  %s1606_s1 = sld [smem:[#allocation2 + $0x140]] }
  0xe3   :  { %v1187_v4 = vadd.f32 %v1186_v15, %v1184_v54  ;;  %v1192_v26 = vmul.f32 %v1191_v21, %v1815_v18  ;;  %v1222_v30 = vmul.f32 %v1221_v33, %v1739_v37  ;;  %v1197_v31 = vstv %s2865_s10  ;;  %s1605_s8 = sld [smem:[#allocation2 + $0x13f]] }
  0xe4   :  { %v1224_v3 = vmul.f32 %v1223_v39, %v1741_v38  ;;  %v1227_v13 = vmul.f32 %v1226_v23, %v1749_v41  ;;  %v1229_v34 = vstv %s2867_s11  ;;  %v1102_v36 = vadd.f32 %v1101_v32, %v1099_v10 }
  0xe5   :  { %v1190_v35 = vadd.f32 %v1189_v47, %v1187_v4  ;;  %v1195_v42 = vmul.f32 %v1194_v58, %v1817_v19  ;;  %v1232_v5 = vstv %s2873_s13  ;;  %v1152_v48 = vadd.f32 %v1151_v20, %v1149_v53 }
  0xe6   :  { %v1200_v49 = vstv %s2877_s14  ;;  %v1225_v37 = vadd.f32 %v1224_v3, %v1222_v30  ;;  %v1230_v1 = vmul.f32 %v1229_v34, %v1759_v45  ;;  %v1055_v38 = vadd.f32 %v2810_v43, %v1052_v17 }
  0xe7   :  { %v1193_v41 = vadd.f32 %v1192_v26, %v1190_v35  ;;  %v1198_v32 = vmul.f32 %v1197_v31, %v1846_v40  ;;  %v1235_v63 = vstv %s2882_s15  ;;  %v1157_v56 = vmul.f32 %v1156_v25, %v1885_v2 }
  0xe8   :  { %v1203_v28 = vstv %s2889_s16  ;;  %v1228_v60 = vadd.f32 %v1227_v13, %v1225_v37  ;;  %v1233_v45 = vmul.f32 %v1232_v5, %v1761_v46  ;;  %v1105_v14 = vadd.f32 %v1104_v8, %v1102_v36 }
  0xe9   :  { %v1196_v43 = vadd.f32 %v1195_v42, %v1193_v41  ;;  %v1201_v59 = vmul.f32 %v1200_v49, %v1870_v0  ;;  %v1238_v12 = vstv %s2895_s17  ;;  %v1155_v16 = vadd.f32 %v1154_v11, %v1152_v48 }
  0xea   :  { %v1206_v27 = vstv %s2899_s18  ;;  %v1231_v52 = vadd.f32 %v1230_v1, %v1228_v60  ;;  %v1236_v15 = vmul.f32 %v1235_v63, %v1783_v57  ;;  %v1159_v46 = vstv %s2904_s0 }
  0xeb   :  { %v1199_v17 = vadd.f32 %v1198_v32, %v1196_v43  ;;  %v1204_v20 = vmul.f32 %v1203_v28, %v1876_v61  ;;  %v1241_v21 = vstv %s2906_s19  ;;  %v1057_v8 = vadd.f32 %v1056_v50, %v1055_v38 }
  0xec   :  { %v1209_v10 = vstv %s2911_s20  ;;  %v1234_v54 = vadd.f32 %v1233_v45, %v1231_v52  ;;  %v1239_v11 = vmul.f32 %v1238_v12, %v1797_v6  ;;  %v1108_v57 = vadd.f32 %v2885_v51, %v1105_v14 }
  0xed   :  { %v1202_v47 = vadd.f32 %v1201_v59, %v1199_v17  ;;  %v1207_v58 = vmul.f32 %v1206_v27, %v1878_v62  ;;  %v1244_v53 = vstv %s2917_s21  ;;  %v1158_v33 = vadd.f32 %v1157_v56, %v1155_v16 }
  0xee   :  { %v1160_v50 = vmul.f32 %v1159_v46, %v1906_v22  ;;  %v1237_v39 = vadd.f32 %v1236_v15, %v1234_v54  ;;  %v1242_v6 = vmul.f32 %v1241_v21, %v1799_v7  ;;  %v1210_v25 = vmul.f32 %v1209_v10, %v1885_v2 }
  0xef   :  { %v1205_v23 = vadd.f32 %v1204_v20, %v1202_v47  ;;  %v1212_v51 = vstv %s2923_s22  ;;  %v1247_v4 = vstv %s2925_s23  ;;  %v1007_v26 = vmul.f32 %v1006_v44, %v1005_v55 }
  0xf0   :  { %v1059_v30 = vstv %s2930_s25  ;;  %v1240_v31 = vadd.f32 %v1239_v11, %v1237_v39  ;;  %v1245_v3 = vmul.f32 %v1244_v53, %v1815_v18  ;;  %v1058_v7 = vmax.f32 %v1057_v8, 0.0 }
  0xf1   :  { %v1110_v13 = vadd.f32 %v1109_v9, %v1108_v57  ;;  %v1208_v34 = vadd.f32 %v1207_v58, %v1205_v23  ;;  %v1250_v36 = vstv %s2935_s26  ;;  %v1161_v35 = vadd.f32 %v1160_v50, %v1158_v33 }
  0xf2   :  { %v1213_v24 = vmul.f32 %v1212_v51, %v1906_v22  ;;  %v1243_v42 = vadd.f32 %v1242_v6, %v1240_v31  ;;  %v1248_v44 = vmul.f32 %v1247_v4, %v1817_v19  ;;  %v1162_v18 = vstv %s2943_s28 }
  0xf3   :  { %v1211_v55 = vadd.f32 %v1210_v25, %v1208_v34  ;;  %v1253_v5 = vstv %s2941_s27  ;;  %v1008_v9 = vadd.f32 %v1007_v26, %v2733_v29  ;;  %v1251_v49 = vmul.f32 %v1250_v36, %v1846_v40 }
  0xf4   :  { %v1246_v48 = vadd.f32 %v1245_v3, %v1243_v42  ;;  %v1060_v37 = vmul.f32 %v1059_v30, %v1058_v7  ;;  %v1111_v1 = vmax.f32 %v1110_v13, 0.0  ;;  %v1112_v38 = vstv %s2954_s30 }
  0xf5   :  { %v1256_v41 = vstv %s2952_s29  ;;  %v1163_v19 = vadd.f32 %v1162_v18, %v1161_v35  ;;  %v1214_v32 = vadd.f32 %v1213_v24, %v1211_v55  ;;  %v1254_v56 = vmul.f32 %v1253_v5, %v1870_v0 }
  0xf6   :  { %v1249_v63 = vadd.f32 %v1248_v44, %v1246_v48  ;;  %v1215_v28 = vstv %s2963_s3  ;;  %v1259_v60 = vstv %s2961_s12  ;;  %v1257_v29 = vmul.f32 %v1256_v41, %v1876_v61 }
  0xf7   :  { %v1061_v40 = vadd.f32 %v1060_v37, %v1008_v9  ;;  %v1113_v14 = vmul.f32 %v1112_v38, %v1111_v1  ;;  %v1262_v43 = vstv %s2974_s5  ;;  %v1164_v59 = vmax.f32 %v1163_v19, 0.0 }
  0xf8   :  { %v1252_v45 = vadd.f32 %v1251_v49, %v1249_v63  ;;  %v1216_v12 = vadd.f32 %v1215_v28, %v1214_v32  ;;  %v1260_v27 = vmul.f32 %v1259_v60, %v1878_v62  ;;  %v1165_v52 = vstv %s2983_s6 }
  0xf9   :  { %v1265_v15 = vstv %s2981_s24  ;;  %v1263_v0 = vmul.f32 %v1262_v43, %v1885_v2  ;;  %v1114_v17 = vadd.f32 %v1113_v14, %v1061_v40  ;;  %v1166_v20 = vmul.f32 %v1165_v52, %v1164_v59 }
  0xfa   :  { %v1255_v16 = vadd.f32 %v1254_v56, %v1252_v45  ;;  %v1217_v21 = vmax.f32 %v1216_v12, 0.0  ;;  %v1266_v61 = vmul.f32 %v1265_v15, %v1906_v22  ;;  %v1218_v10 = vstv %s1604_s4 }
  0xfb   :  { %v1268_v11 = vstv %s1589_s7  ;;  %v1167_v57 = vadd.f32 %v1166_v20, %v1114_v17  ;;  %v1271_v53 = vstv %s1605_s8  ;;  %v1274_v2 = vstv %s1606_s1 }
  0xfc   :  { %v1258_v46 = vadd.f32 %v1257_v29, %v1255_v16  ;;  %v1219_v47 = vmul.f32 %v1218_v10, %v1217_v21 }
  0xfe   :  { %v1261_v8 = vadd.f32 %v1260_v27, %v1258_v46  ;;  %v1220_v33 = vadd.f32 %v1219_v47, %v1167_v57 }
 0x100   :  { %v1264_v54 = vadd.f32 %v1263_v0, %v1261_v8 }
 0x102   :  { %v1267_v58 = vadd.f32 %v1266_v61, %v1264_v54 }
 0x104   :  { %v1269_v62 = vadd.f32 %v1268_v11, %v1267_v58 }
 0x106   :  { %v1270_v50 = vmax.f32 %v1269_v62, 0.0 }
 0x108   :  { %v1272_v39 = vmul.f32 %v1271_v53, %v1270_v50 }
 0x10a   :  { %v1273_v6 = vadd.f32 %v1272_v39, %v1220_v33 }
 0x10c   :  { %v1275_v23 = vadd.f32 %v1274_v2, %v1273_v6 }
 0x10e   :  { %v1276_v25 = vmul.f32 0.5, %v1275_v23 }
 0x110   :  { %1608 = vtanh.f32 %v1276_v25 }
 0x11a   :  { %v1609_v51 = vpop.eup %1608 }
 0x11b   :  { %v1278_v4 = vadd.f32 1.0, %v1609_v51 }
 0x11d   :  { %v1279_v22 = vmul.f32 0.5, %v1278_v4 }
 0x11f   :  { %v1280_v26 = vadd.f32 1e-06, %v1279_v22 }
 0x121   :  { %1281 = vst [vmem:[%s3006_s2] sm:$0xff] %v1280_v26 }
 0x122   :  { %1286 = vsyncpa [#allocation3], 1 }

</bundles_post_ra>
